<compile_context>
chip_gen: v6e
topology: v6e:2x2x1
jax: 0.10.0
libtpu: 0.0.40
codegen_flags: <defaults>
</compile_context>

<pallas_src>
import functools

import jax
import jax.numpy as jnp
import numpy as np
from jax.experimental import pallas as pl
from jax.experimental.pallas import tpu as pltpu

_LANE = 128
_SUBLANE = 8


def _round_up(x, m):
    return ((x + m - 1) // m) * m


# ----------------------------------------------------------------------------
# Pallas kernels
# ----------------------------------------------------------------------------
def _bilstm4_kernel(x_ref, wih_ref, whh_ref, b_ref, y_ref, pre_scr, h_scr, c_scr):
    """One full LSTM direction per grid step (grid axis 0 = direction, 'parallel').

    x_ref  : (T*Bp, E)   embeddings, time-major flattened (shared by all directions)
    wih_ref: (E, 4H)     this direction's input->gates weights
    whh_ref: (H, 4H)     this direction's hidden->gates weights
    b_ref  : (1, 4H)     combined bias (b_ih + b_hh)
    y_ref  : (T*Bp, H)   this direction's hidden states (time-major flattened)
    pre_scr: (T*Bp, 4H)  precomputed input projections (VMEM scratch)
    h_scr, c_scr : (Bp, H) recurrent state (VMEM scratch)

    Odd direction indices (1, 3) process the sequence in reverse, matching the
    backward half of a PyTorch bidirectional LSTM.
    """
    batch = h_scr.shape[0]
    hidden = h_scr.shape[1]
    seq_len = x_ref.shape[0] // batch

    rev = (pl.program_id(0) % 2) == 1

    # Hoisted input projection for ALL timesteps: one MXU matmul instead of T tiny ones.
    pre_scr[...] = (
        jnp.dot(x_ref[...], wih_ref[...], preferred_element_type=jnp.float32)
        + b_ref[...]
    )

    h_scr[...] = jnp.zeros_like(h_scr)
    c_scr[...] = jnp.zeros_like(c_scr)

    def step(s, carry):
        t = jnp.where(rev, seq_len - 1 - s, s)
        row = pl.multiple_of(t * batch, batch)
        gates = pre_scr[pl.ds(row, batch), :] + jnp.dot(
            h_scr[...], whh_ref[...], preferred_element_type=jnp.float32)
        i_g = jax.nn.sigmoid(gates[:, 0:hidden])
        f_g = jax.nn.sigmoid(gates[:, hidden:2 * hidden])
        g_g = jnp.tanh(gates[:, 2 * hidden:3 * hidden])
        o_g = jax.nn.sigmoid(gates[:, 3 * hidden:4 * hidden])
        c_new = f_g * c_scr[...] + i_g * g_g
        h_new = o_g * jnp.tanh(c_new)
        c_scr[...] = c_new
        h_scr[...] = h_new
        y_ref[pl.ds(row, batch), :] = h_new.astype(y_ref.dtype)
        return carry

    jax.lax.fori_loop(0, seq_len, step, 0, unroll=True)


def _heads_kernel(h_ref, wi_ref, bi_ref, wt_ref, bt_ref, int_ref, tags_ref):
    """Both linear heads in one epilogue kernel.

    h_ref  : (4, T*Bp, H)  per-direction hidden states [i_fwd, i_bwd, t_fwd, t_bwd]
    wi_ref : (4, H, Np)    intents head weights, split along the 4H feature dim
    bi_ref : (1, Np)
    wt_ref : (4, H, Np)    tags head weights, split along the 4H feature dim
    bt_ref : (1, Np)
    int_ref: (Bp, Np)      intents logits (lane-dense, zero-padded columns)
    tags_ref:(T*Bp, Np)    tags logits    (lane-dense, zero-padded columns)

    The concat over the 4H feature dim is expressed as a sum of 4 H-wide matmuls,
    so no in-kernel concatenate/reshape is needed.
    """
    n_dirs, tb, _ = h_ref.shape
    bp = int_ref.shape[0]
    tags_acc = jnp.zeros(tags_ref.shape, jnp.float32)
    int_acc = jnp.zeros(int_ref.shape, jnp.float32)
    for d in range(n_dirs):  # static unroll over 4 directions
        hd = h_ref[d]                                        # (T*Bp, H)
        tags_acc = tags_acc + jnp.dot(
            hd, wt_ref[d], preferred_element_type=jnp.float32)
        int_acc = int_acc + jnp.dot(
            hd[tb - bp:, :], wi_ref[d], preferred_element_type=jnp.float32)
    tags_ref[...] = tags_acc + bt_ref[...]
    int_ref[...] = int_acc + bi_ref[...]


# ----------------------------------------------------------------------------
# Model forward
# ----------------------------------------------------------------------------
def async_model_forward(params, tokens):
    """tokens: (T, B) int32 -> (intents_logits (B, I), tags_logits (T, B, G))."""
    T, B = tokens.shape
    emb = params["emb"]
    E = emb.shape[1]
    ir, tr = params["intents_rnn"], params["tags_rnn"]
    H = ir["whh_f"].shape[0]
    I = params["intents_out_b"].shape[0]
    G = params["tags_out_b"].shape[0]

    Bp = _round_up(max(B, _SUBLANE), _SUBLANE)   # full-sublane batch
    Np = _round_up(max(I, G), _LANE)             # lane-dense head output width

    # ---- glue: embedding gather + batch pad (tiny) ----
    embs = jnp.take(emb, tokens, axis=0)                      # (T, B, E)
    embs = jnp.pad(embs, ((0, 0), (0, Bp - B), (0, 0)))       # (T, Bp, E)
    x2 = embs.reshape(T * Bp, E)                              # contiguous, no copy

    # ---- stack the 4 directions: [intents_fwd, intents_bwd, tags_fwd, tags_bwd] ----
    wih_s = jnp.stack([ir["wih_f"], ir["wih_b"], tr["wih_f"], tr["wih_b"]])   # (4,E,4H)
    whh_s = jnp.stack([ir["whh_f"], ir["whh_b"], tr["whh_f"], tr["whh_b"]])   # (4,H,4H)
    b_s = jnp.stack([ir["b_f"], ir["b_b"], tr["b_f"], tr["b_b"]])             # (4,1,4H)

    h_all = pl.pallas_call(
        _bilstm4_kernel,
        out_shape=jax.ShapeDtypeStruct((4, T * Bp, H), jnp.float32),
        grid_spec=pltpu.PrefetchScalarGridSpec(
            num_scalar_prefetch=0,
            grid=(4,),                                   # 4 independent directions
            in_specs=[
                pl.BlockSpec((T * Bp, E), lambda d: (0, 0)),
                pl.BlockSpec((None, E, 4 * H), lambda d: (d, 0, 0)),
                pl.BlockSpec((None, H, 4 * H), lambda d: (d, 0, 0)),
                pl.BlockSpec((None, 1, 4 * H), lambda d: (d, 0, 0)),
            ],
            out_specs=pl.BlockSpec((None, T * Bp, H), lambda d: (d, 0, 0)),
            scratch_shapes=[
                pltpu.VMEM((T * Bp, 4 * H), jnp.float32),   # pre-gates
                pltpu.VMEM((Bp, H), jnp.float32),           # h
                pltpu.VMEM((Bp, H), jnp.float32),           # c
            ],
        ),
        compiler_params=pltpu.CompilerParams(
            dimension_semantics=("parallel",),   # directions shard across TCs on v7x
        ),
    )(x2, wih_s, whh_s, b_s)

    # ---- heads: zero-pad N up to a full lane width, split 4H feature dim per dir ----
    wi = jnp.pad(params["intents_out_w"], ((0, 0), (0, Np - I))).reshape(4, H, Np)
    bi = jnp.pad(params["intents_out_b"], (0, Np - I)).reshape(1, Np)
    wt = jnp.pad(params["tags_out_w"], ((0, 0), (0, Np - G))).reshape(4, H, Np)
    bt = jnp.pad(params["tags_out_b"], (0, Np - G)).reshape(1, Np)

    intents_p, tags_p = pl.pallas_call(
        _heads_kernel,
        out_shape=(jax.ShapeDtypeStruct((Bp, Np), jnp.float32),
                   jax.ShapeDtypeStruct((T * Bp, Np), jnp.float32)),
        in_specs=[pl.BlockSpec(memory_space=pltpu.MemorySpace.VMEM)] * 5,
        out_specs=(pl.BlockSpec(memory_space=pltpu.MemorySpace.VMEM),
                   pl.BlockSpec(memory_space=pltpu.MemorySpace.VMEM)),
    )(h_all, wi, bi, wt, bt)

    intents_logits = intents_p[:B, :I]
    tags_logits = tags_p.reshape(T, Bp, Np)[:, :B, :G]
    return intents_logits, tags_logits


# ----------------------------------------------------------------------------
# Pure-JAX reference (for correctness check)
# ----------------------------------------------------------------------------
def _lstm_dir_ref(x, wih, whh, b):
    T, B, E = x.shape
    H = whh.shape[0]

    def step(carry, xt):
        h, c = carry
        gates = xt @ wih + h @ whh + b[0]
        i = jax.nn.sigmoid(gates[:, :H])
        f = jax.nn.sigmoid(gates[:, H:2 * H])
        g = jnp.tanh(gates[:, 2 * H:3 * H])
        o = jax.nn.sigmoid(gates[:, 3 * H:])
        c = f * c + i * g
        h = o * jnp.tanh(c)
        return (h, c), h

    init = (jnp.zeros((B, H), jnp.float32), jnp.zeros((B, H), jnp.float32))
    _, ys = jax.lax.scan(step, init, x)
    return ys


def _bilstm_ref(x, p):
    fwd = _lstm_dir_ref(x, p["wih_f"], p["whh_f"], p["b_f"])
    bwd = _lstm_dir_ref(x[::-1], p["wih_b"], p["whh_b"], p["b_b"])[::-1]
    return jnp.concatenate([fwd, bwd], axis=-1)


def forward_ref(params, tokens):
    embs = jnp.take(params["emb"], tokens, axis=0)
    io = _bilstm_ref(embs, params["intents_rnn"])
    to = _bilstm_ref(embs, params["tags_rnn"])
    ih = jnp.concatenate([io[-1], to[-1]], axis=-1)
    th = jnp.concatenate([io, to], axis=-1)
    intents = ih @ params["intents_out_w"] + params["intents_out_b"]
    tags = th @ params["tags_out_w"] + params["tags_out_b"]
    return intents, tags


# ----------------------------------------------------------------------------
# Deterministic parameter init
# ----------------------------------------------------------------------------
def init_params(key, vocab_size, intents_count, tags_count, emb_dim, hidden):
    ks = iter(jax.random.split(key, 32))

    def u(shape, scale=0.08):
        return jax.random.uniform(next(ks), shape, jnp.float32, -scale, scale)

    def rnn_params():
        return {
            "wih_f": u((emb_dim, 4 * hidden)),
            "whh_f": u((hidden, 4 * hidden)),
            "b_f": u((1, 4 * hidden)),
            "wih_b": u((emb_dim, 4 * hidden)),
            "whh_b": u((hidden, 4 * hidden)),
            "b_b": u((1, 4 * hidden)),
        }

    return {
        "emb": u((vocab_size, emb_dim), 0.5),
        "intents_rnn": rnn_params(),
        "tags_rnn": rnn_params(),
        "intents_out_w": u((4 * hidden, intents_count)),
        "intents_out_b": u((intents_count,)),
        "tags_out_w": u((4 * hidden, tags_count)),
        "tags_out_b": u((tags_count,)),
    }


# ----------------------------------------------------------------------------
if __name__ == "__main__":
    VOCAB = 50
    INTENTS = 8
    TAGS = 12
    EMB = 64
    HID = 128
    T, B = 8, 2

    key = jax.random.PRNGKey(0)
    pkey, tkey = jax.random.split(key)
    params = init_params(pkey, VOCAB, INTENTS, TAGS, EMB, HID)
    tokens = jax.random.randint(tkey, (T, B), 0, VOCAB, dtype=jnp.int32)

    fwd = jax.jit(functools.partial(async_model_forward, params))
    intents_logits, tags_logits = fwd(tokens)
    jax.block_until_ready((intents_logits, tags_logits))

    assert intents_logits.shape == (B, INTENTS)
    assert tags_logits.shape == (T, B, TAGS)

    # Correctness check against a pure-JAX reference.
    ref_intents, ref_tags = jax.jit(functools.partial(forward_ref, params))(tokens)
    np.testing.assert_allclose(np.asarray(intents_logits), np.asarray(ref_intents),
                               rtol=1e-4, atol=1e-4)
    np.testing.assert_allclose(np.asarray(tags_logits), np.asarray(ref_tags),
                               rtol=1e-4, atol=1e-4)

    print("KERNEL_OK")
</pallas_src>

<mosaic_0001>
module attributes {stable_mosaic.version = 11 : i64} {
  func.func @_heads_kernel(%arg0: memref<4x64x128xf32, #tpu.memory_space<vmem>>, %arg1: memref<4x128x128xf32, #tpu.memory_space<vmem>>, %arg2: memref<1x128xf32, #tpu.memory_space<vmem>>, %arg3: memref<4x128x128xf32, #tpu.memory_space<vmem>>, %arg4: memref<1x128xf32, #tpu.memory_space<vmem>>, %arg5: memref<8x128xf32, #tpu.memory_space<vmem>>, %arg6: memref<64x128xf32, #tpu.memory_space<vmem>>) attributes {dimension_semantics = [], scalar_prefetch = 0 : i64, scratch_operands = 0 : i64, tpu.core_type = #tpu.core_type<tc>} {
    %cst = arith.constant 0.000000e+00 : f32
    %0 = vector.broadcast %cst : f32 to vector<64x128xf32>
    %cst_0 = arith.constant 0.000000e+00 : f32
    %1 = vector.broadcast %cst_0 : f32 to vector<8x128xf32>
    %c0 = arith.constant 0 : index
    %c0_1 = arith.constant 0 : index
    %c0_2 = arith.constant 0 : index
    %2 = vector.load %arg0[%c0, %c0_1, %c0_2] : memref<4x64x128xf32, #tpu.memory_space<vmem>>, vector<1x64x128xf32>
    %3 = vector.shape_cast %2 : vector<1x64x128xf32> to vector<64x128xf32>
    %c0_3 = arith.constant 0 : index
    %c0_4 = arith.constant 0 : index
    %c0_5 = arith.constant 0 : index
    %4 = vector.load %arg3[%c0_3, %c0_4, %c0_5] : memref<4x128x128xf32, #tpu.memory_space<vmem>>, vector<1x128x128xf32>
    %5 = vector.shape_cast %4 : vector<1x128x128xf32> to vector<128x128xf32>
    %cst_6 = arith.constant dense<0.000000e+00> : vector<64x128xf32>
    %6 = tpu.matmul %3, %5, %cst_6 {dimension_numbers = #tpu.dot_dimension_numbers<[1], [0], [0], [1], [0, 0, 1, 1], [], []>} : vector<64x128xf32>, vector<128x128xf32>, vector<64x128xf32> -> vector<64x128xf32>
    %7 = arith.addf %0, %6 : vector<64x128xf32>
    %8 = vector.extract_strided_slice %3 {offsets = [56, 0], sizes = [8, 128], strides = [1, 1]} : vector<64x128xf32> to vector<8x128xf32>
    %c0_7 = arith.constant 0 : index
    %c0_8 = arith.constant 0 : index
    %c0_9 = arith.constant 0 : index
    %9 = vector.load %arg1[%c0_7, %c0_8, %c0_9] : memref<4x128x128xf32, #tpu.memory_space<vmem>>, vector<1x128x128xf32>
    %10 = vector.shape_cast %9 : vector<1x128x128xf32> to vector<128x128xf32>
    %cst_10 = arith.constant dense<0.000000e+00> : vector<8x128xf32>
    %11 = tpu.matmul %8, %10, %cst_10 {dimension_numbers = #tpu.dot_dimension_numbers<[1], [0], [0], [1], [0, 0, 1, 1], [], []>} : vector<8x128xf32>, vector<128x128xf32>, vector<8x128xf32> -> vector<8x128xf32>
    %12 = arith.addf %1, %11 : vector<8x128xf32>
    %c1 = arith.constant 1 : index
    %c0_11 = arith.constant 0 : index
    %c0_12 = arith.constant 0 : index
    %13 = vector.load %arg0[%c1, %c0_11, %c0_12] : memref<4x64x128xf32, #tpu.memory_space<vmem>>, vector<1x64x128xf32>
    %14 = vector.shape_cast %13 : vector<1x64x128xf32> to vector<64x128xf32>
    %c1_13 = arith.constant 1 : index
    %c0_14 = arith.constant 0 : index
    %c0_15 = arith.constant 0 : index
    %15 = vector.load %arg3[%c1_13, %c0_14, %c0_15] : memref<4x128x128xf32, #tpu.memory_space<vmem>>, vector<1x128x128xf32>
    %16 = vector.shape_cast %15 : vector<1x128x128xf32> to vector<128x128xf32>
    %cst_16 = arith.constant dense<0.000000e+00> : vector<64x128xf32>
    %17 = tpu.matmul %14, %16, %cst_16 {dimension_numbers = #tpu.dot_dimension_numbers<[1], [0], [0], [1], [0, 0, 1, 1], [], []>} : vector<64x128xf32>, vector<128x128xf32>, vector<64x128xf32> -> vector<64x128xf32>
    %18 = arith.addf %7, %17 : vector<64x128xf32>
    %19 = vector.extract_strided_slice %14 {offsets = [56, 0], sizes = [8, 128], strides = [1, 1]} : vector<64x128xf32> to vector<8x128xf32>
    %c1_17 = arith.constant 1 : index
    %c0_18 = arith.constant 0 : index
    %c0_19 = arith.constant 0 : index
    %20 = vector.load %arg1[%c1_17, %c0_18, %c0_19] : memref<4x128x128xf32, #tpu.memory_space<vmem>>, vector<1x128x128xf32>
    %21 = vector.shape_cast %20 : vector<1x128x128xf32> to vector<128x128xf32>
    %cst_20 = arith.constant dense<0.000000e+00> : vector<8x128xf32>
    %22 = tpu.matmul %19, %21, %cst_20 {dimension_numbers = #tpu.dot_dimension_numbers<[1], [0], [0], [1], [0, 0, 1, 1], [], []>} : vector<8x128xf32>, vector<128x128xf32>, vector<8x128xf32> -> vector<8x128xf32>
    %23 = arith.addf %12, %22 : vector<8x128xf32>
    %c2 = arith.constant 2 : index
    %c0_21 = arith.constant 0 : index
    %c0_22 = arith.constant 0 : index
    %24 = vector.load %arg0[%c2, %c0_21, %c0_22] : memref<4x64x128xf32, #tpu.memory_space<vmem>>, vector<1x64x128xf32>
    %25 = vector.shape_cast %24 : vector<1x64x128xf32> to vector<64x128xf32>
    %c2_23 = arith.constant 2 : index
    %c0_24 = arith.constant 0 : index
    %c0_25 = arith.constant 0 : index
    %26 = vector.load %arg3[%c2_23, %c0_24, %c0_25] : memref<4x128x128xf32, #tpu.memory_space<vmem>>, vector<1x128x128xf32>
    %27 = vector.shape_cast %26 : vector<1x128x128xf32> to vector<128x128xf32>
    %cst_26 = arith.constant dense<0.000000e+00> : vector<64x128xf32>
    %28 = tpu.matmul %25, %27, %cst_26 {dimension_numbers = #tpu.dot_dimension_numbers<[1], [0], [0], [1], [0, 0, 1, 1], [], []>} : vector<64x128xf32>, vector<128x128xf32>, vector<64x128xf32> -> vector<64x128xf32>
    %29 = arith.addf %18, %28 : vector<64x128xf32>
    %30 = vector.extract_strided_slice %25 {offsets = [56, 0], sizes = [8, 128], strides = [1, 1]} : vector<64x128xf32> to vector<8x128xf32>
    %c2_27 = arith.constant 2 : index
    %c0_28 = arith.constant 0 : index
    %c0_29 = arith.constant 0 : index
    %31 = vector.load %arg1[%c2_27, %c0_28, %c0_29] : memref<4x128x128xf32, #tpu.memory_space<vmem>>, vector<1x128x128xf32>
    %32 = vector.shape_cast %31 : vector<1x128x128xf32> to vector<128x128xf32>
    %cst_30 = arith.constant dense<0.000000e+00> : vector<8x128xf32>
    %33 = tpu.matmul %30, %32, %cst_30 {dimension_numbers = #tpu.dot_dimension_numbers<[1], [0], [0], [1], [0, 0, 1, 1], [], []>} : vector<8x128xf32>, vector<128x128xf32>, vector<8x128xf32> -> vector<8x128xf32>
    %34 = arith.addf %23, %33 : vector<8x128xf32>
    %c3 = arith.constant 3 : index
    %c0_31 = arith.constant 0 : index
    %c0_32 = arith.constant 0 : index
    %35 = vector.load %arg0[%c3, %c0_31, %c0_32] : memref<4x64x128xf32, #tpu.memory_space<vmem>>, vector<1x64x128xf32>
    %36 = vector.shape_cast %35 : vector<1x64x128xf32> to vector<64x128xf32>
    %c3_33 = arith.constant 3 : index
    %c0_34 = arith.constant 0 : index
    %c0_35 = arith.constant 0 : index
    %37 = vector.load %arg3[%c3_33, %c0_34, %c0_35] : memref<4x128x128xf32, #tpu.memory_space<vmem>>, vector<1x128x128xf32>
    %38 = vector.shape_cast %37 : vector<1x128x128xf32> to vector<128x128xf32>
    %cst_36 = arith.constant dense<0.000000e+00> : vector<64x128xf32>
    %39 = tpu.matmul %36, %38, %cst_36 {dimension_numbers = #tpu.dot_dimension_numbers<[1], [0], [0], [1], [0, 0, 1, 1], [], []>} : vector<64x128xf32>, vector<128x128xf32>, vector<64x128xf32> -> vector<64x128xf32>
    %40 = arith.addf %29, %39 : vector<64x128xf32>
    %41 = vector.extract_strided_slice %36 {offsets = [56, 0], sizes = [8, 128], strides = [1, 1]} : vector<64x128xf32> to vector<8x128xf32>
    %c3_37 = arith.constant 3 : index
    %c0_38 = arith.constant 0 : index
    %c0_39 = arith.constant 0 : index
    %42 = vector.load %arg1[%c3_37, %c0_38, %c0_39] : memref<4x128x128xf32, #tpu.memory_space<vmem>>, vector<1x128x128xf32>
    %43 = vector.shape_cast %42 : vector<1x128x128xf32> to vector<128x128xf32>
    %cst_40 = arith.constant dense<0.000000e+00> : vector<8x128xf32>
    %44 = tpu.matmul %41, %43, %cst_40 {dimension_numbers = #tpu.dot_dimension_numbers<[1], [0], [0], [1], [0, 0, 1, 1], [], []>} : vector<8x128xf32>, vector<128x128xf32>, vector<8x128xf32> -> vector<8x128xf32>
    %45 = arith.addf %34, %44 : vector<8x128xf32>
    %c0_41 = arith.constant 0 : index
    %c0_42 = arith.constant 0 : index
    %46 = vector.load %arg4[%c0_41, %c0_42] : memref<1x128xf32, #tpu.memory_space<vmem>>, vector<1x128xf32>
    %47 = vector.broadcast %46 : vector<1x128xf32> to vector<64x128xf32>
    %48 = arith.addf %40, %47 : vector<64x128xf32>
    %c0_43 = arith.constant 0 : index
    %c0_44 = arith.constant 0 : index
    %49 = vector.load %arg6[%c0_43, %c0_44] : memref<64x128xf32, #tpu.memory_space<vmem>>, vector<64x128xf32>
    tpu.vector_store %arg6[%c0_43, %c0_44], %48 {strides = array<i32>} : memref<64x128xf32, #tpu.memory_space<vmem>>, vector<64x128xf32>,
    %c0_45 = arith.constant 0 : index
    %c0_46 = arith.constant 0 : index
    %50 = vector.load %arg2[%c0_45, %c0_46] : memref<1x128xf32, #tpu.memory_space<vmem>>, vector<1x128xf32>
    %51 = vector.broadcast %50 : vector<1x128xf32> to vector<8x128xf32>
    %52 = arith.addf %45, %51 : vector<8x128xf32>
    %c0_47 = arith.constant 0 : index
    %c0_48 = arith.constant 0 : index
    %53 = vector.load %arg5[%c0_47, %c0_48] : memref<8x128xf32, #tpu.memory_space<vmem>>, vector<8x128xf32>
    tpu.vector_store %arg5[%c0_47, %c0_48], %52 {strides = array<i32>} : memref<8x128xf32, #tpu.memory_space<vmem>>, vector<8x128xf32>,
    return
  }
}

module attributes {stable_mosaic.version = 11 : i64} {
  func.func @_bilstm4_kernel(%arg0: i32, %arg1: memref<64x64xf32, #tpu.memory_space<vmem>>, %arg2: memref<1x64x512xf32, #tpu.memory_space<vmem>>, %arg3: memref<1x128x512xf32, #tpu.memory_space<vmem>>, %arg4: memref<1x1x512xf32, #tpu.memory_space<vmem>>, %arg5: memref<1x64x128xf32, #tpu.memory_space<vmem>>, %arg6: memref<64x512xf32, #tpu.memory_space<vmem>>, %arg7: memref<8x128xf32, #tpu.memory_space<vmem>>, %arg8: memref<8x128xf32, #tpu.memory_space<vmem>>) attributes {dimension_semantics = [#tpu.dimension_semantics<parallel>], iteration_bounds = array<i64: 4>, scalar_prefetch = 0 : i64, scratch_operands = 3 : i64, tpu.core_type = #tpu.core_type<tc>, window_params = [{pipeline_mode = #tpu.pipeline_mode<synchronous>, transform_indices = @transform_0, window_bounds = array<i64: 64, 64>}, {transform_indices = @transform_1, window_bounds = array<i64: 1, 64, 512>}, {transform_indices = @transform_2, window_bounds = array<i64: 1, 128, 512>}, {transform_indices = @transform_3, window_bounds = array<i64: 1, 1, 512>}, {transform_indices = @transform_4, window_bounds = array<i64: 1, 64, 128>}]} {
    %c2_i32 = arith.constant 2 : i32
    %c0_i32 = arith.constant 0 : i32
    %0 = arith.cmpi eq, %c2_i32, %c0_i32 : i32
    %c1_i32 = arith.constant 1 : i32
    %1 = arith.select %0, %c1_i32, %c2_i32 : i32
    %2 = arith.remsi %arg0, %1 : i32
    %c0_i32_0 = arith.constant 0 : i32
    %3 = arith.cmpi ne, %2, %c0_i32_0 : i32
    %c0_i32_1 = arith.constant 0 : i32
    %4 = arith.cmpi slt, %2, %c0_i32_1 : i32
    %c0_i32_2 = arith.constant 0 : i32
    %5 = arith.cmpi slt, %1, %c0_i32_2 : i32
    %6 = arith.xori %4, %5 : i1
    %7 = arith.andi %6, %3 : i1
    %8 = arith.addi %2, %1 : i32
    %9 = arith.select %7, %8, %2 : i32
    %c1_i32_3 = arith.constant 1 : i32
    %10 = arith.cmpi eq, %9, %c1_i32_3 : i32
    %c0 = arith.constant 0 : index
    %c0_4 = arith.constant 0 : index
    %11 = vector.load %arg1[%c0, %c0_4] : memref<64x64xf32, #tpu.memory_space<vmem>>, vector<64x64xf32>
    %c0_5 = arith.constant 0 : index
    %c0_6 = arith.constant 0 : index
    %c0_7 = arith.constant 0 : index
    %12 = vector.load %arg2[%c0_5, %c0_6, %c0_7] : memref<1x64x512xf32, #tpu.memory_space<vmem>>, vector<1x64x512xf32>
    %13 = vector.shape_cast %12 : vector<1x64x512xf32> to vector<64x512xf32>
    %cst = arith.constant dense<0.000000e+00> : vector<64x512xf32>
    %14 = tpu.matmul %11, %13, %cst {dimension_numbers = #tpu.dot_dimension_numbers<[1], [0], [0], [1], [0, 0, 1, 1], [], []>} : vector<64x64xf32>, vector<64x512xf32>, vector<64x512xf32> -> vector<64x512xf32>
    %c0_8 = arith.constant 0 : index
    %c0_9 = arith.constant 0 : index
    %c0_10 = arith.constant 0 : index
    %15 = vector.load %arg4[%c0_8, %c0_9, %c0_10] : memref<1x1x512xf32, #tpu.memory_space<vmem>>, vector<1x1x512xf32>
    %16 = vector.shape_cast %15 : vector<1x1x512xf32> to vector<1x512xf32>
    %17 = vector.broadcast %16 : vector<1x512xf32> to vector<64x512xf32>
    %18 = arith.addf %14, %17 : vector<64x512xf32>
    %c0_11 = arith.constant 0 : index
    %c0_12 = arith.constant 0 : index
    %19 = vector.load %arg6[%c0_11, %c0_12] : memref<64x512xf32, #tpu.memory_space<vmem>>, vector<64x512xf32>
    tpu.vector_store %arg6[%c0_11, %c0_12], %18 {strides = array<i32>} : memref<64x512xf32, #tpu.memory_space<vmem>>, vector<64x512xf32>,
    %cst_13 = arith.constant 0.000000e+00 : f32
    %20 = vector.broadcast %cst_13 : f32 to vector<8x128xf32>
    %c0_14 = arith.constant 0 : index
    %c0_15 = arith.constant 0 : index
    %21 = vector.load %arg7[%c0_14, %c0_15] : memref<8x128xf32, #tpu.memory_space<vmem>>, vector<8x128xf32>
    tpu.vector_store %arg7[%c0_14, %c0_15], %20 {strides = array<i32>} : memref<8x128xf32, #tpu.memory_space<vmem>>, vector<8x128xf32>,
    %cst_16 = arith.constant 0.000000e+00 : f32
    %22 = vector.broadcast %cst_16 : f32 to vector<8x128xf32>
    %c0_17 = arith.constant 0 : index
    %c0_18 = arith.constant 0 : index
    %23 = vector.load %arg8[%c0_17, %c0_18] : memref<8x128xf32, #tpu.memory_space<vmem>>, vector<8x128xf32>
    tpu.vector_store %arg8[%c0_17, %c0_18], %22 {strides = array<i32>} : memref<8x128xf32, #tpu.memory_space<vmem>>, vector<8x128xf32>,
    %c0_i32_19 = arith.constant 0 : i32
    %c7_i32 = arith.constant 7 : i32
    %24 = arith.subi %c7_i32, %c0_i32_19 : i32
    %25 = arith.select %10, %24, %c0_i32_19 : i32
    %c8_i32 = arith.constant 8 : i32
    %26 = arith.muli %25, %c8_i32 : i32
    %27 = tpu.assume_multiple %26, 8 : i32
    %28 = arith.index_cast %27 : i32 to index
    %c0_20 = arith.constant 0 : index
    %29 = vector.load %arg6[%28, %c0_20] : memref<64x512xf32, #tpu.memory_space<vmem>>, vector<8x512xf32>
    %c0_21 = arith.constant 0 : index
    %c0_22 = arith.constant 0 : index
    %30 = vector.load %arg7[%c0_21, %c0_22] : memref<8x128xf32, #tpu.memory_space<vmem>>, vector<8x128xf32>
    %c0_23 = arith.constant 0 : index
    %c0_24 = arith.constant 0 : index
    %c0_25 = arith.constant 0 : index
    %31 = vector.load %arg3[%c0_23, %c0_24, %c0_25] : memref<1x128x512xf32, #tpu.memory_space<vmem>>, vector<1x128x512xf32>
    %32 = vector.shape_cast %31 : vector<1x128x512xf32> to vector<128x512xf32>
    %cst_26 = arith.constant dense<0.000000e+00> : vector<8x512xf32>
    %33 = tpu.matmul %30, %32, %cst_26 {dimension_numbers = #tpu.dot_dimension_numbers<[1], [0], [0], [1], [0, 0, 1, 1], [], []>} : vector<8x128xf32>, vector<128x512xf32>, vector<8x512xf32> -> vector<8x512xf32>
    %34 = arith.addf %29, %33 : vector<8x512xf32>
    %35 = vector.extract_strided_slice %34 {offsets = [0, 0], sizes = [8, 128], strides = [1, 1]} : vector<8x512xf32> to vector<8x128xf32>
    %36 = arith.negf %35 : vector<8x128xf32>
    %37 = math.exp %36 : vector<8x128xf32>
    %cst_27 = arith.constant 1.000000e+00 : f32
    %38 = vector.broadcast %cst_27 : f32 to vector<8x128xf32>
    %39 = arith.addf %38, %37 : vector<8x128xf32>
    %40 = arith.divf %38, %39 : vector<8x128xf32>
    %41 = vector.extract_strided_slice %34 {offsets = [0, 128], sizes = [8, 128], strides = [1, 1]} : vector<8x512xf32> to vector<8x128xf32>
    %42 = arith.negf %41 : vector<8x128xf32>
    %43 = math.exp %42 : vector<8x128xf32>
    %cst_28 = arith.constant 1.000000e+00 : f32
    %44 = vector.broadcast %cst_28 : f32 to vector<8x128xf32>
    %45 = arith.addf %44, %43 : vector<8x128xf32>
    %46 = arith.divf %44, %45 : vector<8x128xf32>
    %47 = vector.extract_strided_slice %34 {offsets = [0, 256], sizes = [8, 128], strides = [1, 1]} : vector<8x512xf32> to vector<8x128xf32>
    %48 = math.tanh %47 : vector<8x128xf32>
    %49 = vector.extract_strided_slice %34 {offsets = [0, 384], sizes = [8, 128], strides = [1, 1]} : vector<8x512xf32> to vector<8x128xf32>
    %50 = arith.negf %49 : vector<8x128xf32>
    %51 = math.exp %50 : vector<8x128xf32>
    %cst_29 = arith.constant 1.000000e+00 : f32
    %52 = vector.broadcast %cst_29 : f32 to vector<8x128xf32>
    %53 = arith.addf %52, %51 : vector<8x128xf32>
    %54 = arith.divf %52, %53 : vector<8x128xf32>
    %c0_30 = arith.constant 0 : index
    %c0_31 = arith.constant 0 : index
    %55 = vector.load %arg8[%c0_30, %c0_31] : memref<8x128xf32, #tpu.memory_space<vmem>>, vector<8x128xf32>
    %56 = arith.mulf %46, %55 : vector<8x128xf32>
    %57 = arith.mulf %40, %48 : vector<8x128xf32>
    %58 = arith.addf %56, %57 : vector<8x128xf32>
    %59 = math.tanh %58 : vector<8x128xf32>
    %60 = arith.mulf %54, %59 : vector<8x128xf32>
    %c0_32 = arith.constant 0 : index
    %c0_33 = arith.constant 0 : index
    %61 = vector.load %arg8[%c0_32, %c0_33] : memref<8x128xf32, #tpu.memory_space<vmem>>, vector<8x128xf32>
    tpu.vector_store %arg8[%c0_32, %c0_33], %58 {strides = array<i32>} : memref<8x128xf32, #tpu.memory_space<vmem>>, vector<8x128xf32>,
    %c0_34 = arith.constant 0 : index
    %c0_35 = arith.constant 0 : index
    %62 = vector.load %arg7[%c0_34, %c0_35] : memref<8x128xf32, #tpu.memory_space<vmem>>, vector<8x128xf32>
    tpu.vector_store %arg7[%c0_34, %c0_35], %60 {strides = array<i32>} : memref<8x128xf32, #tpu.memory_space<vmem>>, vector<8x128xf32>,
    %c0_36 = arith.constant 0 : index
    %63 = arith.index_cast %27 : i32 to index
    %c0_37 = arith.constant 0 : index
    %64 = vector.load %arg5[%c0_36, %63, %c0_37] : memref<1x64x128xf32, #tpu.memory_space<vmem>>, vector<1x8x128xf32>
    %65 = vector.shape_cast %64 : vector<1x8x128xf32> to vector<8x128xf32>
    %66 = vector.shape_cast %60 : vector<8x128xf32> to vector<1x8x128xf32>
    tpu.vector_store %arg5[%c0_36, %63, %c0_37], %66 {strides = array<i32>} : memref<1x64x128xf32, #tpu.memory_space<vmem>>, vector<1x8x128xf32>,
    %c1_i32_38 = arith.constant 1 : i32
    %c7_i32_39 = arith.constant 7 : i32
    %67 = arith.subi %c7_i32_39, %c1_i32_38 : i32
    %68 = arith.select %10, %67, %c1_i32_38 : i32
    %c8_i32_40 = arith.constant 8 : i32
    %69 = arith.muli %68, %c8_i32_40 : i32
    %70 = tpu.assume_multiple %69, 8 : i32
    %71 = arith.index_cast %70 : i32 to index
    %c0_41 = arith.constant 0 : index
    %72 = vector.load %arg6[%71, %c0_41] : memref<64x512xf32, #tpu.memory_space<vmem>>, vector<8x512xf32>
    %c0_42 = arith.constant 0 : index
    %c0_43 = arith.constant 0 : index
    %73 = vector.load %arg7[%c0_42, %c0_43] : memref<8x128xf32, #tpu.memory_space<vmem>>, vector<8x128xf32>
    %c0_44 = arith.constant 0 : index
    %c0_45 = arith.constant 0 : index
    %c0_46 = arith.constant 0 : index
    %74 = vector.load %arg3[%c0_44, %c0_45, %c0_46] : memref<1x128x512xf32, #tpu.memory_space<vmem>>, vector<1x128x512xf32>
    %75 = vector.shape_cast %74 : vector<1x128x512xf32> to vector<128x512xf32>
    %cst_47 = arith.constant dense<0.000000e+00> : vector<8x512xf32>
    %76 = tpu.matmul %73, %75, %cst_47 {dimension_numbers = #tpu.dot_dimension_numbers<[1], [0], [0], [1], [0, 0, 1, 1], [], []>} : vector<8x128xf32>, vector<128x512xf32>, vector<8x512xf32> -> vector<8x512xf32>
    %77 = arith.addf %72, %76 : vector<8x512xf32>
    %78 = vector.extract_strided_slice %77 {offsets = [0, 0], sizes = [8, 128], strides = [1, 1]} : vector<8x512xf32> to vector<8x128xf32>
    %79 = arith.negf %78 : vector<8x128xf32>
    %80 = math.exp %79 : vector<8x128xf32>
    %cst_48 = arith.constant 1.000000e+00 : f32
    %81 = vector.broadcast %cst_48 : f32 to vector<8x128xf32>
    %82 = arith.addf %81, %80 : vector<8x128xf32>
    %83 = arith.divf %81, %82 : vector<8x128xf32>
    %84 = vector.extract_strided_slice %77 {offsets = [0, 128], sizes = [8, 128], strides = [1, 1]} : vector<8x512xf32> to vector<8x128xf32>
    %85 = arith.negf %84 : vector<8x128xf32>
    %86 = math.exp %85 : vector<8x128xf32>
    %cst_49 = arith.constant 1.000000e+00 : f32
    %87 = vector.broadcast %cst_49 : f32 to vector<8x128xf32>
    %88 = arith.addf %87, %86 : vector<8x128xf32>
    %89 = arith.divf %87, %88 : vector<8x128xf32>
    %90 = vector.extract_strided_slice %77 {offsets = [0, 256], sizes = [8, 128], strides = [1, 1]} : vector<8x512xf32> to vector<8x128xf32>
    %91 = math.tanh %90 : vector<8x128xf32>
    %92 = vector.extract_strided_slice %77 {offsets = [0, 384], sizes = [8, 128], strides = [1, 1]} : vector<8x512xf32> to vector<8x128xf32>
    %93 = arith.negf %92 : vector<8x128xf32>
    %94 = math.exp %93 : vector<8x128xf32>
    %cst_50 = arith.constant 1.000000e+00 : f32
    %95 = vector.broadcast %cst_50 : f32 to vector<8x128xf32>
    %96 = arith.addf %95, %94 : vector<8x128xf32>
    %97 = arith.divf %95, %96 : vector<8x128xf32>
    %c0_51 = arith.constant 0 : index
    %c0_52 = arith.constant 0 : index
    %98 = vector.load %arg8[%c0_51, %c0_52] : memref<8x128xf32, #tpu.memory_space<vmem>>, vector<8x128xf32>
    %99 = arith.mulf %89, %98 : vector<8x128xf32>
    %100 = arith.mulf %83, %91 : vector<8x128xf32>
    %101 = arith.addf %99, %100 : vector<8x128xf32>
    %102 = math.tanh %101 : vector<8x128xf32>
    %103 = arith.mulf %97, %102 : vector<8x128xf32>
    %c0_53 = arith.constant 0 : index
    %c0_54 = arith.constant 0 : index
    %104 = vector.load %arg8[%c0_53, %c0_54] : memref<8x128xf32, #tpu.memory_space<vmem>>, vector<8x128xf32>
    tpu.vector_store %arg8[%c0_53, %c0_54], %101 {strides = array<i32>} : memref<8x128xf32, #tpu.memory_space<vmem>>, vector<8x128xf32>,
    %c0_55 = arith.constant 0 : index
    %c0_56 = arith.constant 0 : index
    %105 = vector.load %arg7[%c0_55, %c0_56] : memref<8x128xf32, #tpu.memory_space<vmem>>, vector<8x128xf32>
    tpu.vector_store %arg7[%c0_55, %c0_56], %103 {strides = array<i32>} : memref<8x128xf32, #tpu.memory_space<vmem>>, vector<8x128xf32>,
    %c0_57 = arith.constant 0 : index
    %106 = arith.index_cast %70 : i32 to index
    %c0_58 = arith.constant 0 : index
    %107 = vector.load %arg5[%c0_57, %106, %c0_58] : memref<1x64x128xf32, #tpu.memory_space<vmem>>, vector<1x8x128xf32>
    %108 = vector.shape_cast %107 : vector<1x8x128xf32> to vector<8x128xf32>
    %109 = vector.shape_cast %103 : vector<8x128xf32> to vector<1x8x128xf32>
    tpu.vector_store %arg5[%c0_57, %106, %c0_58], %109 {strides = array<i32>} : memref<1x64x128xf32, #tpu.memory_space<vmem>>, vector<1x8x128xf32>,
    %c2_i32_59 = arith.constant 2 : i32
    %c7_i32_60 = arith.constant 7 : i32
    %110 = arith.subi %c7_i32_60, %c2_i32_59 : i32
    %111 = arith.select %10, %110, %c2_i32_59 : i32
    %c8_i32_61 = arith.constant 8 : i32
    %112 = arith.muli %111, %c8_i32_61 : i32
    %113 = tpu.assume_multiple %112, 8 : i32
    %114 = arith.index_cast %113 : i32 to index
    %c0_62 = arith.constant 0 : index
    %115 = vector.load %arg6[%114, %c0_62] : memref<64x512xf32, #tpu.memory_space<vmem>>, vector<8x512xf32>
    %c0_63 = arith.constant 0 : index
    %c0_64 = arith.constant 0 : index
    %116 = vector.load %arg7[%c0_63, %c0_64] : memref<8x128xf32, #tpu.memory_space<vmem>>, vector<8x128xf32>
    %c0_65 = arith.constant 0 : index
    %c0_66 = arith.constant 0 : index
    %c0_67 = arith.constant 0 : index
    %117 = vector.load %arg3[%c0_65, %c0_66, %c0_67] : memref<1x128x512xf32, #tpu.memory_space<vmem>>, vector<1x128x512xf32>
    %118 = vector.shape_cast %117 : vector<1x128x512xf32> to vector<128x512xf32>
    %cst_68 = arith.constant dense<0.000000e+00> : vector<8x512xf32>
    %119 = tpu.matmul %116, %118, %cst_68 {dimension_numbers = #tpu.dot_dimension_numbers<[1], [0], [0], [1], [0, 0, 1, 1], [], []>} : vector<8x128xf32>, vector<128x512xf32>, vector<8x512xf32> -> vector<8x512xf32>
    %120 = arith.addf %115, %119 : vector<8x512xf32>
    %121 = vector.extract_strided_slice %120 {offsets = [0, 0], sizes = [8, 128], strides = [1, 1]} : vector<8x512xf32> to vector<8x128xf32>
    %122 = arith.negf %121 : vector<8x128xf32>
    %123 = math.exp %122 : vector<8x128xf32>
    %cst_69 = arith.constant 1.000000e+00 : f32
    %124 = vector.broadcast %cst_69 : f32 to vector<8x128xf32>
    %125 = arith.addf %124, %123 : vector<8x128xf32>
    %126 = arith.divf %124, %125 : vector<8x128xf32>
    %127 = vector.extract_strided_slice %120 {offsets = [0, 128], sizes = [8, 128], strides = [1, 1]} : vector<8x512xf32> to vector<8x128xf32>
    %128 = arith.negf %127 : vector<8x128xf32>
    %129 = math.exp %128 : vector<8x128xf32>
    %cst_70 = arith.constant 1.000000e+00 : f32
    %130 = vector.broadcast %cst_70 : f32 to vector<8x128xf32>
    %131 = arith.addf %130, %129 : vector<8x128xf32>
    %132 = arith.divf %130, %131 : vector<8x128xf32>
    %133 = vector.extract_strided_slice %120 {offsets = [0, 256], sizes = [8, 128], strides = [1, 1]} : vector<8x512xf32> to vector<8x128xf32>
    %134 = math.tanh %133 : vector<8x128xf32>
    %135 = vector.extract_strided_slice %120 {offsets = [0, 384], sizes = [8, 128], strides = [1, 1]} : vector<8x512xf32> to vector<8x128xf32>
    %136 = arith.negf %135 : vector<8x128xf32>
    %137 = math.exp %136 : vector<8x128xf32>
    %cst_71 = arith.constant 1.000000e+00 : f32
    %138 = vector.broadcast %cst_71 : f32 to vector<8x128xf32>
    %139 = arith.addf %138, %137 : vector<8x128xf32>
    %140 = arith.divf %138, %139 : vector<8x128xf32>
    %c0_72 = arith.constant 0 : index
    %c0_73 = arith.constant 0 : index
    %141 = vector.load %arg8[%c0_72, %c0_73] : memref<8x128xf32, #tpu.memory_space<vmem>>, vector<8x128xf32>
    %142 = arith.mulf %132, %141 : vector<8x128xf32>
    %143 = arith.mulf %126, %134 : vector<8x128xf32>
    %144 = arith.addf %142, %143 : vector<8x128xf32>
    %145 = math.tanh %144 : vector<8x128xf32>
    %146 = arith.mulf %140, %145 : vector<8x128xf32>
    %c0_74 = arith.constant 0 : index
    %c0_75 = arith.constant 0 : index
    %147 = vector.load %arg8[%c0_74, %c0_75] : memref<8x128xf32, #tpu.memory_space<vmem>>, vector<8x128xf32>
    tpu.vector_store %arg8[%c0_74, %c0_75], %144 {strides = array<i32>} : memref<8x128xf32, #tpu.memory_space<vmem>>, vector<8x128xf32>,
    %c0_76 = arith.constant 0 : index
    %c0_77 = arith.constant 0 : index
    %148 = vector.load %arg7[%c0_76, %c0_77] : memref<8x128xf32, #tpu.memory_space<vmem>>, vector<8x128xf32>
    tpu.vector_store %arg7[%c0_76, %c0_77], %146 {strides = array<i32>} : memref<8x128xf32, #tpu.memory_space<vmem>>, vector<8x128xf32>,
    %c0_78 = arith.constant 0 : index
    %149 = arith.index_cast %113 : i32 to index
    %c0_79 = arith.constant 0 : index
    %150 = vector.load %arg5[%c0_78, %149, %c0_79] : memref<1x64x128xf32, #tpu.memory_space<vmem>>, vector<1x8x128xf32>
    %151 = vector.shape_cast %150 : vector<1x8x128xf32> to vector<8x128xf32>
    %152 = vector.shape_cast %146 : vector<8x128xf32> to vector<1x8x128xf32>
    tpu.vector_store %arg5[%c0_78, %149, %c0_79], %152 {strides = array<i32>} : memref<1x64x128xf32, #tpu.memory_space<vmem>>, vector<1x8x128xf32>,
    %c3_i32 = arith.constant 3 : i32
    %c7_i32_80 = arith.constant 7 : i32
    %153 = arith.subi %c7_i32_80, %c3_i32 : i32
    %154 = arith.select %10, %153, %c3_i32 : i32
    %c8_i32_81 = arith.constant 8 : i32
    %155 = arith.muli %154, %c8_i32_81 : i32
    %156 = tpu.assume_multiple %155, 8 : i32
    %157 = arith.index_cast %156 : i32 to index
    %c0_82 = arith.constant 0 : index
    %158 = vector.load %arg6[%157, %c0_82] : memref<64x512xf32, #tpu.memory_space<vmem>>, vector<8x512xf32>
    %c0_83 = arith.constant 0 : index
    %c0_84 = arith.constant 0 : index
    %159 = vector.load %arg7[%c0_83, %c0_84] : memref<8x128xf32, #tpu.memory_space<vmem>>, vector<8x128xf32>
    %c0_85 = arith.constant 0 : index
    %c0_86 = arith.constant 0 : index
    %c0_87 = arith.constant 0 : index
    %160 = vector.load %arg3[%c0_85, %c0_86, %c0_87] : memref<1x128x512xf32, #tpu.memory_space<vmem>>, vector<1x128x512xf32>
    %161 = vector.shape_cast %160 : vector<1x128x512xf32> to vector<128x512xf32>
    %cst_88 = arith.constant dense<0.000000e+00> : vector<8x512xf32>
    %162 = tpu.matmul %159, %161, %cst_88 {dimension_numbers = #tpu.dot_dimension_numbers<[1], [0], [0], [1], [0, 0, 1, 1], [], []>} : vector<8x128xf32>, vector<128x512xf32>, vector<8x512xf32> -> vector<8x512xf32>
    %163 = arith.addf %158, %162 : vector<8x512xf32>
    %164 = vector.extract_strided_slice %163 {offsets = [0, 0], sizes = [8, 128], strides = [1, 1]} : vector<8x512xf32> to vector<8x128xf32>
    %165 = arith.negf %164 : vector<8x128xf32>
    %166 = math.exp %165 : vector<8x128xf32>
    %cst_89 = arith.constant 1.000000e+00 : f32
    %167 = vector.broadcast %cst_89 : f32 to vector<8x128xf32>
    %168 = arith.addf %167, %166 : vector<8x128xf32>
    %169 = arith.divf %167, %168 : vector<8x128xf32>
    %170 = vector.extract_strided_slice %163 {offsets = [0, 128], sizes = [8, 128], strides = [1, 1]} : vector<8x512xf32> to vector<8x128xf32>
    %171 = arith.negf %170 : vector<8x128xf32>
    %172 = math.exp %171 : vector<8x128xf32>
    %cst_90 = arith.constant 1.000000e+00 : f32
    %173 = vector.broadcast %cst_90 : f32 to vector<8x128xf32>
    %174 = arith.addf %173, %172 : vector<8x128xf32>
    %175 = arith.divf %173, %174 : vector<8x128xf32>
    %176 = vector.extract_strided_slice %163 {offsets = [0, 256], sizes = [8, 128], strides = [1, 1]} : vector<8x512xf32> to vector<8x128xf32>
    %177 = math.tanh %176 : vector<8x128xf32>
    %178 = vector.extract_strided_slice %163 {offsets = [0, 384], sizes = [8, 128], strides = [1, 1]} : vector<8x512xf32> to vector<8x128xf32>
    %179 = arith.negf %178 : vector<8x128xf32>
    %180 = math.exp %179 : vector<8x128xf32>
    %cst_91 = arith.constant 1.000000e+00 : f32
    %181 = vector.broadcast %cst_91 : f32 to vector<8x128xf32>
    %182 = arith.addf %181, %180 : vector<8x128xf32>
    %183 = arith.divf %181, %182 : vector<8x128xf32>
    %c0_92 = arith.constant 0 : index
    %c0_93 = arith.constant 0 : index
    %184 = vector.load %arg8[%c0_92, %c0_93] : memref<8x128xf32, #tpu.memory_space<vmem>>, vector<8x128xf32>
    %185 = arith.mulf %175, %184 : vector<8x128xf32>
    %186 = arith.mulf %169, %177 : vector<8x128xf32>
    %187 = arith.addf %185, %186 : vector<8x128xf32>
    %188 = math.tanh %187 : vector<8x128xf32>
    %189 = arith.mulf %183, %188 : vector<8x128xf32>
    %c0_94 = arith.constant 0 : index
    %c0_95 = arith.constant 0 : index
    %190 = vector.load %arg8[%c0_94, %c0_95] : memref<8x128xf32, #tpu.memory_space<vmem>>, vector<8x128xf32>
    tpu.vector_store %arg8[%c0_94, %c0_95], %187 {strides = array<i32>} : memref<8x128xf32, #tpu.memory_space<vmem>>, vector<8x128xf32>,
    %c0_96 = arith.constant 0 : index
    %c0_97 = arith.constant 0 : index
    %191 = vector.load %arg7[%c0_96, %c0_97] : memref<8x128xf32, #tpu.memory_space<vmem>>, vector<8x128xf32>
    tpu.vector_store %arg7[%c0_96, %c0_97], %189 {strides = array<i32>} : memref<8x128xf32, #tpu.memory_space<vmem>>, vector<8x128xf32>,
    %c0_98 = arith.constant 0 : index
    %192 = arith.index_cast %156 : i32 to index
    %c0_99 = arith.constant 0 : index
    %193 = vector.load %arg5[%c0_98, %192, %c0_99] : memref<1x64x128xf32, #tpu.memory_space<vmem>>, vector<1x8x128xf32>
    %194 = vector.shape_cast %193 : vector<1x8x128xf32> to vector<8x128xf32>
    %195 = vector.shape_cast %189 : vector<8x128xf32> to vector<1x8x128xf32>
    tpu.vector_store %arg5[%c0_98, %192, %c0_99], %195 {strides = array<i32>} : memref<1x64x128xf32, #tpu.memory_space<vmem>>, vector<1x8x128xf32>,
    %c4_i32 = arith.constant 4 : i32
    %c7_i32_100 = arith.constant 7 : i32
    %196 = arith.subi %c7_i32_100, %c4_i32 : i32
    %197 = arith.select %10, %196, %c4_i32 : i32
    %c8_i32_101 = arith.constant 8 : i32
    %198 = arith.muli %197, %c8_i32_101 : i32
    %199 = tpu.assume_multiple %198, 8 : i32
    %200 = arith.index_cast %199 : i32 to index
    %c0_102 = arith.constant 0 : index
    %201 = vector.load %arg6[%200, %c0_102] : memref<64x512xf32, #tpu.memory_space<vmem>>, vector<8x512xf32>
    %c0_103 = arith.constant 0 : index
    %c0_104 = arith.constant 0 : index
    %202 = vector.load %arg7[%c0_103, %c0_104] : memref<8x128xf32, #tpu.memory_space<vmem>>, vector<8x128xf32>
    %c0_105 = arith.constant 0 : index
    %c0_106 = arith.constant 0 : index
    %c0_107 = arith.constant 0 : index
    %203 = vector.load %arg3[%c0_105, %c0_106, %c0_107] : memref<1x128x512xf32, #tpu.memory_space<vmem>>, vector<1x128x512xf32>
    %204 = vector.shape_cast %203 : vector<1x128x512xf32> to vector<128x512xf32>
    %cst_108 = arith.constant dense<0.000000e+00> : vector<8x512xf32>
    %205 = tpu.matmul %202, %204, %cst_108 {dimension_numbers = #tpu.dot_dimension_numbers<[1], [0], [0], [1], [0, 0, 1, 1], [], []>} : vector<8x128xf32>, vector<128x512xf32>, vector<8x512xf32> -> vector<8x512xf32>
    %206 = arith.addf %201, %205 : vector<8x512xf32>
    %207 = vector.extract_strided_slice %206 {offsets = [0, 0], sizes = [8, 128], strides = [1, 1]} : vector<8x512xf32> to vector<8x128xf32>
    %208 = arith.negf %207 : vector<8x128xf32>
    %209 = math.exp %208 : vector<8x128xf32>
    %cst_109 = arith.constant 1.000000e+00 : f32
    %210 = vector.broadcast %cst_109 : f32 to vector<8x128xf32>
    %211 = arith.addf %210, %209 : vector<8x128xf32>
    %212 = arith.divf %210, %211 : vector<8x128xf32>
    %213 = vector.extract_strided_slice %206 {offsets = [0, 128], sizes = [8, 128], strides = [1, 1]} : vector<8x512xf32> to vector<8x128xf32>
    %214 = arith.negf %213 : vector<8x128xf32>
    %215 = math.exp %214 : vector<8x128xf32>
    %cst_110 = arith.constant 1.000000e+00 : f32
    %216 = vector.broadcast %cst_110 : f32 to vector<8x128xf32>
    %217 = arith.addf %216, %215 : vector<8x128xf32>
    %218 = arith.divf %216, %217 : vector<8x128xf32>
    %219 = vector.extract_strided_slice %206 {offsets = [0, 256], sizes = [8, 128], strides = [1, 1]} : vector<8x512xf32> to vector<8x128xf32>
    %220 = math.tanh %219 : vector<8x128xf32>
    %221 = vector.extract_strided_slice %206 {offsets = [0, 384], sizes = [8, 128], strides = [1, 1]} : vector<8x512xf32> to vector<8x128xf32>
    %222 = arith.negf %221 : vector<8x128xf32>
    %223 = math.exp %222 : vector<8x128xf32>
    %cst_111 = arith.constant 1.000000e+00 : f32
    %224 = vector.broadcast %cst_111 : f32 to vector<8x128xf32>
    %225 = arith.addf %224, %223 : vector<8x128xf32>
    %226 = arith.divf %224, %225 : vector<8x128xf32>
    %c0_112 = arith.constant 0 : index
    %c0_113 = arith.constant 0 : index
    %227 = vector.load %arg8[%c0_112, %c0_113] : memref<8x128xf32, #tpu.memory_space<vmem>>, vector<8x128xf32>
    %228 = arith.mulf %218, %227 : vector<8x128xf32>
    %229 = arith.mulf %212, %220 : vector<8x128xf32>
    %230 = arith.addf %228, %229 : vector<8x128xf32>
    %231 = math.tanh %230 : vector<8x128xf32>
    %232 = arith.mulf %226, %231 : vector<8x128xf32>
    %c0_114 = arith.constant 0 : index
    %c0_115 = arith.constant 0 : index
    %233 = vector.load %arg8[%c0_114, %c0_115] : memref<8x128xf32, #tpu.memory_space<vmem>>, vector<8x128xf32>
    tpu.vector_store %arg8[%c0_114, %c0_115], %230 {strides = array<i32>} : memref<8x128xf32, #tpu.memory_space<vmem>>, vector<8x128xf32>,
    %c0_116 = arith.constant 0 : index
    %c0_117 = arith.constant 0 : index
    %234 = vector.load %arg7[%c0_116, %c0_117] : memref<8x128xf32, #tpu.memory_space<vmem>>, vector<8x128xf32>
    tpu.vector_store %arg7[%c0_116, %c0_117], %232 {strides = array<i32>} : memref<8x128xf32, #tpu.memory_space<vmem>>, vector<8x128xf32>,
    %c0_118 = arith.constant 0 : index
    %235 = arith.index_cast %199 : i32 to index
    %c0_119 = arith.constant 0 : index
    %236 = vector.load %arg5[%c0_118, %235, %c0_119] : memref<1x64x128xf32, #tpu.memory_space<vmem>>, vector<1x8x128xf32>
    %237 = vector.shape_cast %236 : vector<1x8x128xf32> to vector<8x128xf32>
    %238 = vector.shape_cast %232 : vector<8x128xf32> to vector<1x8x128xf32>
    tpu.vector_store %arg5[%c0_118, %235, %c0_119], %238 {strides = array<i32>} : memref<1x64x128xf32, #tpu.memory_space<vmem>>, vector<1x8x128xf32>,
    %c5_i32 = arith.constant 5 : i32
    %c7_i32_120 = arith.constant 7 : i32
    %239 = arith.subi %c7_i32_120, %c5_i32 : i32
    %240 = arith.select %10, %239, %c5_i32 : i32
    %c8_i32_121 = arith.constant 8 : i32
    %241 = arith.muli %240, %c8_i32_121 : i32
    %242 = tpu.assume_multiple %241, 8 : i32
    %243 = arith.index_cast %242 : i32 to index
    %c0_122 = arith.constant 0 : index
    %244 = vector.load %arg6[%243, %c0_122] : memref<64x512xf32, #tpu.memory_space<vmem>>, vector<8x512xf32>
    %c0_123 = arith.constant 0 : index
    %c0_124 = arith.constant 0 : index
    %245 = vector.load %arg7[%c0_123, %c0_124] : memref<8x128xf32, #tpu.memory_space<vmem>>, vector<8x128xf32>
    %c0_125 = arith.constant 0 : index
    %c0_126 = arith.constant 0 : index
    %c0_127 = arith.constant 0 : index
    %246 = vector.load %arg3[%c0_125, %c0_126, %c0_127] : memref<1x128x512xf32, #tpu.memory_space<vmem>>, vector<1x128x512xf32>
    %247 = vector.shape_cast %246 : vector<1x128x512xf32> to vector<128x512xf32>
    %cst_128 = arith.constant dense<0.000000e+00> : vector<8x512xf32>
    %248 = tpu.matmul %245, %247, %cst_128 {dimension_numbers = #tpu.dot_dimension_numbers<[1], [0], [0], [1], [0, 0, 1, 1], [], []>} : vector<8x128xf32>, vector<128x512xf32>, vector<8x512xf32> -> vector<8x512xf32>
    %249 = arith.addf %244, %248 : vector<8x512xf32>
    %250 = vector.extract_strided_slice %249 {offsets = [0, 0], sizes = [8, 128], strides = [1, 1]} : vector<8x512xf32> to vector<8x128xf32>
    %251 = arith.negf %250 : vector<8x128xf32>
    %252 = math.exp %251 : vector<8x128xf32>
    %cst_129 = arith.constant 1.000000e+00 : f32
    %253 = vector.broadcast %cst_129 : f32 to vector<8x128xf32>
    %254 = arith.addf %253, %252 : vector<8x128xf32>
    %255 = arith.divf %253, %254 : vector<8x128xf32>
    %256 = vector.extract_strided_slice %249 {offsets = [0, 128], sizes = [8, 128], strides = [1, 1]} : vector<8x512xf32> to vector<8x128xf32>
    %257 = arith.negf %256 : vector<8x128xf32>
    %258 = math.exp %257 : vector<8x128xf32>
    %cst_130 = arith.constant 1.000000e+00 : f32
    %259 = vector.broadcast %cst_130 : f32 to vector<8x128xf32>
    %260 = arith.addf %259, %258 : vector<8x128xf32>
    %261 = arith.divf %259, %260 : vector<8x128xf32>
    %262 = vector.extract_strided_slice %249 {offsets = [0, 256], sizes = [8, 128], strides = [1, 1]} : vector<8x512xf32> to vector<8x128xf32>
    %263 = math.tanh %262 : vector<8x128xf32>
    %264 = vector.extract_strided_slice %249 {offsets = [0, 384], sizes = [8, 128], strides = [1, 1]} : vector<8x512xf32> to vector<8x128xf32>
    %265 = arith.negf %264 : vector<8x128xf32>
    %266 = math.exp %265 : vector<8x128xf32>
    %cst_131 = arith.constant 1.000000e+00 : f32
    %267 = vector.broadcast %cst_131 : f32 to vector<8x128xf32>
    %268 = arith.addf %267, %266 : vector<8x128xf32>
    %269 = arith.divf %267, %268 : vector<8x128xf32>
    %c0_132 = arith.constant 0 : index
    %c0_133 = arith.constant 0 : index
    %270 = vector.load %arg8[%c0_132, %c0_133] : memref<8x128xf32, #tpu.memory_space<vmem>>, vector<8x128xf32>
    %271 = arith.mulf %261, %270 : vector<8x128xf32>
    %272 = arith.mulf %255, %263 : vector<8x128xf32>
    %273 = arith.addf %271, %272 : vector<8x128xf32>
    %274 = math.tanh %273 : vector<8x128xf32>
    %275 = arith.mulf %269, %274 : vector<8x128xf32>
    %c0_134 = arith.constant 0 : index
    %c0_135 = arith.constant 0 : index
    %276 = vector.load %arg8[%c0_134, %c0_135] : memref<8x128xf32, #tpu.memory_space<vmem>>, vector<8x128xf32>
    tpu.vector_store %arg8[%c0_134, %c0_135], %273 {strides = array<i32>} : memref<8x128xf32, #tpu.memory_space<vmem>>, vector<8x128xf32>,
    %c0_136 = arith.constant 0 : index
    %c0_137 = arith.constant 0 : index
    %277 = vector.load %arg7[%c0_136, %c0_137] : memref<8x128xf32, #tpu.memory_space<vmem>>, vector<8x128xf32>
    tpu.vector_store %arg7[%c0_136, %c0_137], %275 {strides = array<i32>} : memref<8x128xf32, #tpu.memory_space<vmem>>, vector<8x128xf32>,
    %c0_138 = arith.constant 0 : index
    %278 = arith.index_cast %242 : i32 to index
    %c0_139 = arith.constant 0 : index
    %279 = vector.load %arg5[%c0_138, %278, %c0_139] : memref<1x64x128xf32, #tpu.memory_space<vmem>>, vector<1x8x128xf32>
    %280 = vector.shape_cast %279 : vector<1x8x128xf32> to vector<8x128xf32>
    %281 = vector.shape_cast %275 : vector<8x128xf32> to vector<1x8x128xf32>
    tpu.vector_store %arg5[%c0_138, %278, %c0_139], %281 {strides = array<i32>} : memref<1x64x128xf32, #tpu.memory_space<vmem>>, vector<1x8x128xf32>,
    %c6_i32 = arith.constant 6 : i32
    %c7_i32_140 = arith.constant 7 : i32
    %282 = arith.subi %c7_i32_140, %c6_i32 : i32
    %283 = arith.select %10, %282, %c6_i32 : i32
    %c8_i32_141 = arith.constant 8 : i32
    %284 = arith.muli %283, %c8_i32_141 : i32
    %285 = tpu.assume_multiple %284, 8 : i32
    %286 = arith.index_cast %285 : i32 to index
    %c0_142 = arith.constant 0 : index
    %287 = vector.load %arg6[%286, %c0_142] : memref<64x512xf32, #tpu.memory_space<vmem>>, vector<8x512xf32>
    %c0_143 = arith.constant 0 : index
    %c0_144 = arith.constant 0 : index
    %288 = vector.load %arg7[%c0_143, %c0_144] : memref<8x128xf32, #tpu.memory_space<vmem>>, vector<8x128xf32>
    %c0_145 = arith.constant 0 : index
    %c0_146 = arith.constant 0 : index
    %c0_147 = arith.constant 0 : index
    %289 = vector.load %arg3[%c0_145, %c0_146, %c0_147] : memref<1x128x512xf32, #tpu.memory_space<vmem>>, vector<1x128x512xf32>
    %290 = vector.shape_cast %289 : vector<1x128x512xf32> to vector<128x512xf32>
    %cst_148 = arith.constant dense<0.000000e+00> : vector<8x512xf32>
    %291 = tpu.matmul %288, %290, %cst_148 {dimension_numbers = #tpu.dot_dimension_numbers<[1], [0], [0], [1], [0, 0, 1, 1], [], []>} : vector<8x128xf32>, vector<128x512xf32>, vector<8x512xf32> -> vector<8x512xf32>
    %292 = arith.addf %287, %291 : vector<8x512xf32>
    %293 = vector.extract_strided_slice %292 {offsets = [0, 0], sizes = [8, 128], strides = [1, 1]} : vector<8x512xf32> to vector<8x128xf32>
    %294 = arith.negf %293 : vector<8x128xf32>
    %295 = math.exp %294 : vector<8x128xf32>
    %cst_149 = arith.constant 1.000000e+00 : f32
    %296 = vector.broadcast %cst_149 : f32 to vector<8x128xf32>
    %297 = arith.addf %296, %295 : vector<8x128xf32>
    %298 = arith.divf %296, %297 : vector<8x128xf32>
    %299 = vector.extract_strided_slice %292 {offsets = [0, 128], sizes = [8, 128], strides = [1, 1]} : vector<8x512xf32> to vector<8x128xf32>
    %300 = arith.negf %299 : vector<8x128xf32>
    %301 = math.exp %300 : vector<8x128xf32>
    %cst_150 = arith.constant 1.000000e+00 : f32
    %302 = vector.broadcast %cst_150 : f32 to vector<8x128xf32>
    %303 = arith.addf %302, %301 : vector<8x128xf32>
    %304 = arith.divf %302, %303 : vector<8x128xf32>
    %305 = vector.extract_strided_slice %292 {offsets = [0, 256], sizes = [8, 128], strides = [1, 1]} : vector<8x512xf32> to vector<8x128xf32>
    %306 = math.tanh %305 : vector<8x128xf32>
    %307 = vector.extract_strided_slice %292 {offsets = [0, 384], sizes = [8, 128], strides = [1, 1]} : vector<8x512xf32> to vector<8x128xf32>
    %308 = arith.negf %307 : vector<8x128xf32>
    %309 = math.exp %308 : vector<8x128xf32>
    %cst_151 = arith.constant 1.000000e+00 : f32
    %310 = vector.broadcast %cst_151 : f32 to vector<8x128xf32>
    %311 = arith.addf %310, %309 : vector<8x128xf32>
    %312 = arith.divf %310, %311 : vector<8x128xf32>
    %c0_152 = arith.constant 0 : index
    %c0_153 = arith.constant 0 : index
    %313 = vector.load %arg8[%c0_152, %c0_153] : memref<8x128xf32, #tpu.memory_space<vmem>>, vector<8x128xf32>
    %314 = arith.mulf %304, %313 : vector<8x128xf32>
    %315 = arith.mulf %298, %306 : vector<8x128xf32>
    %316 = arith.addf %314, %315 : vector<8x128xf32>
    %317 = math.tanh %316 : vector<8x128xf32>
    %318 = arith.mulf %312, %317 : vector<8x128xf32>
    %c0_154 = arith.constant 0 : index
    %c0_155 = arith.constant 0 : index
    %319 = vector.load %arg8[%c0_154, %c0_155] : memref<8x128xf32, #tpu.memory_space<vmem>>, vector<8x128xf32>
    tpu.vector_store %arg8[%c0_154, %c0_155], %316 {strides = array<i32>} : memref<8x128xf32, #tpu.memory_space<vmem>>, vector<8x128xf32>,
    %c0_156 = arith.constant 0 : index
    %c0_157 = arith.constant 0 : index
    %320 = vector.load %arg7[%c0_156, %c0_157] : memref<8x128xf32, #tpu.memory_space<vmem>>, vector<8x128xf32>
    tpu.vector_store %arg7[%c0_156, %c0_157], %318 {strides = array<i32>} : memref<8x128xf32, #tpu.memory_space<vmem>>, vector<8x128xf32>,
    %c0_158 = arith.constant 0 : index
    %321 = arith.index_cast %285 : i32 to index
    %c0_159 = arith.constant 0 : index
    %322 = vector.load %arg5[%c0_158, %321, %c0_159] : memref<1x64x128xf32, #tpu.memory_space<vmem>>, vector<1x8x128xf32>
    %323 = vector.shape_cast %322 : vector<1x8x128xf32> to vector<8x128xf32>
    %324 = vector.shape_cast %318 : vector<8x128xf32> to vector<1x8x128xf32>
    tpu.vector_store %arg5[%c0_158, %321, %c0_159], %324 {strides = array<i32>} : memref<1x64x128xf32, #tpu.memory_space<vmem>>, vector<1x8x128xf32>,
    %c7_i32_160 = arith.constant 7 : i32
    %c7_i32_161 = arith.constant 7 : i32
    %325 = arith.subi %c7_i32_161, %c7_i32_160 : i32
    %326 = arith.select %10, %325, %c7_i32_160 : i32
    %c8_i32_162 = arith.constant 8 : i32
    %327 = arith.muli %326, %c8_i32_162 : i32
    %328 = tpu.assume_multiple %327, 8 : i32
    %329 = arith.index_cast %328 : i32 to index
    %c0_163 = arith.constant 0 : index
    %330 = vector.load %arg6[%329, %c0_163] : memref<64x512xf32, #tpu.memory_space<vmem>>, vector<8x512xf32>
    %c0_164 = arith.constant 0 : index
    %c0_165 = arith.constant 0 : index
    %331 = vector.load %arg7[%c0_164, %c0_165] : memref<8x128xf32, #tpu.memory_space<vmem>>, vector<8x128xf32>
    %c0_166 = arith.constant 0 : index
    %c0_167 = arith.constant 0 : index
    %c0_168 = arith.constant 0 : index
    %332 = vector.load %arg3[%c0_166, %c0_167, %c0_168] : memref<1x128x512xf32, #tpu.memory_space<vmem>>, vector<1x128x512xf32>
    %333 = vector.shape_cast %332 : vector<1x128x512xf32> to vector<128x512xf32>
    %cst_169 = arith.constant dense<0.000000e+00> : vector<8x512xf32>
    %334 = tpu.matmul %331, %333, %cst_169 {dimension_numbers = #tpu.dot_dimension_numbers<[1], [0], [0], [1], [0, 0, 1, 1], [], []>} : vector<8x128xf32>, vector<128x512xf32>, vector<8x512xf32> -> vector<8x512xf32>
    %335 = arith.addf %330, %334 : vector<8x512xf32>
    %336 = vector.extract_strided_slice %335 {offsets = [0, 0], sizes = [8, 128], strides = [1, 1]} : vector<8x512xf32> to vector<8x128xf32>
    %337 = arith.negf %336 : vector<8x128xf32>
    %338 = math.exp %337 : vector<8x128xf32>
    %cst_170 = arith.constant 1.000000e+00 : f32
    %339 = vector.broadcast %cst_170 : f32 to vector<8x128xf32>
    %340 = arith.addf %339, %338 : vector<8x128xf32>
    %341 = arith.divf %339, %340 : vector<8x128xf32>
    %342 = vector.extract_strided_slice %335 {offsets = [0, 128], sizes = [8, 128], strides = [1, 1]} : vector<8x512xf32> to vector<8x128xf32>
    %343 = arith.negf %342 : vector<8x128xf32>
    %344 = math.exp %343 : vector<8x128xf32>
    %cst_171 = arith.constant 1.000000e+00 : f32
    %345 = vector.broadcast %cst_171 : f32 to vector<8x128xf32>
    %346 = arith.addf %345, %344 : vector<8x128xf32>
    %347 = arith.divf %345, %346 : vector<8x128xf32>
    %348 = vector.extract_strided_slice %335 {offsets = [0, 256], sizes = [8, 128], strides = [1, 1]} : vector<8x512xf32> to vector<8x128xf32>
    %349 = math.tanh %348 : vector<8x128xf32>
    %350 = vector.extract_strided_slice %335 {offsets = [0, 384], sizes = [8, 128], strides = [1, 1]} : vector<8x512xf32> to vector<8x128xf32>
    %351 = arith.negf %350 : vector<8x128xf32>
    %352 = math.exp %351 : vector<8x128xf32>
    %cst_172 = arith.constant 1.000000e+00 : f32
    %353 = vector.broadcast %cst_172 : f32 to vector<8x128xf32>
    %354 = arith.addf %353, %352 : vector<8x128xf32>
    %355 = arith.divf %353, %354 : vector<8x128xf32>
    %c0_173 = arith.constant 0 : index
    %c0_174 = arith.constant 0 : index
    %356 = vector.load %arg8[%c0_173, %c0_174] : memref<8x128xf32, #tpu.memory_space<vmem>>, vector<8x128xf32>
    %357 = arith.mulf %347, %356 : vector<8x128xf32>
    %358 = arith.mulf %341, %349 : vector<8x128xf32>
    %359 = arith.addf %357, %358 : vector<8x128xf32>
    %360 = math.tanh %359 : vector<8x128xf32>
    %361 = arith.mulf %355, %360 : vector<8x128xf32>
    %c0_175 = arith.constant 0 : index
    %c0_176 = arith.constant 0 : index
    %362 = vector.load %arg8[%c0_175, %c0_176] : memref<8x128xf32, #tpu.memory_space<vmem>>, vector<8x128xf32>
    tpu.vector_store %arg8[%c0_175, %c0_176], %359 {strides = array<i32>} : memref<8x128xf32, #tpu.memory_space<vmem>>, vector<8x128xf32>,
    %c0_177 = arith.constant 0 : index
    %c0_178 = arith.constant 0 : index
    %363 = vector.load %arg7[%c0_177, %c0_178] : memref<8x128xf32, #tpu.memory_space<vmem>>, vector<8x128xf32>
    tpu.vector_store %arg7[%c0_177, %c0_178], %361 {strides = array<i32>} : memref<8x128xf32, #tpu.memory_space<vmem>>, vector<8x128xf32>,
    %c0_179 = arith.constant 0 : index
    %364 = arith.index_cast %328 : i32 to index
    %c0_180 = arith.constant 0 : index
    %365 = vector.load %arg5[%c0_179, %364, %c0_180] : memref<1x64x128xf32, #tpu.memory_space<vmem>>, vector<1x8x128xf32>
    %366 = vector.shape_cast %365 : vector<1x8x128xf32> to vector<8x128xf32>
    %367 = vector.shape_cast %361 : vector<8x128xf32> to vector<1x8x128xf32>
    tpu.vector_store %arg5[%c0_179, %364, %c0_180], %367 {strides = array<i32>} : memref<1x64x128xf32, #tpu.memory_space<vmem>>, vector<1x8x128xf32>,
    %c8_i32_181 = arith.constant 8 : i32
    return
  }
  func.func @transform_0(%arg0: i32) -> (i32, i32) {
    %c0_i32 = arith.constant 0 : i32
    %c0_i32_0 = arith.constant 0 : i32
    %c0_i32_1 = arith.constant 0 : i32
    return %c0_i32, %c0_i32_0 : i32, i32
  }
  func.func @transform_1(%arg0: i32) -> (i32, i32, i32) {
    %c0_i32 = arith.constant 0 : i32
    %c0_i32_0 = arith.constant 0 : i32
    %c0_i32_1 = arith.constant 0 : i32
    return %arg0, %c0_i32, %c0_i32_0 : i32, i32, i32
  }
  func.func @transform_2(%arg0: i32) -> (i32, i32, i32) {
    %c0_i32 = arith.constant 0 : i32
    %c0_i32_0 = arith.constant 0 : i32
    %c0_i32_1 = arith.constant 0 : i32
    return %arg0, %c0_i32, %c0_i32_0 : i32, i32, i32
  }
  func.func @transform_3(%arg0: i32) -> (i32, i32, i32) {
    %c0_i32 = arith.constant 0 : i32
    %c0_i32_0 = arith.constant 0 : i32
    %c0_i32_1 = arith.constant 0 : i32
    return %arg0, %c0_i32, %c0_i32_0 : i32, i32, i32
  }
  func.func @transform_4(%arg0: i32) -> (i32, i32, i32) {
    %c0_i32 = arith.constant 0 : i32
    %c0_i32_0 = arith.constant 0 : i32
    %c0_i32_1 = arith.constant 0 : i32
    return %arg0, %c0_i32, %c0_i32_0 : i32, i32, i32
  }
}

</mosaic_0001>

<bundles_post_ra>
// kernel: async_model_forward.3
= control target key start
LH: loop header
LB: loop body
LE: loop exit
PB: predicated region body
PF: predicated region fallthrough
CT: control target
= control target key end

     0   :  { %v1553_v38 = vmov 0.0   ;;  %vm1554_vm0 = vmmov 0   ;;  %s2175_s3 = inlined_call_operand.vmem [shape: f32[4,128,128], index: 3, kind: input, shape index: {}]   ;;  %s2176_s0 = inlined_call_operand.vmem [shape: f32[4,64,128], index: 0, kind: input, shape index: {}]   ;;  %s2177_s1 = inlined_call_operand.vmem [shape: f32[4,128,128], index: 1, kind: input, shape index: {}]   ;;  %s2178_s4 = inlined_call_operand.vmem [shape: f32[1,128], index: 4, kind: input, shape index: {}]   ;;  %s2179_s2 = inlined_call_operand.vmem [shape: f32[1,128], index: 2, kind: input, shape index: {}]   ;;  %s2180_s6 = inlined_call_operand.vmem [shape: f32[64,128], index: 6, kind: output, shape index: {1}]   ;;  %s2181_s5 = inlined_call_operand.vmem [shape: f32[8,128], index: 5, kind: output, shape index: {0}]  }
   0x1   :  { %v972_v0 = vld [vmem:[%s2175_s3 + $0xf8] sm:$0xff]  ;;  %v971_v2 = vld [vmem:[%s2175_s3 + $0xf0] sm:$0xff]  ;;  %v970_v4 = vld [vmem:[%s2175_s3 + $0xe8] sm:$0xff] }
   0x2   :  { %v45_v1 = vld [vmem:[%s2175_s3 + $0x78] sm:$0xff]  ;;  %1235 = vmatprep.subr.mxu0 %v972_v0  ;;  %v44_v3 = vld [vmem:[%s2175_s3 + $0x70] sm:$0xff]  ;;  %v43_v5 = vld [vmem:[%s2175_s3 + $0x68] sm:$0xff] }
   0x3   :  { %1279 = vmatprep.subr.mxu1 %v45_v1  ;;  %1236 = vmatpush3.msra.mxu0 %v972_v0  ;;  %v969_v6 = vld [vmem:[%s2175_s3 + $0xe0] sm:$0xff]  ;;  %v968_v8 = vld [vmem:[%s2175_s3 + $0xd8] sm:$0xff]  ;;  %v967_v10 = vld [vmem:[%s2175_s3 + $0xd0] sm:$0xff] }
   0x4   :  { %1280 = vmatpush3.msra.mxu1 %v45_v1  ;;  %1237 = vmatprep.subr.mxu0 %v971_v2  ;;  %v42_v7 = vld [vmem:[%s2175_s3 + $0x60] sm:$0xff]  ;;  %v41_v9 = vld [vmem:[%s2175_s3 + $0x58] sm:$0xff]  ;;  %v40_v11 = vld [vmem:[%s2175_s3 + $0x50] sm:$0xff] }
   0x5   :  { %1281 = vmatprep.subr.mxu1 %v44_v3  ;;  %1238 = vmatpush3.msra.mxu0 %v971_v2  ;;  %v966_v12 = vld [vmem:[%s2175_s3 + $0xc8] sm:$0xff]  ;;  %v965_v14 = vld [vmem:[%s2175_s3 + $0xc0] sm:$0xff]  ;;  %v964_v16 = vld [vmem:[%s2175_s3 + $0xb8] sm:$0xff] }
   0x6   :  { %1282 = vmatpush3.msra.mxu1 %v44_v3  ;;  %1239 = vmatprep.subr.mxu0 %v970_v4  ;;  %v39_v13 = vld [vmem:[%s2175_s3 + $0x48] sm:$0xff]  ;;  %v38_v15 = vld [vmem:[%s2175_s3 + $0x40] sm:$0xff]  ;;  %v37_v17 = vld [vmem:[%s2175_s3 + $0x38] sm:$0xff] }
   0x7   :  { %1283 = vmatprep.subr.mxu1 %v43_v5  ;;  %1240 = vmatpush3.msra.mxu0 %v970_v4  ;;  %v963_v18 = vld [vmem:[%s2175_s3 + $0xb0] sm:$0xff]  ;;  %v962_v20 = vld [vmem:[%s2175_s3 + $0xa8] sm:$0xff]  ;;  %v961_v22 = vld [vmem:[%s2175_s3 + $0xa0] sm:$0xff] }
   0x8   :  { %1284 = vmatpush3.msra.mxu1 %v43_v5  ;;  %1241 = vmatprep.subr.mxu0 %v969_v6  ;;  %v36_v19 = vld [vmem:[%s2175_s3 + $0x30] sm:$0xff]  ;;  %v35_v21 = vld [vmem:[%s2175_s3 + $0x28] sm:$0xff]  ;;  %v34_v23 = vld [vmem:[%s2175_s3 + $0x20] sm:$0xff] }
   0x9   :  { %1285 = vmatprep.subr.mxu1 %v42_v7  ;;  %1242 = vmatpush3.msra.mxu0 %v969_v6  ;;  %v960_v24 = vld [vmem:[%s2175_s3 + $0x98] sm:$0xff]  ;;  %v959_v26 = vld [vmem:[%s2175_s3 + $0x90] sm:$0xff]  ;;  %v958_v28 = vld [vmem:[%s2175_s3 + $0x88] sm:$0xff] }
   0xa   :  { %1286 = vmatpush3.msra.mxu1 %v42_v7  ;;  %1243 = vmatprep.subr.mxu0 %v968_v8  ;;  %v33_v25 = vld [vmem:[%s2175_s3 + $0x18] sm:$0xff]  ;;  %v32_v27 = vld [vmem:[%s2175_s3 + $0x10] sm:$0xff]  ;;  %v31_v29 = vld [vmem:[%s2175_s3 + $0x8] sm:$0xff] }
   0xb   :  { %1287 = vmatprep.subr.mxu1 %v41_v9  ;;  %1244 = vmatpush3.msra.mxu0 %v968_v8  ;;  %v957_v30 = vld [vmem:[%s2175_s3 + $0x80] sm:$0xff]  ;;  %v950_v34 = vld [vmem:[%s2176_s0 + $0x48] sm:$0xff]  ;;  %v988_v36 = vld [vmem:[%s2177_s1 + $0xf8] sm:$0xff] }
   0xc   :  { %1288 = vmatpush3.msra.mxu1 %v41_v9  ;;  %1245 = vmatprep.subr.mxu0 %v967_v10  ;;  %v30_v31 = vld [vmem:[%s2175_s3] sm:$0xff]  ;;  %v23_v35 = vld [vmem:[%s2176_s0 + $0x8] sm:$0xff]  ;;  %v61_v37 = vld [vmem:[%s2177_s1 + $0x78] sm:$0xff] }
   0xd   :  { %1289 = vmatprep.subr.mxu1 %v40_v11  ;;  %1246 = vmatpush3.msra.mxu0 %v967_v10  ;;  %v949_v32 = vld [vmem:[%s2176_s0 + $0x40] sm:$0xff]  ;;  %v987_v39 = vld [vmem:[%s2177_s1 + $0xf0] sm:$0xff]  ;;  %v986_v41 = vld [vmem:[%s2177_s1 + $0xe8] sm:$0xff] }
   0xe   :  { %1290 = vmatpush3.msra.mxu1 %v40_v11  ;;  %1247 = vmatprep.subr.mxu0 %v966_v12  ;;  %v22_v33 = vld [vmem:[%s2176_s0] sm:$0xff]  ;;  %v60_v40 = vld [vmem:[%s2177_s1 + $0x70] sm:$0xff]  ;;  %v59_v42 = vld [vmem:[%s2177_s1 + $0x68] sm:$0xff] }
   0xf   :  { %1291 = vmatprep.subr.mxu1 %v39_v13  ;;  %1248 = vmatpush3.msra.mxu0 %v966_v12  ;;  %v985_v43 = vld [vmem:[%s2177_s1 + $0xe0] sm:$0xff]  ;;  %v984_v45 = vld [vmem:[%s2177_s1 + $0xd8] sm:$0xff]  ;;  %v983_v47 = vld [vmem:[%s2177_s1 + $0xd0] sm:$0xff] }
  0x10   :  { %1292 = vmatpush3.msra.mxu1 %v39_v13  ;;  %1249 = vmatprep.subr.mxu0 %v965_v14  ;;  %v58_v44 = vld [vmem:[%s2177_s1 + $0x60] sm:$0xff]  ;;  %v57_v46 = vld [vmem:[%s2177_s1 + $0x58] sm:$0xff]  ;;  %v56_v48 = vld [vmem:[%s2177_s1 + $0x50] sm:$0xff] }
  0x11   :  { %1293 = vmatprep.subr.mxu1 %v38_v15  ;;  %1250 = vmatpush3.msra.mxu0 %v965_v14  ;;  %v982_v49 = vld [vmem:[%s2177_s1 + $0xc8] sm:$0xff]  ;;  %v981_v51 = vld [vmem:[%s2177_s1 + $0xc0] sm:$0xff]  ;;  %v980_v53 = vld [vmem:[%s2177_s1 + $0xb8] sm:$0xff] }
  0x12   :  { %1294 = vmatpush3.msra.mxu1 %v38_v15  ;;  %1251 = vmatprep.subr.mxu0 %v964_v16  ;;  %v55_v50 = vld [vmem:[%s2177_s1 + $0x48] sm:$0xff]  ;;  %v54_v52 = vld [vmem:[%s2177_s1 + $0x40] sm:$0xff]  ;;  %v53_v54 = vld [vmem:[%s2177_s1 + $0x38] sm:$0xff] }
  0x13   :  { %1295 = vmatprep.subr.mxu1 %v37_v17  ;;  %1252 = vmatpush3.msra.mxu0 %v964_v16  ;;  %v951_v55 = vld [vmem:[%s2176_s0 + $0x50] sm:$0xff]  ;;  %v952_v57 = vld [vmem:[%s2176_s0 + $0x58] sm:$0xff]  ;;  %v978_v61 = vld [vmem:[%s2177_s1 + $0xa8] sm:$0xff] }
  0x14   :  { %1296 = vmatpush3.msra.mxu1 %v37_v17  ;;  %1253 = vmatprep.subr.mxu0 %v963_v18  ;;  %v24_v56 = vld [vmem:[%s2176_s0 + $0x10] sm:$0xff]  ;;  %v25_v58 = vld [vmem:[%s2176_s0 + $0x18] sm:$0xff]  ;;  %v51_v62 = vld [vmem:[%s2177_s1 + $0x28] sm:$0xff] }
  0x15   :  { %1297 = vmatprep.subr.mxu1 %v36_v19  ;;  %1254 = vmatpush3.msra.mxu0 %v963_v18  ;;  %v979_v59 = vld [vmem:[%s2177_s1 + $0xb0] sm:$0xff]  ;;  %v953_v63 = vld [vmem:[%s2176_s0 + $0x60] sm:$0xff]  ;;  %v954_v1 = vld [vmem:[%s2176_s0 + $0x68] sm:$0xff] }
  0x16   :  { %1298 = vmatpush3.msra.mxu1 %v36_v19  ;;  %1255 = vmatprep.subr.mxu0 %v962_v20  ;;  %v52_v60 = vld [vmem:[%s2177_s1 + $0x30] sm:$0xff]  ;;  %v26_v0 = vld [vmem:[%s2176_s0 + $0x20] sm:$0xff]  ;;  %v27_v2 = vld [vmem:[%s2176_s0 + $0x28] sm:$0xff] }
  0x17   :  { %1299 = vmatprep.subr.mxu1 %v35_v21  ;;  %1256 = vmatpush3.msra.mxu0 %v962_v20  ;;  %v977_v3 = vld [vmem:[%s2177_s1 + $0xa0] sm:$0xff]  ;;  %v976_v5 = vld [vmem:[%s2177_s1 + $0x98] sm:$0xff]  ;;  %v955_v7 = vld [vmem:[%s2176_s0 + $0x70] sm:$0xff] }
  0x18   :  { %1300 = vmatpush3.msra.mxu1 %v35_v21  ;;  %1257 = vmatprep.subr.mxu0 %v961_v22  ;;  %v50_v4 = vld [vmem:[%s2177_s1 + $0x20] sm:$0xff]  ;;  %v49_v6 = vld [vmem:[%s2177_s1 + $0x18] sm:$0xff]  ;;  %v28_v8 = vld [vmem:[%s2176_s0 + $0x30] sm:$0xff] }
  0x19   :  { %1301 = vmatprep.subr.mxu1 %v34_v23  ;;  %1258 = vmatpush3.msra.mxu0 %v961_v22  ;;  %v956_v9 = vld [vmem:[%s2176_s0 + $0x78] sm:$0xff]  ;;  %v975_v11 = vld [vmem:[%s2177_s1 + $0x90] sm:$0xff]  ;;  %v974_v13 = vld [vmem:[%s2177_s1 + $0x88] sm:$0xff] }
  0x1a   :  { %1302 = vmatpush3.msra.mxu1 %v34_v23  ;;  %1259 = vmatprep.subr.mxu0 %v960_v24  ;;  %v29_v10 = vld [vmem:[%s2176_s0 + $0x38] sm:$0xff]  ;;  %v48_v12 = vld [vmem:[%s2177_s1 + $0x10] sm:$0xff]  ;;  %v47_v14 = vld [vmem:[%s2177_s1 + $0x8] sm:$0xff] }
  0x1b   :  { %1303 = vmatprep.subr.mxu1 %v33_v25  ;;  %1260 = vmatpush3.msra.mxu0 %v960_v24  ;;  %v973_v15 = vld [vmem:[%s2177_s1 + $0x80] sm:$0xff]  ;;  %v1012_v17 = vld [vmem:[%s2175_s3 + $0x178] sm:$0xff]  ;;  %v1011_v19 = vld [vmem:[%s2175_s3 + $0x170] sm:$0xff] }
  0x1c   :  { %1304 = vmatpush3.msra.mxu1 %v33_v25  ;;  %1261 = vmatprep.subr.mxu0 %v959_v26  ;;  %v46_v16 = vld [vmem:[%s2177_s1] sm:$0xff]  ;;  %v1028_v18 = vld [vmem:[%s2177_s1 + $0x178] sm:$0xff]  ;;  %v1027_v20 = vld [vmem:[%s2177_s1 + $0x170] sm:$0xff] }
  0x1d   :  { %1305 = vmatprep.subr.mxu1 %v32_v27  ;;  %1262 = vmatpush3.msra.mxu0 %v959_v26  ;;  %v1010_v21 = vld [vmem:[%s2175_s3 + $0x168] sm:$0xff]  ;;  %v1009_v23 = vld [vmem:[%s2175_s3 + $0x160] sm:$0xff]  ;;  %v1008_v25 = vld [vmem:[%s2175_s3 + $0x158] sm:$0xff] }
  0x1e   :  { %1306 = vmatpush3.msra.mxu1 %v32_v27  ;;  %1263 = vmatprep.subr.mxu0 %v958_v28  ;;  %v1026_v22 = vld [vmem:[%s2177_s1 + $0x168] sm:$0xff]  ;;  %v1025_v24 = vld [vmem:[%s2177_s1 + $0x160] sm:$0xff]  ;;  %v1024_v26 = vld [vmem:[%s2177_s1 + $0x158] sm:$0xff] }
  0x1f   :  { %1307 = vmatprep.subr.mxu1 %v31_v29  ;;  %1264 = vmatpush3.msra.mxu0 %v958_v28  ;;  %v1007_v27 = vld [vmem:[%s2175_s3 + $0x150] sm:$0xff] }
  0x20   :  { %1308 = vmatpush3.msra.mxu1 %v31_v29  ;;  %1265 = vmatprep.subr.mxu0 %v957_v30  ;;  %v1023_v28 = vld [vmem:[%s2177_s1 + $0x150] sm:$0xff]  ;;  %v1006_v29 = vld [vmem:[%s2175_s3 + $0x148] sm:$0xff] }
  0x21   :  { %1309 = vmatprep.subr.mxu1 %v30_v31  ;;  %1266 = vmatpush3.msra.mxu0 %v957_v30  ;;  %v1022_v30 = vld [vmem:[%s2177_s1 + $0x148] sm:$0xff] }
  0x22   :  { %1267 = vmatprep.mubr.f32.mxu0 %v949_v32  ;;  %1310 = vmatpush3.msra.mxu1 %v30_v31  ;;  %v1005_v31 = vld [vmem:[%s2175_s3 + $0x140] sm:$0xff] }
  0x23   :  { %1311 = vmatprep.mubr.f32.mxu1 %v22_v33  ;;  %1268 = vmatmul.mubr.f32.vlgmr.msra.gmra.mxu0 %v950_v34  ;;  %v1021_v32 = vld [vmem:[%s2177_s1 + $0x140] sm:$0xff]  ;;  %v1004_v33 = vld [vmem:[%s2175_s3 + $0x138] sm:$0xff] }
  0x24   :  { %1312 = vmatmul.mubr.f32.vlgmr.msra.gmra.mxu1 %v23_v35  ;;  %1323 = vmatprep.subr.mxu0 %v1553_v38  ;;  %v1020_v34 = vld [vmem:[%s2177_s1 + $0x138] sm:$0xff]  ;;  %v1003_v35 = vld [vmem:[%s2175_s3 + $0x130] sm:$0xff] }
  0x25   :  { %1358 = vmatprep.subr.mxu1 %v1553_v38  ;;  %1324 = vmatpush3.msra.mxu0 %v988_v36  ;;  %v1019_v36 = vld [vmem:[%s2177_s1 + $0x130] sm:$0xff] }
  0x26   :  { %1359 = vmatpush3.msra.mxu1 %v61_v37  ;;  %1325 = vmatprep.subr.mxu0 %v1553_v38  ;;  %v1002_v37 = vld [vmem:[%s2175_s3 + $0x128] sm:$0xff] }
  0x27   :  { %1360 = vmatprep.subr.mxu1 %v1553_v38  ;;  %1326 = vmatpush3.msra.mxu0 %v987_v39  ;;  %v1018_v39 = vld [vmem:[%s2177_s1 + $0x128] sm:$0xff] }
  0x28   :  { %1361 = vmatpush3.msra.mxu1 %v60_v40  ;;  %1327 = vmatprep.subr.mxu0 %v1553_v38  ;;  %v1001_v40 = vld [vmem:[%s2175_s3 + $0x120] sm:$0xff] }
  0x29   :  { %1362 = vmatprep.subr.mxu1 %v1553_v38  ;;  %1328 = vmatpush3.msra.mxu0 %v986_v41  ;;  %v1017_v41 = vld [vmem:[%s2177_s1 + $0x120] sm:$0xff] }
  0x2a   :  { %1363 = vmatpush3.msra.mxu1 %v59_v42  ;;  %1329 = vmatprep.subr.mxu0 %v1553_v38  ;;  %v1000_v42 = vld [vmem:[%s2175_s3 + $0x118] sm:$0xff] }
  0x2b   :  { %1364 = vmatprep.subr.mxu1 %v1553_v38  ;;  %1330 = vmatpush3.msra.mxu0 %v985_v43  ;;  %v1016_v43 = vld [vmem:[%s2177_s1 + $0x118] sm:$0xff] }
  0x2c   :  { %1365 = vmatpush3.msra.mxu1 %v58_v44  ;;  %1331 = vmatprep.subr.mxu0 %v1553_v38  ;;  %v999_v44 = vld [vmem:[%s2175_s3 + $0x110] sm:$0xff] }
  0x2d   :  { %1366 = vmatprep.subr.mxu1 %v1553_v38  ;;  %1332 = vmatpush3.msra.mxu0 %v984_v45  ;;  %v1015_v45 = vld [vmem:[%s2177_s1 + $0x110] sm:$0xff] }
  0x2e   :  { %1367 = vmatpush3.msra.mxu1 %v57_v46  ;;  %1333 = vmatprep.subr.mxu0 %v1553_v38  ;;  %v998_v46 = vld [vmem:[%s2175_s3 + $0x108] sm:$0xff] }
  0x2f   :  { %1368 = vmatprep.subr.mxu1 %v1553_v38  ;;  %1334 = vmatpush3.msra.mxu0 %v983_v47  ;;  %v1014_v47 = vld [vmem:[%s2177_s1 + $0x108] sm:$0xff] }
  0x30   :  { %1369 = vmatpush3.msra.mxu1 %v56_v48  ;;  %1335 = vmatprep.subr.mxu0 %v1553_v38  ;;  %v997_v48 = vld [vmem:[%s2175_s3 + $0x100] sm:$0xff] }
  0x31   :  { %1370 = vmatprep.subr.mxu1 %v1553_v38  ;;  %1336 = vmatpush3.msra.mxu0 %v982_v49  ;;  %v989_v49 = vld [vmem:[%s2176_s0 + $0x80] sm:$0xff] }
  0x32   :  { %1371 = vmatpush3.msra.mxu1 %v55_v50  ;;  %1337 = vmatprep.subr.mxu0 %v1553_v38  ;;  %v1013_v50 = vld [vmem:[%s2177_s1 + $0x100] sm:$0xff] }
  0x33   :  { %1372 = vmatprep.subr.mxu1 %v1553_v38  ;;  %1338 = vmatpush3.msra.mxu0 %v981_v51  ;;  %v990_v51 = vld [vmem:[%s2176_s0 + $0x88] sm:$0xff] }
  0x34   :  { %1373 = vmatpush3.msra.mxu1 %v54_v52  ;;  %1339 = vmatprep.subr.mxu0 %v1553_v38  ;;  %v996_v52 = vld [vmem:[%s2176_s0 + $0xb8] sm:$0xff] }
  0x35   :  { %1374 = vmatprep.subr.mxu1 %v1553_v38  ;;  %1340 = vmatpush3.msra.mxu0 %v980_v53  ;;  %v1052_v53 = vld [vmem:[%s2175_s3 + $0x1f8] sm:$0xff] }
  0x36   :  { %1375 = vmatpush3.msra.mxu1 %v53_v54  ;;  %1270 = vmatprep.mubr.f32.mxu0 %v951_v55  ;;  %v1068_v54 = vld [vmem:[%s2177_s1 + $0x1f8] sm:$0xff]  ;;  %v1051_v55 = vld [vmem:[%s2175_s3 + $0x1f0] sm:$0xff] }
  0x37   :  { %1314 = vmatprep.mubr.f32.mxu1 %v24_v56  ;;  %1341 = vmatprep.subr.mxu0 %v1553_v38  ;;  %v991_v56 = vld [vmem:[%s2176_s0 + $0x90] sm:$0xff] }
  0x38   :  { %1376 = vmatprep.subr.mxu1 %v1553_v38  ;;  %1271 = vmatmul.mubr.f32.gmra.mxu0 %v952_v57  ;;  %v1067_v57 = vld [vmem:[%s2177_s1 + $0x1f0] sm:$0xff] }
  0x39   :  { %1315 = vmatmul.mubr.f32.gmra.mxu1 %v25_v58  ;;  %1342 = vmatpush3.msra.mxu0 %v979_v59  ;;  %v992_v58 = vld [vmem:[%s2176_s0 + $0x98] sm:$0xff]  ;;  %v1050_v59 = vld [vmem:[%s2175_s3 + $0x1e8] sm:$0xff] }
  0x3a   :  { %1377 = vmatpush3.msra.mxu1 %v52_v60  ;;  %1343 = vmatprep.subr.mxu0 %v1553_v38  ;;  %v1066_v60 = vld [vmem:[%s2177_s1 + $0x1e8] sm:$0xff] }
  0x3b   :  { %1378 = vmatprep.subr.mxu1 %v1553_v38  ;;  %1344 = vmatpush3.msra.mxu0 %v978_v61  ;;  %v1049_v61 = vld [vmem:[%s2175_s3 + $0x1e0] sm:$0xff] }
  0x3c   :  { %1379 = vmatpush3.msra.mxu1 %v51_v62  ;;  %1273 = vmatprep.mubr.f32.mxu0 %v953_v63  ;;  %v993_v62 = vld [vmem:[%s2176_s0 + $0xa0] sm:$0xff] }
  0x3d   :  { %1317 = vmatprep.mubr.f32.mxu1 %v26_v0  ;;  %1345 = vmatprep.subr.mxu0 %v1553_v38  ;;  %v1065_v63 = vld [vmem:[%s2177_s1 + $0x1e0] sm:$0xff]  ;;  %v994_v0 = vld [vmem:[%s2176_s0 + $0xa8] sm:$0xff] }
  0x3e   :  { %1380 = vmatprep.subr.mxu1 %v1553_v38  ;;  %1274 = vmatmul.mubr.f32.gmra.mxu0 %v954_v1  ;;  %v1048_v1 = vld [vmem:[%s2175_s3 + $0x1d8] sm:$0xff] }
  0x3f   :  { %1318 = vmatmul.mubr.f32.gmra.mxu1 %v27_v2  ;;  %1346 = vmatpush3.msra.mxu0 %v977_v3  ;;  %v1064_v2 = vld [vmem:[%s2177_s1 + $0x1d8] sm:$0xff]  ;;  %v1047_v3 = vld [vmem:[%s2175_s3 + $0x1d0] sm:$0xff] }
  0x40   :  { %1381 = vmatpush3.msra.mxu1 %v50_v4  ;;  %1347 = vmatprep.subr.mxu0 %v1553_v38  ;;  %v995_v4 = vld [vmem:[%s2176_s0 + $0xb0] sm:$0xff] }
  0x41   :  { %1382 = vmatprep.subr.mxu1 %v1553_v38  ;;  %1348 = vmatpush3.msra.mxu0 %v976_v5  ;;  %v1063_v5 = vld [vmem:[%s2177_s1 + $0x1d0] sm:$0xff] }
  0x42   :  { %1383 = vmatpush3.msra.mxu1 %v49_v6  ;;  %1276 = vmatprep.mubr.f32.mxu0 %v955_v7  ;;  %v1046_v6 = vld [vmem:[%s2175_s3 + $0x1c8] sm:$0xff] }
  0x43   :  { %1320 = vmatprep.mubr.f32.mxu1 %v28_v8  ;;  %1349 = vmatprep.subr.mxu0 %v1553_v38  ;;  %v1062_v7 = vld [vmem:[%s2177_s1 + $0x1c8] sm:$0xff]  ;;  %v1045_v8 = vld [vmem:[%s2175_s3 + $0x1c0] sm:$0xff] }
  0x44   :  { %1384 = vmatprep.subr.mxu1 %v1553_v38  ;;  %1277 = vmatmul.mubr.f32.gmra.mxu0 %v956_v9 }
  0x45   :  { %1321 = vmatmul.mubr.f32.gmra.mxu1 %v29_v10  ;;  %1350 = vmatpush3.msra.mxu0 %v975_v11  ;;  %v1060_v11 = vld [vmem:[%s2177_s1 + $0x1b8] sm:$0xff] }
  0x46   :  { %1385 = vmatpush3.msra.mxu1 %v48_v12  ;;  %1351 = vmatprep.subr.mxu0 %v1553_v38  ;;  %v1043_v12 = vld [vmem:[%s2175_s3 + $0x1b0] sm:$0xff] }
  0x47   :  { %1386 = vmatprep.subr.mxu1 %v1553_v38  ;;  %1352 = vmatpush3.msra.mxu0 %v974_v13  ;;  %v1059_v13 = vld [vmem:[%s2177_s1 + $0x1b0] sm:$0xff] }
  0x48   :  { %1387 = vmatpush3.msra.mxu1 %v47_v14  ;;  %1353 = vmatprep.subr.mxu0 %v1553_v38  ;;  %v1042_v14 = vld [vmem:[%s2175_s3 + $0x1a8] sm:$0xff] }
  0x49   :  { %1388 = vmatprep.subr.mxu1 %v1553_v38  ;;  %1354 = vmatpush3.msra.mxu0 %v973_v15  ;;  %v1058_v15 = vld [vmem:[%s2177_s1 + $0x1a8] sm:$0xff] }
  0x4a   :  { %1355 = vmatprep.mubr.msk.f32.mxu0 %vm1554_vm0, %v1553_v38  ;;  %1389 = vmatpush3.msra.mxu1 %v46_v16  ;;  %v1041_v16 = vld [vmem:[%s2175_s3 + $0x1a0] sm:$0xff] }
  0x4b   :  { %1356 = vmatmul.mubr.f32.vlgmr.msra.gmra.mxu0 %v956_v9  ;;  %1390 = vmatprep.mubr.msk.f32.mxu1 %vm1554_vm0, %v1553_v38  ;;  %v1061_v9 = vld [vmem:[%s2177_s1 + $0x1c0] sm:$0xff] }
  0x4c   :  { %1393 = vmatprep.subr.mxu0 %v1012_v17  ;;  %1437 = vmatprep.subr.mxu1 %v1553_v38 }
  0x4d   :  { %1391 = vmatmul.mubr.f32.vlgmr.msra.gmra.mxu1 %v29_v10  ;;  %1394 = vmatpush3.msra.mxu0 %v1012_v17  ;;  %v1044_v10 = vld [vmem:[%s2175_s3 + $0x1b8] sm:$0xff]  ;;  %v1057_v17 = vld [vmem:[%s2177_s1 + $0x1a0] sm:$0xff] }
  0x4e   :  { %1438 = vmatpush3.msra.mxu1 %v1028_v18  ;;  %1395 = vmatprep.subr.mxu0 %v1011_v19  ;;  %v1040_v18 = vld [vmem:[%s2175_s3 + $0x198] sm:$0xff] }
  0x4f   :  { %1439 = vmatprep.subr.mxu1 %v1553_v38  ;;  %1396 = vmatpush3.msra.mxu0 %v1011_v19  ;;  %v1056_v19 = vld [vmem:[%s2177_s1 + $0x198] sm:$0xff] }
  0x50   :  { %1440 = vmatpush3.msra.mxu1 %v1027_v20  ;;  %1397 = vmatprep.subr.mxu0 %v1010_v21  ;;  %v1039_v20 = vld [vmem:[%s2175_s3 + $0x190] sm:$0xff] }
  0x51   :  { %1441 = vmatprep.subr.mxu1 %v1553_v38  ;;  %1398 = vmatpush3.msra.mxu0 %v1010_v21  ;;  %v1055_v21 = vld [vmem:[%s2177_s1 + $0x190] sm:$0xff] }
  0x52   :  { %1442 = vmatpush3.msra.mxu1 %v1026_v22  ;;  %1399 = vmatprep.subr.mxu0 %v1009_v23  ;;  %v1038_v22 = vld [vmem:[%s2175_s3 + $0x188] sm:$0xff] }
  0x53   :  { %1443 = vmatprep.subr.mxu1 %v1553_v38  ;;  %1400 = vmatpush3.msra.mxu0 %v1009_v23  ;;  %v1054_v23 = vld [vmem:[%s2177_s1 + $0x188] sm:$0xff] }
  0x54   :  { %1444 = vmatpush3.msra.mxu1 %v1025_v24  ;;  %1401 = vmatprep.subr.mxu0 %v1008_v25  ;;  %v1037_v24 = vld [vmem:[%s2175_s3 + $0x180] sm:$0xff] }
  0x55   :  { %1445 = vmatprep.subr.mxu1 %v1553_v38  ;;  %1402 = vmatpush3.msra.mxu0 %v1008_v25  ;;  %v1029_v25 = vld [vmem:[%s2176_s0 + $0xc0] sm:$0xff] }
  0x56   :  { %1446 = vmatpush3.msra.mxu1 %v1024_v26  ;;  %1403 = vmatprep.subr.mxu0 %v1007_v27  ;;  %v1053_v26 = vld [vmem:[%s2177_s1 + $0x180] sm:$0xff] }
  0x57   :  { %1447 = vmatprep.subr.mxu1 %v1553_v38  ;;  %1404 = vmatpush3.msra.mxu0 %v1007_v27  ;;  %v1030_v27 = vld [vmem:[%s2176_s0 + $0xc8] sm:$0xff] }
  0x58   :  { %1448 = vmatpush3.msra.mxu1 %v1023_v28  ;;  %1405 = vmatprep.subr.mxu0 %v1006_v29  ;;  %v1036_v28 = vld [vmem:[%s2176_s0 + $0xf8] sm:$0xff] }
  0x59   :  { %1449 = vmatprep.subr.mxu1 %v1553_v38  ;;  %1406 = vmatpush3.msra.mxu0 %v1006_v29  ;;  %v1031_v29 = vld [vmem:[%s2176_s0 + $0xd0] sm:$0xff] }
  0x5a   :  { %1450 = vmatpush3.msra.mxu1 %v1022_v30  ;;  %1407 = vmatprep.subr.mxu0 %v1005_v31  ;;  %v1032_v30 = vld [vmem:[%s2176_s0 + $0xd8] sm:$0xff] }
  0x5b   :  { %1451 = vmatprep.subr.mxu1 %v1553_v38  ;;  %1408 = vmatpush3.msra.mxu0 %v1005_v31  ;;  %v1033_v31 = vld [vmem:[%s2176_s0 + $0xe0] sm:$0xff] }
  0x5c   :  { %1452 = vmatpush3.msra.mxu1 %v1021_v32  ;;  %1409 = vmatprep.subr.mxu0 %v1004_v33  ;;  %v1034_v32 = vld [vmem:[%s2176_s0 + $0xe8] sm:$0xff] }
  0x5d   :  { %1453 = vmatprep.subr.mxu1 %v1553_v38  ;;  %1410 = vmatpush3.msra.mxu0 %v1004_v33 }
  0x5e   :  { %1454 = vmatpush3.msra.mxu1 %v1020_v34  ;;  %1411 = vmatprep.subr.mxu0 %v1003_v35 }
  0x5f   :  { %1455 = vmatprep.subr.mxu1 %v1553_v38  ;;  %1412 = vmatpush3.msra.mxu0 %v1003_v35 }
  0x60   :  { %1456 = vmatpush3.msra.mxu1 %v1019_v36  ;;  %1413 = vmatprep.subr.mxu0 %v1002_v37 }
  0x61   :  { %1457 = vmatprep.subr.mxu1 %v1553_v38  ;;  %1414 = vmatpush3.msra.mxu0 %v1002_v37 }
  0x62   :  { %1458 = vmatpush3.msra.mxu1 %v1018_v39  ;;  %1415 = vmatprep.subr.mxu0 %v1001_v40 }
  0x63   :  { %1459 = vmatprep.subr.mxu1 %v1553_v38  ;;  %1416 = vmatpush3.msra.mxu0 %v1001_v40 }
  0x64   :  { %1460 = vmatpush3.msra.mxu1 %v1017_v41  ;;  %1417 = vmatprep.subr.mxu0 %v1000_v42 }
  0x65   :  { %1461 = vmatprep.subr.mxu1 %v1553_v38  ;;  %1418 = vmatpush3.msra.mxu0 %v1000_v42 }
  0x66   :  { %1462 = vmatpush3.msra.mxu1 %v1016_v43  ;;  %1419 = vmatprep.subr.mxu0 %v999_v44 }
  0x67   :  { %1463 = vmatprep.subr.mxu1 %v1553_v38  ;;  %1420 = vmatpush3.msra.mxu0 %v999_v44 }
  0x68   :  { %1464 = vmatpush3.msra.mxu1 %v1015_v45  ;;  %1421 = vmatprep.subr.mxu0 %v998_v46 }
  0x69   :  { %1465 = vmatprep.subr.mxu1 %v1553_v38  ;;  %1422 = vmatpush3.msra.mxu0 %v998_v46 }
  0x6a   :  { %1466 = vmatpush3.msra.mxu1 %v1014_v47  ;;  %1423 = vmatprep.subr.mxu0 %v997_v48 }
  0x6b   :  { %1467 = vmatprep.subr.mxu1 %v1553_v38  ;;  %1424 = vmatpush3.msra.mxu0 %v997_v48 }
  0x6c   :  { %1425 = vmatprep.mubr.f32.mxu0 %v989_v49  ;;  %1468 = vmatpush3.msra.mxu1 %v1013_v50 }
  0x6d   :  { %1469 = vmatprep.mubr.msk.f32.mxu1 %vm1554_vm0, %v1553_v38  ;;  %1426 = vmatmul.mubr.f32.vlgmr.msra.gmra.mxu0 %v990_v51 }
  0x6e   :  { %1470 = vmatmul.mubr.f32.vlgmr.msra.gmra.mxu1 %v996_v52  ;;  %1472 = vmatprep.subr.mxu0 %v1052_v53 }
  0x6f   :  { %1516 = vmatprep.subr.mxu1 %v1553_v38  ;;  %1473 = vmatpush3.msra.mxu0 %v1052_v53 }
  0x70   :  { %1517 = vmatpush3.msra.mxu1 %v1068_v54  ;;  %1474 = vmatprep.subr.mxu0 %v1051_v55 }
  0x71   :  { %1518 = vmatprep.subr.mxu1 %v1553_v38  ;;  %1428 = vmatprep.mubr.f32.mxu0 %v991_v56 }
  0x72   :  { %1475 = vmatpush3.msra.mxu0 %v1051_v55  ;;  %1519 = vmatpush3.msra.mxu1 %v1067_v57 }
  0x73   :  { %1429 = vmatmul.mubr.f32.gmra.mxu0 %v992_v58  ;;  %1476 = vmatprep.subr.mxu0 %v1050_v59 }
  0x74   :  { %1520 = vmatprep.subr.mxu1 %v1553_v38  ;;  %1477 = vmatpush3.msra.mxu0 %v1050_v59 }
  0x75   :  { %1521 = vmatpush3.msra.mxu1 %v1066_v60  ;;  %1478 = vmatprep.subr.mxu0 %v1049_v61 }
  0x76   :  { %1522 = vmatprep.subr.mxu1 %v1553_v38  ;;  %1431 = vmatprep.mubr.f32.mxu0 %v993_v62 }
  0x77   :  { %1479 = vmatpush3.msra.mxu0 %v1049_v61  ;;  %1523 = vmatpush3.msra.mxu1 %v1065_v63 }
  0x78   :  { %1432 = vmatmul.mubr.f32.gmra.mxu0 %v994_v0  ;;  %1480 = vmatprep.subr.mxu0 %v1048_v1 }
  0x79   :  { %1524 = vmatprep.subr.mxu1 %v1553_v38  ;;  %1481 = vmatpush3.msra.mxu0 %v1048_v1 }
  0x7a   :  { %1525 = vmatpush3.msra.mxu1 %v1064_v2  ;;  %1482 = vmatprep.subr.mxu0 %v1047_v3 }
  0x7b   :  { %1526 = vmatprep.subr.mxu1 %v1553_v38  ;;  %1434 = vmatprep.mubr.f32.mxu0 %v995_v4 }
  0x7c   :  { %1483 = vmatpush3.msra.mxu0 %v1047_v3  ;;  %1527 = vmatpush3.msra.mxu1 %v1063_v5 }
  0x7d   :  { %1435 = vmatmul.mubr.f32.gmra.mxu0 %v996_v52  ;;  %1484 = vmatprep.subr.mxu0 %v1046_v6 }
  0x7e   :  { %1528 = vmatprep.subr.mxu1 %v1553_v38  ;;  %1485 = vmatpush3.msra.mxu0 %v1046_v6 }
  0x7f   :  { %1529 = vmatpush3.msra.mxu1 %v1062_v7  ;;  %1486 = vmatprep.subr.mxu0 %v1045_v8 }
  0x80   :  { %1530 = vmatprep.subr.mxu1 %v1553_v38  ;;  %1487 = vmatpush3.msra.mxu0 %v1045_v8 }
  0x81   :  { %1531 = vmatpush3.msra.mxu1 %v1061_v9  ;;  %1488 = vmatprep.subr.mxu0 %v1044_v10 }
  0x82   :  { %1532 = vmatprep.subr.mxu1 %v1553_v38  ;;  %1489 = vmatpush3.msra.mxu0 %v1044_v10 }
  0x83   :  { %1533 = vmatpush3.msra.mxu1 %v1060_v11  ;;  %1490 = vmatprep.subr.mxu0 %v1043_v12 }
  0x84   :  { %1534 = vmatprep.subr.mxu1 %v1553_v38  ;;  %1491 = vmatpush3.msra.mxu0 %v1043_v12  ;;  %v1069_v12 = vld [vmem:[%s2178_s4] ss:$0 sm:$0xff] }
  0x85   :  { %1535 = vmatpush3.msra.mxu1 %v1059_v13  ;;  %1492 = vmatprep.subr.mxu0 %v1042_v14 }
  0x86   :  { %1536 = vmatprep.subr.mxu1 %v1553_v38  ;;  %1493 = vmatpush3.msra.mxu0 %v1042_v14  ;;  %v1070_v14 = vld [vmem:[%s2179_s2] ss:$0 sm:$0xff] }
  0x87   :  { %1537 = vmatpush3.msra.mxu1 %v1058_v15  ;;  %1494 = vmatprep.subr.mxu0 %v1041_v16 }
  0x88   :  { %1538 = vmatprep.subr.mxu1 %v1553_v38  ;;  %1495 = vmatpush3.msra.mxu0 %v1041_v16 }
  0x89   :  { %1539 = vmatpush3.msra.mxu1 %v1057_v17  ;;  %1496 = vmatprep.subr.mxu0 %v1040_v18 }
  0x8a   :  { %1540 = vmatprep.subr.mxu1 %v1553_v38  ;;  %1497 = vmatpush3.msra.mxu0 %v1040_v18 }
  0x8b   :  { %1541 = vmatpush3.msra.mxu1 %v1056_v19  ;;  %1498 = vmatprep.subr.mxu0 %v1039_v20 }
  0x8c   :  { %1542 = vmatprep.subr.mxu1 %v1553_v38  ;;  %1499 = vmatpush3.msra.mxu0 %v1039_v20 }
  0x8d   :  { %1543 = vmatpush3.msra.mxu1 %v1055_v21  ;;  %1500 = vmatprep.subr.mxu0 %v1038_v22 }
  0x8e   :  { %1544 = vmatprep.subr.mxu1 %v1553_v38  ;;  %1501 = vmatpush3.msra.mxu0 %v1038_v22 }
  0x8f   :  { %1545 = vmatpush3.msra.mxu1 %v1054_v23  ;;  %1502 = vmatprep.subr.mxu0 %v1037_v24 }
  0x90   :  { %1546 = vmatprep.subr.mxu1 %v1553_v38  ;;  %1503 = vmatpush3.msra.mxu0 %v1037_v24 }
  0x91   :  { %1504 = vmatprep.mubr.f32.mxu0 %v1029_v25  ;;  %1547 = vmatpush3.msra.mxu1 %v1053_v26 }
  0x92   :  { %1548 = vmatprep.mubr.msk.f32.mxu1 %vm1554_vm0, %v1553_v38  ;;  %1505 = vmatmul.mubr.f32.vlgmr.msra.gmra.mxu0 %v1030_v27  ;;  %v1035_v38 = vld [vmem:[%s2176_s0 + $0xf0] sm:$0xff] }
  0x93   :  { %1549 = vmatmul.mubr.f32.vlgmr.msra.gmra.mxu1 %v1036_v28  ;;  %1507 = vmatprep.mubr.f32.mxu0 %v1031_v29 }
  0x96   :  { %1508 = vmatmul.mubr.f32.gmra.mxu0 %v1032_v30 }
  0x97   :  { %1510 = vmatprep.mubr.f32.mxu0 %v1033_v31 }
  0x9a   :  { %1511 = vmatmul.mubr.f32.gmra.mxu0 %v1034_v32 }
  0x9b   :  { %1513 = vmatprep.mubr.f32.mxu0 %v1035_v38 }
  0x9e   :  { %1514 = vmatmul.mubr.f32.gmra.mxu0 %v1036_v28 }
  0xe3   :  { %v1269_v33 = vpop.f32.mrf.mxu0 }
  0xe4   :  { %v1313_v34 = vpop.f32.mrf.mxu1 }
  0xe5   :  { %v265_v35 = vadd.f32 %v1313_v34, %v1269_v33  ;;  %v154_v36 = vpop.f32.mrf.mxu0 }
  0xe6   :  { %v259_v37 = vpop.f32.mrf.mxu1 }
  0xe7   :  { %v260_v39 = vadd.f32 %v259_v37, %v154_v36 }
  0xf8   :  { %v1272_v40 = vpop.f32.mrf.mxu0 }
  0xf9   :  { %v1316_v41 = vpop.f32.mrf.mxu1 }
  0xfa   :  { %v275_v42 = vadd.f32 %v1316_v41, %v1272_v40  ;;  %v164_v43 = vpop.f32.mrf.mxu0 }
  0xfb   :  { %v269_v44 = vpop.f32.mrf.mxu1 }
  0xfc   :  { %v270_v45 = vadd.f32 %v269_v44, %v164_v43 }
  0xfe   :  { %v1275_v46 = vpop.f32.mrf.mxu0 }
  0xff   :  { %v1319_v47 = vpop.f32.mrf.mxu1 }
 0x100   :  { %v285_v48 = vadd.f32 %v1319_v47, %v1275_v46  ;;  %v174_v49 = vpop.f32.mrf.mxu0 }
 0x101   :  { %v279_v50 = vpop.f32.mrf.mxu1 }
 0x102   :  { %v280_v51 = vadd.f32 %v279_v50, %v174_v49 }
 0x104   :  { %v1278_v52 = vpop.f32.mrf.mxu0 }
 0x105   :  { %v1322_v53 = vpop.f32.mrf.mxu1 }
 0x106   :  { %v295_v54 = vadd.f32 %v1322_v53, %v1278_v52  ;;  %v184_v55 = vpop.f32.mrf.mxu0 }
 0x107   :  { %v289_v56 = vpop.f32.mrf.mxu1 }
 0x108   :  { %v290_v57 = vadd.f32 %v289_v56, %v184_v55 }
 0x10b   :  { %v381_v58 = vpop.f32.mrf.mxu0 }
 0x10d   :  { %v451_v59 = vpop.f32.mrf.mxu1  ;;  %v1357_v60 = vpop.f32.mrf.mxu0 }
 0x10e   :  { %v452_v61 = vadd.f32 %v451_v59, %v381_v58 }
 0x10f   :  { %v1392_v62 = vpop.f32.mrf.mxu1 }
 0x12d   :  { %v1427_v1 = vpop.f32.mrf.mxu0 }
 0x12e   :  { %v677_v63 = vpop.f32.mrf.mxu1  ;;  %v587_v9 = vadd.f32 %v1427_v1, %v265_v35 }
 0x12f   :  { %v547_v2 = vpop.f32.mrf.mxu0  ;;  %v681_v10 = vadd.f32 %v677_v63, %v452_v61 }
 0x130   :  { %v1471_v0 = vpop.f32.mrf.mxu1  ;;  %v586_v15 = vadd.f32 %v547_v2, %v260_v39 }
 0x133   :  { %v1430_v3 = vpop.f32.mrf.mxu0 }
 0x134   :  { %v589_v20 = vadd.f32 %v1430_v3, %v275_v42 }
 0x135   :  { %v557_v4 = vpop.f32.mrf.mxu0 }
 0x136   :  { %v588_v25 = vadd.f32 %v557_v4, %v270_v45 }
 0x138   :  { %v1433_v5 = vpop.f32.mrf.mxu0 }
 0x139   :  { %v591_v29 = vadd.f32 %v1433_v5, %v285_v48 }
 0x13a   :  { %v567_v6 = vpop.f32.mrf.mxu0 }
 0x13b   :  { %v590_v38 = vadd.f32 %v567_v6, %v280_v51 }
 0x13d   :  { %v1436_v7 = vpop.f32.mrf.mxu0 }
 0x13e   :  { %v593_v36 = vadd.f32 %v1436_v7, %v295_v54 }
 0x13f   :  { %v577_v8 = vpop.f32.mrf.mxu0 }
 0x140   :  { %v592_v41 = vadd.f32 %v577_v8, %v290_v57 }
 0x152   :  { %v1506_v11 = vpop.f32.mrf.mxu0 }
 0x153   :  { %v904_v13 = vpop.f32.mrf.mxu1  ;;  %v814_v16 = vadd.f32 %v1506_v11, %v587_v9 }
 0x154   :  { %v908_v17 = vadd.f32 %v904_v13, %v681_v10  ;;  %v774_v18 = vpop.f32.mrf.mxu0 }
 0x155   :  { %v1550_v19 = vpop.f32.mrf.mxu1  ;;  %v917_v21 = vadd.f32 %v1069_v12, %v814_v16  ;;  %v813_v23 = vadd.f32 %v774_v18, %v586_v15 }
 0x156   :  { %v939_v22 = vadd.f32 %v1070_v14, %v908_v17  ;;  %v1509_v24 = vpop.f32.mrf.mxu0 }
 0x157   :  { %925 = vst [vmem:[%s2180_s6 + $0x8] sm:$0xff] %v917_v21  ;;  %v916_v26 = vadd.f32 %v1069_v12, %v813_v23  ;;  %v816_v27 = vadd.f32 %v1509_v24, %v589_v20 }
 0x158   :  { %940 = vst [vmem:[%s2181_s5] sm:$0xff] %v939_v22  ;;  %v784_v28 = vpop.f32.mrf.mxu0 }
 0x159   :  { %924 = vst [vmem:[%s2180_s6] sm:$0xff] %v916_v26  ;;  %v919_v30 = vadd.f32 %v1069_v12, %v816_v27  ;;  %v815_v31 = vadd.f32 %v784_v28, %v588_v25 }
 0x15a   :  { %v1512_v32 = vpop.f32.mrf.mxu0 }
 0x15b   :  { %927 = vst [vmem:[%s2180_s6 + $0x18] sm:$0xff] %v919_v30  ;;  %v918_v33 = vadd.f32 %v1069_v12, %v815_v31  ;;  %v818_v34 = vadd.f32 %v1512_v32, %v591_v29 }
 0x15c   :  { %v794_v35 = vpop.f32.mrf.mxu0 }
 0x15d   :  { %926 = vst [vmem:[%s2180_s6 + $0x10] sm:$0xff] %v918_v33  ;;  %v921_v37 = vadd.f32 %v1069_v12, %v818_v34  ;;  %v817_v39 = vadd.f32 %v794_v35, %v590_v38 }
 0x15e   :  { %v1515_v40 = vpop.f32.mrf.mxu0 }
 0x15f   :  { %929 = vst [vmem:[%s2180_s6 + $0x28] sm:$0xff] %v921_v37  ;;  %v920_v42 = vadd.f32 %v1069_v12, %v817_v39  ;;  %v820_v43 = vadd.f32 %v1515_v40, %v593_v36 }
 0x160   :  { %v804_v44 = vpop.f32.mrf.mxu0 }
 0x161   :  { %928 = vst [vmem:[%s2180_s6 + $0x20] sm:$0xff] %v920_v42  ;;  %v923_v45 = vadd.f32 %v1069_v12, %v820_v43  ;;  %v819_v46 = vadd.f32 %v804_v44, %v592_v41 }
 0x163   :  { %931 = vst [vmem:[%s2180_s6 + $0x38] sm:$0xff] %v923_v45  ;;  %v922_v47 = vadd.f32 %v1069_v12, %v819_v46 }
 0x165   :  { %930 = vst [vmem:[%s2180_s6 + $0x30] sm:$0xff] %v922_v47 }

// kernel: async_model_forward.2
= control target key start
LH: loop header
LB: loop body
LE: loop exit
PB: predicated region body
PF: predicated region fallthrough
CT: control target
= control target key end

     0   :  { %9 = vsyncpa [#allocation6], 0  ;;  %s4496_s0 = inlined_call_operand.vmem [shape: f32[64,64], index: 0, kind: input, shape index: {}]   ;;  %s4497_s1 = inlined_call_operand.hbm [shape: f32[4,64,512], index: 1, kind: input, shape index: {}]   ;;  %s4498_s2 = inlined_call_operand.hbm [shape: f32[4,128,512], index: 2, kind: input, shape index: {}]   ;;  %s4499_s3 = inlined_call_operand.vmem [shape: f32[4,1,512], index: 3, kind: input, shape index: {}]   ;;  %s4500_s4 = inlined_call_operand.vmem [shape: f32[4,64,128], index: 4, kind: output, shape index: {}]  }
   0x1   :  { %11 = vsyncpa [#allocation6 + $0x1], 0 }
   0x2   :  { %12 = vsyncpa [#allocation8], 0 }
   0x3   :  { %14 = vsyncpa [#allocation8 + $0x1], 0  ;;  %s3173_s15 = smov 0   ;;  %s3175_s16 = smov 0  }
   0x4   :  { %s3177_s17 = smov 0   ;;  %s3179_s18 = smov 0  }
   0x5 LB: > { %s3192_s19 = sadd.s32 4294967295, %s3141_s18   ;;  %s3195_s20 = sadd.s32 1, %s3141_s18   ;;  %s3141_s18 = sphi %s3179_s18, %s4683_s18   ;;  %s3137_s17 = sphi %s3177_s17, %s4682_s17   ;;  %s3133_s16 = sphi %s3175_s16, %s4681_s16   ;;  %s3129_s15 = sphi %s3173_s15, %s4680_s15  }
   0x6   : > { %s45_s21 = ssub.s32 %s3141_s18, %s3195_s20  ;;  %s48_s22 = sadd.s32 1, %s3137_s17 }
   0x7   : > { %p46_p0 = scmp.eq.s32.totalorder %s45_s21, 0  ;;  %p55_p1 = scmp.ne.s32.totalorder %s3137_s17, %s3133_s16 }
   0x8   : > { %p56_p2 = scmp.eq.s32.totalorder %s3141_s18, 0  ;;  %p61_p3 = scmp.ne.s32.totalorder %s3133_s16, %s3129_s15 }
   0x9   : > { %s3205_s23 = scalar_select %p46_p0, %s3137_s17, %s48_s22  }
   0xa   : > { %p57_p4 = por %p56_p2, %p55_p1  ;;  %p62_p5 = scmp.eq.s32.totalorder %s3192_s19, 0 }
   0xb   : > { %p2883_p6 = scmp.lt.s32.totalorder %s3141_s18, 4  ;;  %s3214_s25 = sand.u32 1, %s3137_s17  }
   0xc   : > { %p3209_p7 = por %p62_p5, %p61_p3  ;;  %s2780_s26 = sshll.u32 %s3214_s25, 8 }
   0xd   : > { %s2861_s27 = sshll.u32 %s3141_s18, 12  ;;  %s170_s5 = scalar_lea.vmem [#allocation5], %s2780_s26 }
   0xe   : > { %s4563_s24 = scalar_select %p3209_p7, 1, 0 }
   0xf   : > { %s3221_s30 = scalar_lea.hbm %s4497_s1, %s2861_s27  ;;  %s177_s6 = sshll.u32 %s170_s5, 4  ;;  %s3223_s6 = int_to_ptr.vmem [resolvable:$true] %s177_s6 }
  0x10   : > { %p3225_p8 = pnand %p2883_p6, %p57_p4  ;;  %s167_s8 = scalar_lea.sflag [#allocation6], %s3214_s25 }
  0x11   : > { %s3047_s9 = scalar_lea.hbm %s3221_s30, 4096  ;;  %s3052_s12 = scalar_lea.hbm %s4497_s1, 16384 }
  0x12   : > { %p3048_p10 = scmp.ne.s32.totalorder %s3221_s30, %s3047_s9  ;;  %p3049_p11 = pneg %p3225_p8 }
  0x13   : > { %p3053_p0 = scmp.lt.s32.totalorder %s3221_s30, %s4497_s1  ;;  %p3054_p1 = scmp.lt.s32.totalorder %s3052_s12, %s3047_s9 }
  0x14   : > { %p3050_p12 = pnand %p3049_p11, %p3048_p10 }
  0x15   : > { %p3055_p2 = por %p3054_p1, %p3053_p0 }
  0x16   : > { %p3051_p13 = pneg %p3050_p12 }
  0x18   : > { %p3056_p3 = pnand %p3055_p2, %p3051_p13 }
  0x1a   : > { %3059 = shalt.err (!%p3056_p3)
}
  0x1b   : > { %s3060_s15 = scalar_lea.vmem %s3223_s6, 4096  ;;  %s3143_s21 = smov [#allocation5]  }
  0x1c   : > { %p3061_p4 = scmp.ne.s32.totalorder %s3223_s6, %s3060_s15  ;;  %s3065_s22 = sshll.u32 %s3143_s21, 4  ;;  %s3066_s22 = int_to_ptr.vmem [resolvable:$false] %s3065_s22 }
  0x1d   : > { %s3067_s26 = scalar_lea.vmem %s3066_s22, 8192  ;;  %p3068_p10 = scmp.lt.s32.totalorder %s3223_s6, %s3066_s22 }
  0x1e   : > { %p3063_p5 = pnand %p3061_p4, %p3049_p11  ;;  %p3069_p12 = scmp.lt.s32.totalorder %s3067_s26, %s3060_s15 }
  0x20   : > { %p3064_p6 = pneg %p3063_p5  ;;  %p3070_p9 = por %p3069_p12, %p3068_p10 }
  0x22   : > { %p3071_p0 = pnand %p3070_p9, %p3064_p6 }
  0x24   : > { %3074 = shalt.err (!%p3071_p0)
}
  0x25   : > { %s3144_s27 = smov 512   ;;  %s3145_s28 = smov 32  }
  0x26   : > { %2879 = dma.hbm_to_vmem [thread:$0]  (!%p3225_p8), %s3221_s30, 4096, %s3223_s6, %s167_s8, %s3144_s27, %s3144_s27, %s3145_s28  }
  0x27   : > { %p213_p9 = scmp.lt.s32.totalorder %s3141_s18, 5  ;;  %s2783_s29 = sshll.u32 %s3214_s25, 9 }
  0x28   : > { %s2862_s5 = sshll.u32 %s3141_s18, 13  ;;  %p4565_p13 = scmp.ge.s32.totalorder %s3141_s18, 1 }
  0x29   : > { %s3272_s12 = scalar_lea.hbm %s4498_s2, %s2862_s5  ;;  %s191_s13 = scalar_lea.vmem [#allocation7], %s2783_s29 }
  0x2a   : > { %p3265_p1 = pnand %p4565_p13, %p213_p9  ;;  %s198_s14 = sshll.u32 %s191_s13, 4  ;;  %s3274_s14 = int_to_ptr.vmem [resolvable:$true] %s198_s14 }
  0x2b   : > { %s188_s30 = scalar_lea.sflag [#allocation8], %s3214_s25  ;;  %s3075_s6 = scalar_lea.hbm %s3272_s12, 8192 }
  0x2c   : > { %p3076_p2 = scmp.ne.s32.totalorder %s3272_s12, %s3075_s6  ;;  %s3080_s15 = scalar_lea.hbm %s4498_s2, 32768 }
  0x2d   : > { %p3081_p5 = scmp.lt.s32.totalorder %s3272_s12, %s4498_s2  ;;  %p3082_p6 = scmp.lt.s32.totalorder %s3080_s15, %s3075_s6 }
  0x2e   : > { %p3078_p3 = pnand %p3076_p2, %p3049_p11 }
  0x2f   : > { %p3083_p10 = por %p3082_p6, %p3081_p5 }
  0x30   : > { %p3079_p4 = pneg %p3078_p3 }
  0x32   : > { %p3084_p12 = pnand %p3083_p10, %p3079_p4 }
  0x34   : > { %3087 = shalt.err (!%p3084_p12)
}
  0x35   : > { %s3088_s25 = scalar_lea.vmem %s3274_s14, 8192  ;;  %s3146_s26 = smov [#allocation7]  }
  0x36   : > { %p3089_p0 = scmp.ne.s32.totalorder %s3274_s14, %s3088_s25  ;;  %s3093_s29 = sshll.u32 %s3146_s26, 4  ;;  %s3094_s29 = int_to_ptr.vmem [resolvable:$false] %s3093_s29 }
  0x37   : > { %s3095_s5 = scalar_lea.vmem %s3094_s29, 16384  ;;  %p3096_p2 = scmp.lt.s32.totalorder %s3274_s14, %s3094_s29 }
  0x38   : > { %p3091_p9 = pnand %p3089_p0, %p3049_p11  ;;  %p3097_p3 = scmp.lt.s32.totalorder %s3095_s5, %s3088_s25 }
  0x3a   : > { %p3092_p13 = pneg %p3091_p9  ;;  %p3098_p7 = por %p3097_p3, %p3096_p2 }
  0x3c   : > { %p3099_p5 = pnand %p3098_p7, %p3092_p13 }
  0x3e   : > { %3102 = shalt.err (!%p3099_p5)
}
  0x3f   : > { %2882 = dma.hbm_to_vmem [thread:$0]  (!%p3225_p8), %s3272_s12, 8192, %s3274_s14, %s188_s30, %s3144_s27, %s3144_s27, %s3145_s28  }
  0x40   : > { %217 = sbr.rel (%p3265_p1) target bundleno = 2136 (0x858), region = 36 }
  0x45   : > { %s219_s10 = sand.u32 1, %s3133_s16   ;;  %p4567_p7 = scmp.ne.s32.totalorder %s4563_s24, 0 }
  0x46   : > { %s2787_s11 = sshll.u32 %s219_s10, 8  ;;  %s220_s13 = scalar_lea.sflag [#allocation6], %s219_s10 }
  0x47   : > { %s3305_s6 = scalar_lea.vmem [#allocation5], %s2787_s11 }
  0x48   : > { %3120 = dma.done.wait (%p4567_p7), %s220_s13, 4096  }
  0x49   : > { %3122 = vsyncadd (%p4567_p7), %s220_s13, 4294963200  ;;  %s2788_s7 = sshll.u32 %s219_s10, 9  ;;  %s229_s18 = scalar_lea.sflag [#allocation8], %s219_s10 }
  0x4a   : > { %s3311_s8 = scalar_lea.vmem [#allocation7], %s2788_s7 }
  0x4b   : > { %3124 = dma.done.wait (%p4567_p7), %s229_s18, 8192  }
  0x4c   : > { %3126 = vsyncadd (%p4567_p7), %s229_s18, 4294959104  ;;  %v4504_v0 = vmov 0.0   ;;  %v325_v1 = vld [vmem:[%s3305_s6 + $0xe8] sm:$0xff]  ;;  %v327_v2 = vld [vmem:[%s3305_s6 + $0xf8] sm:$0xff]  ;;  %vm350_vm0 = vcmask 523264   ;;  %p266_p8 = scmp.lt.s32.totalorder %s3192_s19, 3 }
  0x4d   : > { %439 = vmatprep.mubr.f32.mxu0 %v4504_v0  ;;  %552 = vmatprep.mubr.f32.mxu1 %v4504_v0  ;;  %v324_v3 = vld [vmem:[%s3305_s6 + $0xe0] sm:$0xff]  ;;  %v326_v4 = vld [vmem:[%s3305_s6 + $0xf0] sm:$0xff]  ;;  %v321_v5 = vld [vmem:[%s3305_s6 + $0xc8] sm:$0xff]  ;;  %s276_s27 = ssub.s32 0, %s3192_s19  ;;  %p275_p11 = scmp.lt.s32.totalorder %s3192_s19, 0 }
  0x4e   : > { %391 = vmatprep.subr.mxu0 %v325_v1  ;;  %504 = vmatprep.subr.mxu1 %v327_v2  ;;  %v323_v6 = vld [vmem:[%s3305_s6 + $0xd8] sm:$0xff]  ;;  %v320_v7 = vld [vmem:[%s3305_s6 + $0xc0] sm:$0xff]  ;;  %v322_v8 = vld [vmem:[%s3305_s6 + $0xd0] sm:$0xff]  ;;  %s3735_s13 = scalar_select %p266_p8, %s3192_s19, 3 }
  0x4f   : > { %392 = vmatpush1.msra.mxu0 %v324_v3  ;;  %505 = vmatpush1.msra.mxu1 %v326_v4  ;;  %v317_v9 = vld [vmem:[%s3305_s6 + $0xa8] sm:$0xff]  ;;  %v319_v10 = vld [vmem:[%s3305_s6 + $0xb8] sm:$0xff]  ;;  %v316_v11 = vld [vmem:[%s3305_s6 + $0xa0] sm:$0xff]  ;;  %s2792_s28 = smin.u32 %s3192_s19, %s276_s27 }
  0x50   : > { %393 = vmatprep.subr.mxu0 %v321_v5  ;;  %506 = vmatprep.subr.mxu1 %v323_v6  ;;  %v318_v12 = vld [vmem:[%s3305_s6 + $0xb0] sm:$0xff]  ;;  %v313_v13 = vld [vmem:[%s3305_s6 + $0x88] sm:$0xff]  ;;  %v315_v14 = vld [vmem:[%s3305_s6 + $0x98] sm:$0xff]  ;;  %s278_s9 = sand.u32 1, %s2792_s28   ;;  %s2863_s25 = sshll.u32 %s3735_s13, 6 }
  0x51   : > { %394 = vmatpush1.msra.mxu0 %v320_v7  ;;  %507 = vmatpush1.msra.mxu1 %v322_v8  ;;  %v312_v15 = vld [vmem:[%s3305_s6 + $0x80] sm:$0xff]  ;;  %v314_v16 = vld [vmem:[%s3305_s6 + $0x90] sm:$0xff]  ;;  %v309_v17 = vld [vmem:[%s3305_s6 + $0x68] sm:$0xff]  ;;  %s279_s12 = ssub.s32 0, %s278_s9  ;;  %s3801_s5 = scalar_lea.vmem %s4500_s4, %s2863_s25 }
  0x52   : > { %395 = vmatprep.subr.mxu0 %v317_v9  ;;  %508 = vmatprep.subr.mxu1 %v319_v10  ;;  %v311_v18 = vld [vmem:[%s3305_s6 + $0x78] sm:$0xff]  ;;  %v308_v19 = vld [vmem:[%s3305_s6 + $0x60] sm:$0xff]  ;;  %v310_v20 = vld [vmem:[%s3305_s6 + $0x70] sm:$0xff]  ;;  %s4685_s12 = smov (!%p275_p11, %s279_s12), %s278_s9 }
  0x53   : > { %396 = vmatpush1.msra.mxu0 %v316_v11  ;;  %509 = vmatpush1.msra.mxu1 %v318_v12  ;;  %v305_v21 = vld [vmem:[%s3305_s6 + $0x48] sm:$0xff]  ;;  %v307_v22 = vld [vmem:[%s3305_s6 + $0x58] sm:$0xff]  ;;  %v304_v23 = vld [vmem:[%s3305_s6 + $0x40] sm:$0xff]  ;;  %p2794_p1 = scmp.lt.s32.totalorder %s4685_s12, 0  ;;  %s285_s19 = sadd.s32 2, %s4685_s12 }
  0x54   : > { %397 = vmatprep.subr.mxu0 %v313_v13  ;;  %510 = vmatprep.subr.mxu1 %v315_v14  ;;  %v306_v24 = vld [vmem:[%s3305_s6 + $0x50] sm:$0xff]  ;;  %v301_v25 = vld [vmem:[%s3305_s6 + $0x28] sm:$0xff]  ;;  %v303_v26 = vld [vmem:[%s3305_s6 + $0x38] sm:$0xff] }
  0x55   : > { %398 = vmatpush1.msra.mxu0 %v312_v15  ;;  %511 = vmatpush1.msra.mxu1 %v314_v16  ;;  %v300_v27 = vld [vmem:[%s3305_s6 + $0x20] sm:$0xff]  ;;  %v302_v28 = vld [vmem:[%s3305_s6 + $0x30] sm:$0xff]  ;;  %v297_v29 = vld [vmem:[%s3305_s6 + $0x8] sm:$0xff]  ;;  %s4687_s19 = smov (!%p2794_p1, %s285_s19), %s4685_s12 }
  0x56   : > { %399 = vmatprep.subr.mxu0 %v309_v17  ;;  %512 = vmatprep.subr.mxu1 %v311_v18  ;;  %v299_v30 = vld [vmem:[%s3305_s6 + $0x18] sm:$0xff]  ;;  %v296_v31 = vld [vmem:[%s3305_s6] sm:$0xff]  ;;  %v298_v32 = vld [vmem:[%s3305_s6 + $0x10] sm:$0xff]  ;;  %s2789_s6 = sshll.u32 %s3735_s13, 2  ;;  %p287_p4 = scmp.eq.s32.totalorder %s4687_s19, 1 }
  0x57   : > { %400 = vmatpush1.msra.mxu0 %v308_v19  ;;  %513 = vmatpush1.msra.mxu1 %v310_v20  ;;  %v288_v33 = vld [vmem:[%s4496_s0] sm:$0xff]  ;;  %v3355_v34 = vld [vmem:[%s3311_s8 + $0x1e8] sm:$0xff]  ;;  %v3358_v35 = vld [vmem:[%s3311_s8 + $0x1f8] sm:$0xff]  ;;  %s269_s24 = scalar_lea.vmem %s4499_s3, %s2789_s6 }
  0x58   : > { %401 = vmatprep.subr.mxu0 %v305_v21  ;;  %514 = vmatprep.subr.mxu1 %v307_v22  ;;  %v3363_v36 = vld [vmem:[%s3311_s8 + $0x1e0] sm:$0xff]  ;;  %v3366_v37 = vld [vmem:[%s3311_s8 + $0x1f0] sm:$0xff]  ;;  %v289_v38 = vld [vmem:[%s4496_s0 + $0x8] sm:$0xff]  ;;  %s3781_s14 = scalar_select %p287_p4, 7, 0 }
  0x59   : > { %402 = vmatpush1.msra.mxu0 %v304_v23  ;;  %515 = vmatpush1.msra.mxu1 %v306_v24  ;;  %v3375_v39 = vld [vmem:[%s3311_s8 + $0x1c8] sm:$0xff]  ;;  %v3380_v40 = vld [vmem:[%s3311_s8 + $0x1c0] sm:$0xff]  ;;  %v3389_v42 = vld [vmem:[%s3311_s8 + $0x1d8] sm:$0xff]  ;;  %s3872_s11 = scalar_select %p287_p4, 6, 1 }
  0x5a   : > { %403 = vmatprep.subr.mxu0 %v301_v25  ;;  %516 = vmatprep.subr.mxu1 %v303_v26  ;;  %v3386_v41 = vld [vmem:[%s3311_s8 + $0x1a8] sm:$0xff]  ;;  %v290_v43 = vld [vmem:[%s4496_s0 + $0x10] sm:$0xff]  ;;  %v3399_v44 = vld [vmem:[%s3311_s8 + $0x1a0] sm:$0xff]  ;;  %s2811_s30 = sshll.u32 %s3781_s14, 3 }
  0x5b   : > { %404 = vmatpush1.msra.mxu0 %v300_v27  ;;  %517 = vmatpush1.msra.mxu1 %v302_v28  ;;  %v3402_v45 = vld [vmem:[%s3311_s8 + $0x1d0] sm:$0xff]  ;;  %v3407_v46 = vld [vmem:[%s3311_s8 + $0x188] sm:$0xff]  ;;  %v3410_v47 = vld [vmem:[%s3311_s8 + $0x1b8] sm:$0xff]  ;;  %s637_s15 = sshra.s32 %s2811_s30, 3  ;;  %s884_s10 = scalar_lea.vmem %s3801_s5, %s2811_s30 }
  0x5c   : > { %405 = vmatprep.subr.mxu0 %v297_v29  ;;  %518 = vmatprep.subr.mxu1 %v299_v30  ;;  %v3417_v48 = vld [vmem:[%s3311_s8 + $0x180] sm:$0xff]  ;;  %v3420_v49 = vld [vmem:[%s3311_s8 + $0x1b0] sm:$0xff]  ;;  %v291_v50 = vld [vmem:[%s4496_s0 + $0x18] sm:$0xff]  ;;  %s2864_s21 = sshll.u32 %s637_s15, 5  ;;  %s2817_s13 = sshll.u32 %s3872_s11, 3 }
  0x5d   : > { %406 = vmatpush1.msra.mxu0 %v296_v31  ;;  %519 = vmatpush1.msra.mxu1 %v298_v32  ;;  %v3430_v51 = vld [vmem:[%s3311_s8 + $0x168] sm:$0xff]  ;;  %v3433_v52 = vld [vmem:[%s3311_s8 + $0x198] sm:$0xff]  ;;  %v3438_v53 = vld [vmem:[%s3311_s8 + $0x160] sm:$0xff]  ;;  %s641_s22 = scalar_lea.vmem [#allocation2], %s2864_s21  ;;  %s888_s6 = sshra.s32 %s2817_s13, 3 }
  0x5e   : > { %2795 = vmatmul.mubr.msk.f32.vlgmr.msra.gmra.mxu0 %vm350_vm0, %v288_v33  ;;  %2803 = vmatmul.mubr.msk.f32.vlgmr.msra.gmra.mxu1 %vm350_vm0, %v288_v33  ;;  %v3441_v54 = vld [vmem:[%s3311_s8 + $0x190] sm:$0xff]  ;;  %v3446_v55 = vld [vmem:[%s3311_s8 + $0x148] sm:$0xff]  ;;  %v3449_v56 = vld [vmem:[%s3311_s8 + $0x178] sm:$0xff]  ;;  %s2865_s7 = sshll.u32 %s888_s6, 5 }
  0x5f   : > { %445 = vmatprep.mubr.f32.mxu0 %v4504_v0  ;;  %558 = vmatprep.mubr.f32.mxu1 %v4504_v0  ;;  %v3456_v57 = vld [vmem:[%s3311_s8 + $0x140] sm:$0xff]  ;;  %v3459_v58 = vld [vmem:[%s3311_s8 + $0x170] sm:$0xff]  ;;  %v3469_v60 = vld [vmem:[%s3311_s8 + $0x128] sm:$0xff]  ;;  %s892_s18 = scalar_lea.vmem [#allocation2], %s2865_s7 }
  0x60   : > { %711 = vmatprep.subr.mxu0 %v3355_v34  ;;  %782 = vmatprep.subr.mxu1 %v3358_v35  ;;  %v292_v59 = vld [vmem:[%s4496_s0 + $0x20] sm:$0xff]  ;;  %v3472_v61 = vld [vmem:[%s3311_s8 + $0x158] sm:$0xff]  ;;  %v3480_v63 = vld [vmem:[%s3311_s8 + $0x150] sm:$0xff]  ;;  %s4146_s27 = scalar_select %p287_p4, 5, 2 }
  0x61   : > { %712 = vmatpush1.msra.mxu0 %v3363_v36  ;;  %783 = vmatpush1.msra.mxu1 %v3366_v37  ;;  %v3477_v62 = vld [vmem:[%s3311_s8 + $0x120] sm:$0xff]  ;;  %v3485_v1 = vld [vmem:[%s3311_s8 + $0x108] sm:$0xff]  ;;  %v3488_v2 = vld [vmem:[%s3311_s8 + $0x138] sm:$0xff]  ;;  %s4226_s15 = scalar_select %p287_p4, 4, 3 }
  0x62   : > { %2796 = vmatmul.mubr.msk.f32.gmra.mxu0 %vm350_vm0, %v289_v38  ;;  %2804 = vmatmul.mubr.msk.f32.gmra.mxu1 %vm350_vm0, %v289_v38  ;;  %v3495_v3 = vld [vmem:[%s3311_s8 + $0x100] sm:$0xff]  ;;  %v3498_v4 = vld [vmem:[%s3311_s8 + $0x130] sm:$0xff]  ;;  %v293_v5 = vld [vmem:[%s4496_s0 + $0x28] sm:$0xff]  ;;  %s2823_s28 = sshll.u32 %s4146_s27, 3 }
  0x63   : > { %713 = vmatprep.subr.mxu0 %v3375_v39  ;;  %451 = vmatprep.mubr.f32.mxu0 %v4504_v0  ;;  %v3508_v6 = vld [vmem:[%s3311_s8 + $0xe8] sm:$0xff]  ;;  %v3511_v7 = vld [vmem:[%s3311_s8 + $0x118] sm:$0xff]  ;;  %v3516_v8 = vld [vmem:[%s3311_s8 + $0xe0] sm:$0xff]  ;;  %s1139_s9 = sshra.s32 %s2823_s28, 3  ;;  %s1386_s30 = scalar_lea.vmem %s3801_s5, %s2823_s28 }
  0x64   : > { %564 = vmatprep.mubr.f32.mxu1 %v4504_v0  ;;  %714 = vmatpush1.msra.mxu0 %v3380_v40  ;;  %v3519_v9 = vld [vmem:[%s3311_s8 + $0x110] sm:$0xff]  ;;  %v3524_v10 = vld [vmem:[%s3311_s8 + $0xc8] sm:$0xff]  ;;  %v3527_v11 = vld [vmem:[%s3311_s8 + $0xf8] sm:$0xff]  ;;  %s2866_s12 = sshll.u32 %s1139_s9, 5  ;;  %s2829_s21 = sshll.u32 %s4226_s15, 3 }
  0x65   : > { %715 = vmatprep.subr.mxu0 %v3386_v41  ;;  %784 = vmatprep.subr.mxu1 %v3389_v42  ;;  %v3534_v12 = vld [vmem:[%s3311_s8 + $0xc0] sm:$0xff]  ;;  %v3537_v13 = vld [vmem:[%s3311_s8 + $0xf0] sm:$0xff]  ;;  %v3547_v15 = vld [vmem:[%s3311_s8 + $0xa8] sm:$0xff]  ;;  %s1143_s14 = scalar_lea.vmem [#allocation2], %s2866_s12  ;;  %s1637_s29 = scalar_lea.vmem %s3801_s5, %s2829_s21 }
  0x66   : > { %2797 = vmatmul.mubr.msk.f32.gmra.mxu0 %vm350_vm0, %v290_v43  ;;  %2805 = vmatmul.mubr.msk.f32.gmra.mxu1 %vm350_vm0, %v290_v43  ;;  %v294_v14 = vld [vmem:[%s4496_s0 + $0x30] sm:$0xff]  ;;  %v3550_v16 = vld [vmem:[%s3311_s8 + $0xd8] sm:$0xff]  ;;  %v3555_v17 = vld [vmem:[%s3311_s8 + $0xa0] sm:$0xff] }
  0x67   : > { %716 = vmatpush1.msra.mxu0 %v3399_v44  ;;  %785 = vmatpush1.msra.mxu1 %v3402_v45  ;;  %v3558_v18 = vld [vmem:[%s3311_s8 + $0xd0] sm:$0xff]  ;;  %v3563_v19 = vld [vmem:[%s3311_s8 + $0x88] sm:$0xff]  ;;  %v3566_v20 = vld [vmem:[%s3311_s8 + $0xb8] sm:$0xff] }
  0x68   : > { %717 = vmatprep.subr.mxu0 %v3407_v46  ;;  %786 = vmatprep.subr.mxu1 %v3410_v47  ;;  %v3573_v21 = vld [vmem:[%s3311_s8 + $0x80] sm:$0xff]  ;;  %v3576_v22 = vld [vmem:[%s3311_s8 + $0xb0] sm:$0xff]  ;;  %v295_v23 = vld [vmem:[%s4496_s0 + $0x38] sm:$0xff] }
  0x69   : > { %457 = vmatprep.mubr.f32.mxu0 %v4504_v0  ;;  %570 = vmatprep.mubr.f32.mxu1 %v4504_v0  ;;  %v3586_v24 = vld [vmem:[%s3311_s8 + $0x68] sm:$0xff]  ;;  %v3589_v25 = vld [vmem:[%s3311_s8 + $0x98] sm:$0xff]  ;;  %v3594_v26 = vld [vmem:[%s3311_s8 + $0x60] sm:$0xff] }
  0x6a   : > { %718 = vmatpush1.msra.mxu0 %v3417_v48  ;;  %787 = vmatpush1.msra.mxu1 %v3420_v49  ;;  %4568 = vst [vmem:[#allocation11_spill] sm:$0xff] %v3586_v24  ;;  %4569 = vst [vmem:[#allocation12_spill] sm:$0xff] %v3594_v26  ;;  %v3597_v27 = vld [vmem:[%s3311_s8 + $0x90] sm:$0xff]  ;;  %v3602_v28 = vld [vmem:[%s3311_s8 + $0x48] sm:$0xff] }
  0x6b   : > { %2798 = vmatmul.mubr.msk.f32.gmra.mxu0 %vm350_vm0, %v291_v50  ;;  %2806 = vmatmul.mubr.msk.f32.gmra.mxu1 %vm350_vm0, %v291_v50  ;;  %4570 = vst [vmem:[#allocation13_spill] sm:$0xff] %v3602_v28  ;;  %v3605_v29 = vld [vmem:[%s3311_s8 + $0x78] sm:$0xff]  ;;  %v3610_v30 = vld [vmem:[%s3311_s8 + $0x40] sm:$0xff]  ;;  %v3613_v31 = vld [vmem:[%s3311_s8 + $0x70] sm:$0xff] }
  0x6c   : > { %719 = vmatprep.subr.mxu0 %v3430_v51  ;;  %788 = vmatprep.subr.mxu1 %v3433_v52  ;;  %4571 = vst [vmem:[#allocation14_spill] sm:$0xff] %v3605_v29  ;;  %4572 = vst [vmem:[#allocation15_spill] sm:$0xff] %v3610_v30  ;;  %v3618_v32 = vld [vmem:[%s3311_s8 + $0x28] sm:$0xff]  ;;  %v3621_v33 = vld [vmem:[%s3311_s8 + $0x58] sm:$0xff] }
  0x6d   : > { %720 = vmatpush1.msra.mxu0 %v3438_v53  ;;  %789 = vmatpush1.msra.mxu1 %v3441_v54  ;;  %4573 = vst [vmem:[#allocation16_spill] sm:$0xff] %v3613_v31  ;;  %4574 = vst [vmem:[#allocation17_spill] sm:$0xff] %v3618_v32  ;;  %v3626_v38 = vld [vmem:[%s3311_s8 + $0x20] sm:$0xff]  ;;  %v3629_v43 = vld [vmem:[%s3311_s8 + $0x50] sm:$0xff] }
  0x6e   : > { %721 = vmatprep.subr.mxu0 %v3446_v55  ;;  %790 = vmatprep.subr.mxu1 %v3449_v56  ;;  %4575 = vst [vmem:[#allocation18_spill] sm:$0xff] %v3621_v33  ;;  %4576 = vst [vmem:[#allocation19_spill] sm:$0xff] %v3626_v38  ;;  %v3634_v50 = vld [vmem:[%s3311_s8 + $0x8] sm:$0xff] }
  0x6f   : > { %463 = vmatprep.mubr.f32.mxu0 %v4504_v0  ;;  %576 = vmatprep.mubr.f32.mxu1 %v4504_v0  ;;  %4577 = vst [vmem:[#allocation20_spill] sm:$0xff] %v3629_v43  ;;  %4578 = vst [vmem:[#allocation21_spill] sm:$0xff] %v3634_v50 }
  0x70   : > { %722 = vmatpush1.msra.mxu0 %v3456_v57  ;;  %791 = vmatpush1.msra.mxu1 %v3459_v58 }
  0x71   : > { %2799 = vmatmul.mubr.msk.f32.gmra.mxu0 %vm350_vm0, %v292_v59  ;;  %2807 = vmatmul.mubr.msk.f32.gmra.mxu1 %vm350_vm0, %v292_v59  ;;  %v3637_v59 = vld [vmem:[%s3311_s8 + $0x38] sm:$0xff] }
  0x72   : > { %723 = vmatprep.subr.mxu0 %v3469_v60  ;;  %792 = vmatprep.subr.mxu1 %v3472_v61  ;;  %4579 = vst [vmem:[#allocation22_spill] sm:$0xff] %v3637_v59 }
  0x73   : > { %724 = vmatpush1.msra.mxu0 %v3477_v62  ;;  %793 = vmatpush1.msra.mxu1 %v3480_v63 }
  0x74   : > { %725 = vmatprep.subr.mxu0 %v3485_v1  ;;  %794 = vmatprep.subr.mxu1 %v3488_v2 }
  0x75   : > { %469 = vmatprep.mubr.f32.mxu0 %v4504_v0  ;;  %582 = vmatprep.mubr.f32.mxu1 %v4504_v0 }
  0x76   : > { %726 = vmatpush1.msra.mxu0 %v3495_v3  ;;  %795 = vmatpush1.msra.mxu1 %v3498_v4 }
  0x77   : > { %2800 = vmatmul.mubr.msk.f32.gmra.mxu0 %vm350_vm0, %v293_v5  ;;  %2808 = vmatmul.mubr.msk.f32.gmra.mxu1 %vm350_vm0, %v293_v5  ;;  %v3642_v5 = vld [vmem:[%s3311_s8] sm:$0xff] }
  0x78   : > { %727 = vmatprep.subr.mxu0 %v3508_v6  ;;  %796 = vmatprep.subr.mxu1 %v3511_v7  ;;  %4580 = vst [vmem:[#allocation23_spill] sm:$0xff] %v3642_v5 }
  0x79   : > { %728 = vmatpush1.msra.mxu0 %v3516_v8  ;;  %797 = vmatpush1.msra.mxu1 %v3519_v9 }
  0x7a   : > { %729 = vmatprep.subr.mxu0 %v3524_v10  ;;  %798 = vmatprep.subr.mxu1 %v3527_v11 }
  0x7b   : > { %475 = vmatprep.mubr.f32.mxu0 %v4504_v0  ;;  %588 = vmatprep.mubr.f32.mxu1 %v4504_v0 }
  0x7c   : > { %730 = vmatpush1.msra.mxu0 %v3534_v12  ;;  %799 = vmatpush1.msra.mxu1 %v3537_v13 }
  0x7d   : > { %2801 = vmatmul.mubr.msk.f32.gmra.mxu0 %vm350_vm0, %v294_v14  ;;  %2809 = vmatmul.mubr.msk.f32.gmra.mxu1 %vm350_vm0, %v294_v14  ;;  %v3647_v14 = vld [vmem:[%s3311_s8 + $0x30] sm:$0xff] }
  0x7e   : > { %731 = vmatprep.subr.mxu0 %v3547_v15  ;;  %800 = vmatprep.subr.mxu1 %v3550_v16  ;;  %4581 = vst [vmem:[#allocation24_spill] sm:$0xff] %v3647_v14 }
  0x7f   : > { %732 = vmatpush1.msra.mxu0 %v3555_v17  ;;  %801 = vmatpush1.msra.mxu1 %v3558_v18 }
  0x80   : > { %733 = vmatprep.subr.mxu0 %v3563_v19  ;;  %802 = vmatprep.subr.mxu1 %v3566_v20 }
  0x81   : > { %481 = vmatprep.mubr.f32.mxu0 %v4504_v0  ;;  %594 = vmatprep.mubr.f32.mxu1 %v4504_v0 }
  0x82   : > { %734 = vmatpush1.msra.mxu0 %v3573_v21  ;;  %803 = vmatpush1.msra.mxu1 %v3576_v22 }
  0x83   : > { %2802 = vmatmul.mubr.msk.f32.gmra.mxu0 %vm350_vm0, %v295_v23  ;;  %2810 = vmatmul.mubr.msk.f32.gmra.mxu1 %vm350_vm0, %v295_v23  ;;  %v3652_v23 = vld [vmem:[%s3311_s8 + $0x18] sm:$0xff] }
  0x84   : > { %735 = vmatprep.subr.mxu0 %v3586_v24  ;;  %804 = vmatprep.subr.mxu1 %v3589_v25  ;;  %4582 = vst [vmem:[#allocation25_spill] sm:$0xff] %v3652_v23 }
  0x85   : > { %736 = vmatpush1.msra.mxu0 %v3594_v26  ;;  %805 = vmatpush1.msra.mxu1 %v3597_v27 }
  0x86   : > { %737 = vmatprep.subr.mxu0 %v3602_v28  ;;  %806 = vmatprep.subr.mxu1 %v3605_v29 }
  0x87   : > { %738 = vmatpush1.msra.mxu0 %v3610_v30  ;;  %807 = vmatpush1.msra.mxu1 %v3613_v31 }
  0x88   : > { %739 = vmatprep.subr.mxu0 %v3618_v32  ;;  %808 = vmatprep.subr.mxu1 %v3621_v33  ;;  %v3657_v32 = vld [vmem:[%s3311_s8 + $0x10] sm:$0xff] }
  0x89   : > { %740 = vmatpush1.msra.mxu0 %v3626_v38  ;;  %809 = vmatpush1.msra.mxu1 %v3629_v43  ;;  %4583 = vst [vmem:[#allocation26_spill] sm:$0xff] %v3657_v32 }
  0x8a   : > { %741 = vmatprep.subr.mxu0 %v3634_v50  ;;  %810 = vmatprep.subr.mxu1 %v3637_v59 }
  0x8b   : > { %742 = vmatpush1.msra.mxu0 %v3642_v5  ;;  %775 = vmatprep.mubr.f32.mxu0 %v4504_v0 }
  0x8c   : > { %811 = vmatpush1.msra.mxu1 %v3647_v14  ;;  %776 = vmatmul.mubr.f32.vlgmr.msra.gmra.mxu0 %v4504_v0 }
  0x8d   : > { %812 = vmatprep.subr.mxu1 %v3652_v23  ;;  %846 = vmatprep.mubr.f32.mxu1 %v4504_v0 }
  0x8e   : > { %813 = vmatpush1.msra.mxu1 %v3657_v32  ;;  %962 = vmatprep.subr.mxu0 %v3355_v34 }
  0x8f   : > { %847 = vmatmul.mubr.f32.vlgmr.msra.gmra.mxu1 %v4504_v0  ;;  %1033 = vmatprep.subr.mxu1 %v3358_v35  ;;  %v4584_v0 = vld [vmem:[#allocation17_spill] sm:$0xff] }
  0x90   : > { %963 = vmatpush1.msra.mxu0 %v3363_v36  ;;  %1034 = vmatpush1.msra.mxu1 %v3366_v37 }
  0x91   : > { %964 = vmatprep.subr.mxu0 %v3375_v39  ;;  %1035 = vmatprep.subr.mxu1 %v3389_v42 }
  0x92   : > { %965 = vmatpush1.msra.mxu0 %v3380_v40  ;;  %1036 = vmatpush1.msra.mxu1 %v3402_v45 }
  0x93   : > { %966 = vmatprep.subr.mxu0 %v3386_v41  ;;  %1037 = vmatprep.subr.mxu1 %v3410_v47 }
  0x94   : > { %967 = vmatpush1.msra.mxu0 %v3399_v44  ;;  %1038 = vmatpush1.msra.mxu1 %v3420_v49 }
  0x95   : > { %968 = vmatprep.subr.mxu0 %v3407_v46  ;;  %1039 = vmatprep.subr.mxu1 %v3433_v52 }
  0x96   : > { %969 = vmatpush1.msra.mxu0 %v3417_v48  ;;  %1040 = vmatpush1.msra.mxu1 %v3441_v54 }
  0x97   : > { %970 = vmatprep.subr.mxu0 %v3430_v51  ;;  %1041 = vmatprep.subr.mxu1 %v3449_v56 }
  0x98   : > { %971 = vmatpush1.msra.mxu0 %v3438_v53  ;;  %1042 = vmatpush1.msra.mxu1 %v3459_v58 }
  0x99   : > { %972 = vmatprep.subr.mxu0 %v3446_v55  ;;  %1043 = vmatprep.subr.mxu1 %v3472_v61 }
  0x9a   : > { %973 = vmatpush1.msra.mxu0 %v3456_v57  ;;  %1044 = vmatpush1.msra.mxu1 %v3480_v63 }
  0x9b   : > { %974 = vmatprep.subr.mxu0 %v3469_v60  ;;  %1045 = vmatprep.subr.mxu1 %v3488_v2 }
  0x9c   : > { %975 = vmatpush1.msra.mxu0 %v3477_v62  ;;  %1046 = vmatpush1.msra.mxu1 %v3498_v4 }
  0x9d   : > { %976 = vmatprep.subr.mxu0 %v3485_v1  ;;  %1047 = vmatprep.subr.mxu1 %v3511_v7 }
  0x9e   : > { %977 = vmatpush1.msra.mxu0 %v3495_v3  ;;  %1048 = vmatpush1.msra.mxu1 %v3519_v9 }
  0x9f   : > { %978 = vmatprep.subr.mxu0 %v3508_v6  ;;  %1049 = vmatprep.subr.mxu1 %v3527_v11 }
  0xa0   : > { %979 = vmatpush1.msra.mxu0 %v3516_v8  ;;  %1050 = vmatpush1.msra.mxu1 %v3537_v13 }
  0xa1   : > { %980 = vmatprep.subr.mxu0 %v3524_v10  ;;  %1051 = vmatprep.subr.mxu1 %v3550_v16 }
  0xa2   : > { %981 = vmatpush1.msra.mxu0 %v3534_v12  ;;  %1052 = vmatpush1.msra.mxu1 %v3558_v18 }
  0xa3   : > { %982 = vmatprep.subr.mxu0 %v3547_v15  ;;  %1053 = vmatprep.subr.mxu1 %v3566_v20 }
  0xa4   : > { %983 = vmatpush1.msra.mxu0 %v3555_v17  ;;  %1054 = vmatpush1.msra.mxu1 %v3576_v22 }
  0xa5   : > { %984 = vmatprep.subr.mxu0 %v3563_v19  ;;  %1055 = vmatprep.subr.mxu1 %v3589_v25 }
  0xa6   : > { %985 = vmatpush1.msra.mxu0 %v3573_v21  ;;  %1056 = vmatpush1.msra.mxu1 %v3597_v27 }
  0xa7   : > { %986 = vmatprep.subr.mxu0 %v3586_v24  ;;  %1057 = vmatprep.subr.mxu1 %v3605_v29 }
  0xa8   : > { %987 = vmatpush1.msra.mxu0 %v3594_v26  ;;  %1058 = vmatpush1.msra.mxu1 %v3613_v31 }
  0xa9   : > { %988 = vmatprep.subr.mxu0 %v3602_v28  ;;  %1059 = vmatprep.subr.mxu1 %v3621_v33  ;;  %v4585_v33 = vmov 0.0  }
  0xaa   : > { %989 = vmatpush1.msra.mxu0 %v3610_v30  ;;  %1060 = vmatpush1.msra.mxu1 %v3629_v43 }
  0xab   : > { %990 = vmatprep.subr.mxu0 %v4584_v0  ;;  %1061 = vmatprep.subr.mxu1 %v3637_v59 }
  0xac   : > { %991 = vmatpush1.msra.mxu0 %v3626_v38  ;;  %1062 = vmatpush1.msra.mxu1 %v3647_v14  ;;  %v330_v14 = vlaneseq }
  0xad   : > { %992 = vmatprep.subr.mxu0 %v3634_v50  ;;  %1063 = vmatprep.subr.mxu1 %v3652_v23 }
  0xae   : > { %993 = vmatpush1.msra.mxu0 %v3642_v5  ;;  %1026 = vmatprep.mubr.f32.mxu0 %v4585_v33  ;;  %v331_v50 = vshrl.u32 %v330_v14, 7 }
  0xaf   : > { %1064 = vmatpush1.msra.mxu1 %v3657_v32  ;;  %1097 = vmatprep.mubr.f32.mxu1 %v4585_v33  ;;  %v328_v32 = vld [vmem:[%s269_s24] sm:$0xf]  ;;  %s1135_s24 = scalar_lea.vmem %s3801_s5, %s2817_s13 }
  0xb0   : > { %1213 = vmatprep.subr.mxu0 %v3355_v34  ;;  %1284 = vmatprep.subr.mxu1 %v3358_v35  ;;  %v332_v5 = vsub.s32 0, %v331_v50  ;;  %v340_v23 = vsub.s32 2, %v331_v50  ;;  %v336_v38 = vsub.s32 1, %v331_v50  ;;  %v344_v33 = vsub.s32 3, %v331_v50 }
  0xb2   : > { %v3741_v59 = vrot.slane %v328_v32, %v332_v5  ;;  %v3743_v34 = vrot.slane %v328_v32, %v340_v23  ;;  %v3745_v35 = vrot.slane %v328_v32, %v336_v38  ;;  %v3747_v0 = vrot.slane %v328_v32, %v344_v33 }
 0x11e   : > { %v441_v43 = vpop.f32.mrf.mxu0  ;;  %v554_v14 = vpop.f32.mrf.mxu1 }
 0x11f   : > { %v442_v30 = vadd.f32 %v441_v43, %v3741_v59  ;;  %v555_v28 = vadd.f32 %v554_v14, %v3743_v34 }
 0x120   : > { %v443_v31 = vpop.f32.mrf.mxu0  ;;  %v556_v26 = vpop.f32.mrf.mxu1 }
 0x121   : > { %601 = vst [vmem:[#allocation2] sm:$0xff] %v442_v30  ;;  %603 = vst [vmem:[#allocation2 + $0x10] sm:$0xff] %v555_v28  ;;  %v444_v50 = vadd.f32 %v443_v31, %v3745_v35  ;;  %v557_v5 = vadd.f32 %v556_v26, %v3747_v0 }
 0x122   : > { %v447_v38 = vpop.f32.mrf.mxu0  ;;  %v560_v23 = vpop.f32.mrf.mxu1 }
 0x123   : > { %602 = vst [vmem:[#allocation2 + $0x8] sm:$0xff] %v444_v50  ;;  %604 = vst [vmem:[#allocation2 + $0x18] sm:$0xff] %v557_v5  ;;  %v448_v32 = vadd.f32 %v447_v38, %v3741_v59  ;;  %v561_v33 = vadd.f32 %v560_v23, %v3743_v34 }
 0x124   : > { %v449_v43 = vpop.f32.mrf.mxu0  ;;  %v562_v14 = vpop.f32.mrf.mxu1 }
 0x125   : > { %605 = vst [vmem:[#allocation2 + $0x20] sm:$0xff] %v448_v32  ;;  %607 = vst [vmem:[#allocation2 + $0x30] sm:$0xff] %v561_v33  ;;  %v450_v28 = vadd.f32 %v449_v43, %v3745_v35  ;;  %v563_v30 = vadd.f32 %v562_v14, %v3747_v0 }
 0x126   : > { %v453_v31 = vpop.f32.mrf.mxu0  ;;  %v566_v26 = vpop.f32.mrf.mxu1 }
 0x127   : > { %606 = vst [vmem:[#allocation2 + $0x28] sm:$0xff] %v450_v28  ;;  %608 = vst [vmem:[#allocation2 + $0x38] sm:$0xff] %v563_v30  ;;  %v454_v50 = vadd.f32 %v453_v31, %v3741_v59  ;;  %v567_v5 = vadd.f32 %v566_v26, %v3743_v34 }
 0x128   : > { %v455_v38 = vpop.f32.mrf.mxu0  ;;  %v568_v23 = vpop.f32.mrf.mxu1 }
 0x129   : > { %609 = vst [vmem:[#allocation2 + $0x40] sm:$0xff] %v454_v50  ;;  %611 = vst [vmem:[#allocation2 + $0x50] sm:$0xff] %v567_v5  ;;  %v456_v32 = vadd.f32 %v455_v38, %v3745_v35  ;;  %v569_v33 = vadd.f32 %v568_v23, %v3747_v0 }
 0x12b   : > { %610 = vst [vmem:[#allocation2 + $0x48] sm:$0xff] %v456_v32  ;;  %612 = vst [vmem:[#allocation2 + $0x58] sm:$0xff] %v569_v33  ;;  %v459_v43 = vpop.f32.mrf.mxu0  ;;  %v572_v14 = vpop.f32.mrf.mxu1 }
 0x12c   : > { %v460_v28 = vadd.f32 %v459_v43, %v3741_v59  ;;  %v573_v30 = vadd.f32 %v572_v14, %v3743_v34 }
 0x12d   : > { %v461_v31 = vpop.f32.mrf.mxu0  ;;  %v574_v26 = vpop.f32.mrf.mxu1 }
 0x12e   : > { %613 = vst [vmem:[#allocation2 + $0x60] sm:$0xff] %v460_v28  ;;  %615 = vst [vmem:[#allocation2 + $0x70] sm:$0xff] %v573_v30  ;;  %v462_v50 = vadd.f32 %v461_v31, %v3745_v35  ;;  %v575_v5 = vadd.f32 %v574_v26, %v3747_v0 }
 0x130   : > { %614 = vst [vmem:[#allocation2 + $0x68] sm:$0xff] %v462_v50  ;;  %616 = vst [vmem:[#allocation2 + $0x78] sm:$0xff] %v575_v5 }
 0x131   : > { %v465_v38 = vpop.f32.mrf.mxu0  ;;  %v578_v23 = vpop.f32.mrf.mxu1 }
 0x132   : > { %v466_v32 = vadd.f32 %v465_v38, %v3741_v59  ;;  %v579_v33 = vadd.f32 %v578_v23, %v3743_v34 }
 0x133   : > { %v467_v43 = vpop.f32.mrf.mxu0  ;;  %v580_v14 = vpop.f32.mrf.mxu1 }
 0x134   : > { %617 = vst [vmem:[#allocation2 + $0x80] sm:$0xff] %v466_v32  ;;  %619 = vst [vmem:[#allocation2 + $0x90] sm:$0xff] %v579_v33  ;;  %v468_v28 = vadd.f32 %v467_v43, %v3745_v35  ;;  %v581_v30 = vadd.f32 %v580_v14, %v3747_v0 }
 0x136   : > { %618 = vst [vmem:[#allocation2 + $0x88] sm:$0xff] %v468_v28  ;;  %620 = vst [vmem:[#allocation2 + $0x98] sm:$0xff] %v581_v30 }
 0x137   : > { %v471_v31 = vpop.f32.mrf.mxu0  ;;  %v584_v26 = vpop.f32.mrf.mxu1 }
 0x138   : > { %v472_v50 = vadd.f32 %v471_v31, %v3741_v59  ;;  %v585_v5 = vadd.f32 %v584_v26, %v3743_v34 }
 0x139   : > { %v473_v38 = vpop.f32.mrf.mxu0  ;;  %v586_v23 = vpop.f32.mrf.mxu1 }
 0x13a   : > { %621 = vst [vmem:[#allocation2 + $0xa0] sm:$0xff] %v472_v50  ;;  %623 = vst [vmem:[#allocation2 + $0xb0] sm:$0xff] %v585_v5  ;;  %v474_v32 = vadd.f32 %v473_v38, %v3745_v35  ;;  %v587_v33 = vadd.f32 %v586_v23, %v3747_v0 }
 0x13c   : > { %622 = vst [vmem:[#allocation2 + $0xa8] sm:$0xff] %v474_v32  ;;  %624 = vst [vmem:[#allocation2 + $0xb8] sm:$0xff] %v587_v33 }
 0x13d   : > { %v477_v43 = vpop.f32.mrf.mxu0  ;;  %v590_v14 = vpop.f32.mrf.mxu1 }
 0x13e   : > { %v478_v28 = vadd.f32 %v477_v43, %v3741_v59  ;;  %v591_v30 = vadd.f32 %v590_v14, %v3743_v34 }
 0x13f   : > { %v479_v31 = vpop.f32.mrf.mxu0  ;;  %v592_v26 = vpop.f32.mrf.mxu1 }
 0x140   : > { %625 = vst [vmem:[#allocation2 + $0xc0] sm:$0xff] %v478_v28  ;;  %627 = vst [vmem:[#allocation2 + $0xd0] sm:$0xff] %v591_v30  ;;  %v480_v50 = vadd.f32 %v479_v31, %v3745_v35  ;;  %v593_v5 = vadd.f32 %v592_v26, %v3747_v0 }
 0x142   : > { %626 = vst [vmem:[#allocation2 + $0xc8] sm:$0xff] %v480_v50  ;;  %628 = vst [vmem:[#allocation2 + $0xd8] sm:$0xff] %v593_v5 }
 0x143   : > { %v483_v38 = vpop.f32.mrf.mxu0  ;;  %v596_v23 = vpop.f32.mrf.mxu1 }
 0x144   : > { %v484_v32 = vadd.f32 %v483_v38, %v3741_v59  ;;  %v597_v33 = vadd.f32 %v596_v23, %v3743_v34 }
 0x145   : > { %v485_v43 = vpop.f32.mrf.mxu0  ;;  %v598_v14 = vpop.f32.mrf.mxu1 }
 0x146   : > { %629 = vst [vmem:[#allocation2 + $0xe0] sm:$0xff] %v484_v32  ;;  %631 = vst [vmem:[#allocation2 + $0xf0] sm:$0xff] %v597_v33  ;;  %v486_v28 = vadd.f32 %v485_v43, %v3745_v35  ;;  %v599_v30 = vadd.f32 %v598_v14, %v3747_v0 }
 0x148   : > { %630 = vst [vmem:[#allocation2 + $0xe8] sm:$0xff] %v486_v28  ;;  %632 = vst [vmem:[#allocation2 + $0xf8] sm:$0xff] %v599_v30 }
 0x14c   : > { %v777_v31 = vpop.f32.mrf.mxu0 }
 0x14e   : > { %v779_v5 = vpop.f32.mrf.mxu0 }
 0x14f   : > { %v642_v26 = vld [vmem:[%s641_s22] sm:$0xff]  ;;  %v643_v59 = vld [vmem:[%s641_s22 + $0x8] sm:$0xff]  ;;  %v848_v29 = vpop.f32.mrf.mxu1  ;;  %v645_v32 = vld [vmem:[%s641_s22 + $0x18] sm:$0xff] }
 0x150   : > { %v853_v50 = vadd.f32 %v777_v31, %v642_v26  ;;  %v854_v38 = vadd.f32 %v779_v5, %v643_v59  ;;  %v644_v43 = vld [vmem:[%s641_s22 + $0x10] sm:$0xff]  ;;  %s1390_s22 = sshra.s32 %s2829_s21, 3 }
 0x151   : > { %v850_v33 = vpop.f32.mrf.mxu1  ;;  %v855_v28 = vadd.f32 %v848_v29, %v644_v43  ;;  %v3887_v43 = vld [vmem:[%s3311_s8 + $0x1e8] sm:$0xff]  ;;  %s2867_s25 = sshll.u32 %s1390_s22, 5 }
 0x152   : > { %v2814_v34 = vmul.f32 -1.442695, %v853_v50  ;;  %v2815_v23 = vmul.f32 -1.442695, %v854_v38  ;;  %v856_v35 = vadd.f32 %v850_v33, %v645_v32  ;;  %s1394_s26 = scalar_lea.vmem [#allocation2], %s2867_s25 }
 0x154   : > { %2919 = vpow2.f32 %v2814_v34  ;;  %v2816_v0 = vmul.f32 -1.442695, %v856_v35 }
 0x155   : > { %2921 = vpow2.f32 %v2815_v23 }
 0x156   : > { %2923 = vpow2.f32 %v2816_v0  ;;  %v3890_v0 = vld [vmem:[%s3311_s8 + $0x1f8] sm:$0xff] }
 0x161   : > { %v2920_v14 = vpop.eup %2919 }
 0x162   : > { %v860_v30 = vadd.f32 1.0, %v2920_v14  ;;  %v2922_v24 = vpop.eup %2921  ;;  %v3895_v14 = vld [vmem:[%s3311_s8 + $0x1e0] sm:$0xff] }
 0x163   : > { %v866_v31 = vadd.f32 1.0, %v2922_v24  ;;  %v2924_v26 = vpop.eup %2923 }
 0x164   : > { %2925 = vrcp.f32 %v860_v30  ;;  %v873_v34 = vadd.f32 1.0, %v2924_v26  ;;  %v3903_v30 = vld [vmem:[%s3311_s8 + $0x1c8] sm:$0xff]  ;;  %v3911_v26 = vld [vmem:[%s3311_s8 + $0x1c0] sm:$0xff] }
 0x165   : > { %2927 = vtanh.f32 %v855_v28  ;;  %v3898_v28 = vld [vmem:[%s3311_s8 + $0x1f0] sm:$0xff] }
 0x166   : > { %2929 = vrcp.f32 %v866_v31  ;;  %v3906_v31 = vld [vmem:[%s3311_s8 + $0x1d8] sm:$0xff] }
 0x167   : > { %2931 = vrcp.f32 %v873_v34  ;;  %v3927_v34 = vld [vmem:[%s3311_s8 + $0x1a0] sm:$0xff] }
 0x171   : > { %v2926_v50 = vpop.eup %2925 }
 0x172   : > { %v2928_v59 = vpop.eup %2927 }
 0x173   : > { %v2930_v5 = vpop.eup %2929  ;;  %v878_v23 = vmul.f32 %v2928_v59, %v2926_v50  ;;  %v3914_v50 = vld [vmem:[%s3311_s8 + $0x1d0] sm:$0xff]  ;;  %v3919_v59 = vld [vmem:[%s3311_s8 + $0x1a8] sm:$0xff] }
 0x174   : > { %v877_v38 = vmul.f32 0.0, %v2930_v5  ;;  %v2932_v24 = vpop.eup %2931  ;;  %v3922_v5 = vld [vmem:[%s3311_s8 + $0x1b8] sm:$0xff] }
 0x176   : > { %v3794_v32 = vadd.f32 %v878_v23, %v877_v38  ;;  %v3930_v38 = vld [vmem:[%s3311_s8 + $0x1b0] sm:$0xff]  ;;  %v3935_v23 = vld [vmem:[%s3311_s8 + $0x188] sm:$0xff] }
 0x178   : > { %2933 = vtanh.f32 %v3794_v32 }
 0x185   : > { %v2934_v29 = vpop.eup %2933 }
 0x186   : > { %v881_v33 = vmul.f32 %v2934_v29, %v2932_v24  ;;  %v3943_v24 = vld [vmem:[%s3311_s8 + $0x180] sm:$0xff]  ;;  %v3946_v29 = vld [vmem:[%s3311_s8 + $0x190] sm:$0xff] }
 0x188   : > { %885 = vst [vmem:[%s884_s10] sm:$0xff] %v881_v33  ;;  %1027 = vmatmul.mubr.f32.vlgmr.msra.gmra.mxu0 %v881_v33  ;;  %1098 = vmatmul.mubr.f32.vlgmr.msra.gmra.mxu1 %v881_v33  ;;  %v3951_v33 = vld [vmem:[%s3311_s8 + $0x168] sm:$0xff]  ;;  %s4306_s10 = scalar_select %p287_p4, 3, 4 }
 0x189   : > { %1214 = vmatpush1.msra.mxu0 %v3363_v36  ;;  %1285 = vmatpush1.msra.mxu1 %v3366_v37  ;;  %v4586_v36 = vld [vmem:[#allocation11_spill] sm:$0xff]  ;;  %v4587_v37 = vld [vmem:[#allocation14_spill] sm:$0xff] }
 0x18a   : > { %1215 = vmatprep.subr.mxu0 %v3375_v39  ;;  %1286 = vmatprep.subr.mxu1 %v3389_v42  ;;  %v4588_v39 = vld [vmem:[#allocation12_spill] sm:$0xff]  ;;  %v4591_v42 = vld [vmem:[#allocation18_spill] sm:$0xff]  ;;  %4603 = vst [vmem:[#allocation11_spill] sm:$0xff] %v3887_v43  ;;  %4604 = vst [vmem:[#allocation14_spill] sm:$0xff] %v3890_v0  ;;  %s2835_s11 = sshll.u32 %s4306_s10, 3 }
 0x18b   : > { %1216 = vmatpush1.msra.mxu0 %v3380_v40  ;;  %1287 = vmatpush1.msra.mxu1 %v3402_v45  ;;  %v4589_v40 = vld [vmem:[#allocation16_spill] sm:$0xff]  ;;  %s1641_s13 = sshra.s32 %s2835_s11, 3 }
 0x18c   : > { %1217 = vmatprep.subr.mxu0 %v3386_v41  ;;  %1288 = vmatprep.subr.mxu1 %v3410_v47  ;;  %v4590_v41 = vld [vmem:[#allocation13_spill] sm:$0xff]  ;;  %v4593_v45 = vld [vmem:[#allocation20_spill] sm:$0xff]  ;;  %v4595_v47 = vld [vmem:[#allocation22_spill] sm:$0xff]  ;;  %s2868_s6 = sshll.u32 %s1641_s13, 5 }
 0x18d   : > { %1218 = vmatpush1.msra.mxu0 %v3399_v44  ;;  %1289 = vmatpush1.msra.mxu1 %v3420_v49  ;;  %v4592_v44 = vld [vmem:[#allocation15_spill] sm:$0xff]  ;;  %v4597_v49 = vld [vmem:[#allocation24_spill] sm:$0xff]  ;;  %s1645_s7 = scalar_lea.vmem [#allocation2], %s2868_s6 }
 0x18e   : > { %1219 = vmatprep.subr.mxu0 %v3407_v46  ;;  %1290 = vmatprep.subr.mxu1 %v3433_v52  ;;  %v4594_v46 = vld [vmem:[#allocation17_spill] sm:$0xff] }
 0x18f   : > { %1220 = vmatpush1.msra.mxu0 %v3417_v48  ;;  %1291 = vmatpush1.msra.mxu1 %v3441_v54  ;;  %v4596_v48 = vld [vmem:[#allocation19_spill] sm:$0xff]  ;;  %v4599_v52 = vld [vmem:[#allocation25_spill] sm:$0xff]  ;;  %v4601_v54 = vmov 0.0  }
 0x190   : > { %1221 = vmatprep.subr.mxu0 %v3430_v51  ;;  %1292 = vmatprep.subr.mxu1 %v3449_v56  ;;  %v4598_v51 = vld [vmem:[#allocation21_spill] sm:$0xff]  ;;  %v893_v56 = vld [vmem:[%s892_s18] sm:$0xff] }
 0x191   : > { %1222 = vmatpush1.msra.mxu0 %v3438_v53  ;;  %1293 = vmatpush1.msra.mxu1 %v3459_v58  ;;  %v4600_v53 = vld [vmem:[#allocation23_spill] sm:$0xff] }
 0x192   : > { %1223 = vmatprep.subr.mxu0 %v3446_v55  ;;  %1294 = vmatprep.subr.mxu1 %v3472_v61  ;;  %v4602_v55 = vld [vmem:[#allocation26_spill] sm:$0xff] }
 0x193   : > { %1224 = vmatpush1.msra.mxu0 %v3456_v57  ;;  %1295 = vmatpush1.msra.mxu1 %v3480_v63 }
 0x194   : > { %1225 = vmatprep.subr.mxu0 %v3469_v60  ;;  %1296 = vmatprep.subr.mxu1 %v3488_v2  ;;  %v894_v60 = vld [vmem:[%s892_s18 + $0x8] sm:$0xff] }
 0x195   : > { %1226 = vmatpush1.msra.mxu0 %v3477_v62  ;;  %1297 = vmatpush1.msra.mxu1 %v3498_v4  ;;  %v896_v4 = vld [vmem:[%s892_s18 + $0x18] sm:$0xff] }
 0x196   : > { %1227 = vmatprep.subr.mxu0 %v3485_v1  ;;  %1298 = vmatprep.subr.mxu1 %v3511_v7 }
 0x197   : > { %1228 = vmatpush1.msra.mxu0 %v3495_v3  ;;  %1299 = vmatpush1.msra.mxu1 %v3519_v9 }
 0x198   : > { %1229 = vmatprep.subr.mxu0 %v3508_v6  ;;  %1300 = vmatprep.subr.mxu1 %v3527_v11 }
 0x199   : > { %1230 = vmatpush1.msra.mxu0 %v3516_v8  ;;  %1301 = vmatpush1.msra.mxu1 %v3537_v13  ;;  %v895_v8 = vld [vmem:[%s892_s18 + $0x10] sm:$0xff]  ;;  %s1888_s18 = scalar_lea.vmem %s3801_s5, %s2835_s11 }
 0x19a   : > { %1231 = vmatprep.subr.mxu0 %v3524_v10  ;;  %1302 = vmatprep.subr.mxu1 %v3550_v16 }
 0x19b   : > { %1232 = vmatpush1.msra.mxu0 %v3534_v12  ;;  %1303 = vmatpush1.msra.mxu1 %v3558_v18 }
 0x19c   : > { %1233 = vmatprep.subr.mxu0 %v3547_v15  ;;  %1304 = vmatprep.subr.mxu1 %v3566_v20 }
 0x19d   : > { %1234 = vmatpush1.msra.mxu0 %v3555_v17  ;;  %1305 = vmatpush1.msra.mxu1 %v3576_v22 }
 0x19e   : > { %1235 = vmatprep.subr.mxu0 %v3563_v19  ;;  %1306 = vmatprep.subr.mxu1 %v3589_v25 }
 0x19f   : > { %1236 = vmatpush1.msra.mxu0 %v3573_v21  ;;  %1307 = vmatpush1.msra.mxu1 %v3597_v27 }
 0x1a0   : > { %1237 = vmatprep.subr.mxu0 %v4586_v36  ;;  %1308 = vmatprep.subr.mxu1 %v4587_v37  ;;  %v3954_v36 = vld [vmem:[%s3311_s8 + $0x178] sm:$0xff]  ;;  %v3959_v37 = vld [vmem:[%s3311_s8 + $0x160] sm:$0xff] }
 0x1a1   : > { %1238 = vmatpush1.msra.mxu0 %v4588_v39  ;;  %1309 = vmatpush1.msra.mxu1 %v4589_v40  ;;  %v3962_v39 = vld [vmem:[%s3311_s8 + $0x170] sm:$0xff]  ;;  %v3967_v40 = vld [vmem:[%s3311_s8 + $0x148] sm:$0xff] }
 0x1a2   : > { %1239 = vmatprep.subr.mxu0 %v4590_v41  ;;  %1310 = vmatprep.subr.mxu1 %v4591_v42  ;;  %v3970_v41 = vld [vmem:[%s3311_s8 + $0x158] sm:$0xff]  ;;  %v3975_v42 = vld [vmem:[%s3311_s8 + $0x140] sm:$0xff] }
 0x1a3   : > { %1240 = vmatpush1.msra.mxu0 %v4592_v44  ;;  %1311 = vmatpush1.msra.mxu1 %v4593_v45  ;;  %v3978_v44 = vld [vmem:[%s3311_s8 + $0x150] sm:$0xff]  ;;  %v3983_v45 = vld [vmem:[%s3311_s8 + $0x128] sm:$0xff] }
 0x1a4   : > { %1241 = vmatprep.subr.mxu0 %v4594_v46  ;;  %1312 = vmatprep.subr.mxu1 %v4595_v47  ;;  %v3986_v46 = vld [vmem:[%s3311_s8 + $0x138] sm:$0xff]  ;;  %v3989_v47 = vld [vmem:[%s3311_s8 + $0x120] sm:$0xff] }
 0x1a5   : > { %1242 = vmatpush1.msra.mxu0 %v4596_v48  ;;  %1313 = vmatpush1.msra.mxu1 %v4597_v49  ;;  %v3994_v48 = vld [vmem:[%s3311_s8 + $0x130] sm:$0xff]  ;;  %v3997_v49 = vld [vmem:[%s3311_s8 + $0x108] sm:$0xff] }
 0x1a6   : > { %1243 = vmatprep.subr.mxu0 %v4598_v51  ;;  %1314 = vmatprep.subr.mxu1 %v4599_v52  ;;  %v4000_v51 = vld [vmem:[%s3311_s8 + $0x118] sm:$0xff]  ;;  %v4005_v52 = vld [vmem:[%s3311_s8 + $0x100] sm:$0xff] }
 0x1a7   : > { %1244 = vmatpush1.msra.mxu0 %v4600_v53  ;;  %1277 = vmatprep.mubr.f32.mxu0 %v4601_v54  ;;  %v4008_v53 = vld [vmem:[%s3311_s8 + $0x110] sm:$0xff] }
 0x1a8   : > { %1315 = vmatpush1.msra.mxu1 %v4602_v55  ;;  %1348 = vmatprep.mubr.f32.mxu1 %v4601_v54  ;;  %v4011_v55 = vld [vmem:[%s3311_s8 + $0xe8] sm:$0xff] }
 0x1a9   : > { %1464 = vmatprep.subr.mxu0 %v3887_v43  ;;  %1535 = vmatprep.subr.mxu1 %v3890_v0 }
 0x248   : > { %v1028_v57 = vpop.f32.mrf.mxu0  ;;  %v1099_v1 = vpop.f32.mrf.mxu1 }
 0x249   : > { %v1104_v58 = vadd.f32 %v1028_v57, %v893_v56  ;;  %v1106_v10 = vadd.f32 %v1099_v1, %v895_v8  ;;  %v4016_v56 = vld [vmem:[%s3311_s8 + $0xf8] sm:$0xff]  ;;  %v4019_v57 = vld [vmem:[%s3311_s8 + $0xe0] sm:$0xff]  ;;  %v4043_v1 = vld [vmem:[%s3311_s8 + $0xa8] sm:$0xff] }
 0x24a   : > { %v1030_v61 = vpop.f32.mrf.mxu0  ;;  %v1101_v3 = vpop.f32.mrf.mxu1  ;;  %v4067_v8 = vld [vmem:[%s3311_s8 + $0x80] sm:$0xff] }
 0x24b   : > { %v2820_v62 = vmul.f32 -1.442695, %v1104_v58  ;;  %v1105_v63 = vadd.f32 %v1030_v61, %v894_v60  ;;  %v1107_v6 = vadd.f32 %v1101_v3, %v896_v4  ;;  %v4022_v58 = vld [vmem:[%s3311_s8 + $0xf0] sm:$0xff]  ;;  %v4027_v60 = vld [vmem:[%s3311_s8 + $0xc8] sm:$0xff]  ;;  %v4030_v61 = vld [vmem:[%s3311_s8 + $0xd8] sm:$0xff] }
 0x24c   : > { %v4051_v3 = vld [vmem:[%s3311_s8 + $0xa0] sm:$0xff]  ;;  %v4054_v4 = vld [vmem:[%s3311_s8 + $0xb0] sm:$0xff] }
 0x24d   : > { %2935 = vpow2.f32 %v2820_v62  ;;  %v2821_v2 = vmul.f32 -1.442695, %v1105_v63  ;;  %v2822_v7 = vmul.f32 -1.442695, %v1107_v6  ;;  %v4035_v62 = vld [vmem:[%s3311_s8 + $0xc0] sm:$0xff]  ;;  %v4038_v63 = vld [vmem:[%s3311_s8 + $0xd0] sm:$0xff] }
 0x24e   : > { %v4059_v6 = vld [vmem:[%s3311_s8 + $0x88] sm:$0xff] }
 0x24f   : > { %2937 = vpow2.f32 %v2821_v2  ;;  %v4046_v2 = vld [vmem:[%s3311_s8 + $0xb8] sm:$0xff] }
 0x250   : > { %2939 = vpow2.f32 %v2822_v7  ;;  %v4062_v7 = vld [vmem:[%s3311_s8 + $0x98] sm:$0xff] }
 0x25a   : > { %v2936_v9 = vpop.eup %2935 }
 0x25b   : > { %v1111_v11 = vadd.f32 1.0, %v2936_v9  ;;  %v4070_v9 = vld [vmem:[%s3311_s8 + $0x90] sm:$0xff] }
 0x25c   : > { %v2938_v12 = vpop.eup %2937  ;;  %4605 = vst [vmem:[#allocation12_spill] sm:$0xff] %v4070_v9 }
 0x25d   : > { %2941 = vrcp.f32 %v1111_v11  ;;  %v1117_v13 = vadd.f32 1.0, %v2938_v12  ;;  %v2940_v15 = vpop.eup %2939  ;;  %v4078_v11 = vld [vmem:[%s3311_s8 + $0x78] sm:$0xff]  ;;  %v4083_v12 = vld [vmem:[%s3311_s8 + $0x60] sm:$0xff] }
 0x25e   : > { %2943 = vtanh.f32 %v1106_v10  ;;  %v1124_v19 = vadd.f32 1.0, %v2940_v15  ;;  %v4075_v10 = vld [vmem:[%s3311_s8 + $0x68] sm:$0xff]  ;;  %4607 = vst [vmem:[#allocation13_spill] sm:$0xff] %v4078_v11  ;;  %4608 = vst [vmem:[#allocation18_spill] sm:$0xff] %v4083_v12 }
 0x25f   : > { %2945 = vrcp.f32 %v1117_v13  ;;  %4606 = vst [vmem:[#allocation16_spill] sm:$0xff] %v4075_v10  ;;  %v4086_v13 = vld [vmem:[%s3311_s8 + $0x70] sm:$0xff]  ;;  %v4091_v15 = vld [vmem:[%s3311_s8 + $0x48] sm:$0xff] }
 0x260   : > { %2947 = vrcp.f32 %v1124_v19  ;;  %4609 = vst [vmem:[#allocation15_spill] sm:$0xff] %v4086_v13  ;;  %4610 = vst [vmem:[#allocation20_spill] sm:$0xff] %v4091_v15  ;;  %v4107_v19 = vld [vmem:[%s3311_s8 + $0x28] sm:$0xff] }
 0x261   : > { %4614 = vst [vmem:[#allocation24_spill] sm:$0xff] %v4107_v19 }
 0x26a   : > { %v2942_v16 = vpop.eup %2941 }
 0x26b   : > { %v2944_v17 = vpop.eup %2943 }
 0x26c   : > { %v2946_v18 = vpop.eup %2945  ;;  %v1129_v20 = vmul.f32 %v2944_v17, %v2942_v16  ;;  %v4094_v16 = vld [vmem:[%s3311_s8 + $0x58] sm:$0xff]  ;;  %v4099_v17 = vld [vmem:[%s3311_s8 + $0x40] sm:$0xff] }
 0x26d   : > { %v1128_v21 = vmul.f32 %v2946_v18, %v3794_v32  ;;  %v2948_v25 = vpop.eup %2947  ;;  %v3938_v32 = vld [vmem:[%s3311_s8 + $0x198] sm:$0xff]  ;;  %4611 = vst [vmem:[#allocation17_spill] sm:$0xff] %v4094_v16  ;;  %4612 = vst [vmem:[#allocation22_spill] sm:$0xff] %v4099_v17  ;;  %v4102_v18 = vld [vmem:[%s3311_s8 + $0x50] sm:$0xff] }
 0x26e   : > { %4613 = vst [vmem:[#allocation19_spill] sm:$0xff] %v4102_v18 }
 0x26f   : > { %v3878_v22 = vadd.f32 %v1129_v20, %v1128_v21  ;;  %v4110_v20 = vld [vmem:[%s3311_s8 + $0x38] sm:$0xff]  ;;  %v4115_v21 = vld [vmem:[%s3311_s8 + $0x20] sm:$0xff] }
 0x270   : > { %4615 = vst [vmem:[#allocation21_spill] sm:$0xff] %v4110_v20  ;;  %4616 = vst [vmem:[#allocation25_spill] sm:$0xff] %v4115_v21 }
 0x271   : > { %2949 = vtanh.f32 %v3878_v22 }
 0x27e   : > { %v2950_v27 = vpop.eup %2949 }
 0x27f   : > { %v1132_v35 = vmul.f32 %v2950_v27, %v2948_v25  ;;  %v4118_v25 = vld [vmem:[%s3311_s8 + $0x30] sm:$0xff]  ;;  %v4123_v27 = vld [vmem:[%s3311_s8 + $0x8] sm:$0xff] }
 0x280   : > { %4617 = vst [vmem:[#allocation23_spill] sm:$0xff] %v4118_v25  ;;  %4618 = vst [vmem:[#allocation26_spill] sm:$0xff] %v4123_v27 }
 0x281   : > { %1136 = vst [vmem:[%s1135_s24] sm:$0xff] %v1132_v35  ;;  %1278 = vmatmul.mubr.f32.vlgmr.msra.gmra.mxu0 %v1132_v35  ;;  %1349 = vmatmul.mubr.f32.vlgmr.msra.gmra.mxu1 %v1132_v35  ;;  %v4126_v35 = vld [vmem:[%s3311_s8 + $0x18] sm:$0xff]  ;;  %s4384_s24 = scalar_select %p287_p4, 2, 5 }
 0x282   : > { %1528 = vmatprep.mubr.f32.mxu0 %v4601_v54  ;;  %1599 = vmatprep.mubr.f32.mxu1 %v4601_v54  ;;  %4619 = vst [vmem:[#allocation27_spill] sm:$0xff] %v4126_v35  ;;  %v4131_v54 = vld [vmem:[%s3311_s8] sm:$0xff] }
 0x283   : > { %1465 = vmatpush1.msra.mxu0 %v3895_v14  ;;  %1536 = vmatpush1.msra.mxu1 %v3898_v28  ;;  %4620 = vst [vmem:[#allocation28_spill] sm:$0xff] %v4131_v54  ;;  %s2841_s27 = sshll.u32 %s4384_s24, 3 }
 0x284   : > { %1466 = vmatprep.subr.mxu0 %v3903_v30  ;;  %1537 = vmatprep.subr.mxu1 %v3906_v31  ;;  %s1892_s28 = sshra.s32 %s2841_s27, 3 }
 0x285   : > { %1467 = vmatpush1.msra.mxu0 %v3911_v26  ;;  %1538 = vmatpush1.msra.mxu1 %v3914_v50  ;;  %s2869_s9 = sshll.u32 %s1892_s28, 5 }
 0x286   : > { %1468 = vmatprep.subr.mxu0 %v3919_v59  ;;  %1539 = vmatprep.subr.mxu1 %v3922_v5  ;;  %s1896_s12 = scalar_lea.vmem [#allocation2], %s2869_s9 }
 0x287   : > { %1469 = vmatpush1.msra.mxu0 %v3927_v34  ;;  %1540 = vmatpush1.msra.mxu1 %v3930_v38 }
 0x288   : > { %1470 = vmatprep.subr.mxu0 %v3935_v23  ;;  %1541 = vmatprep.subr.mxu1 %v3938_v32 }
 0x289   : > { %1471 = vmatpush1.msra.mxu0 %v3943_v24  ;;  %1542 = vmatpush1.msra.mxu1 %v3946_v29 }
 0x28a   : > { %1472 = vmatprep.subr.mxu0 %v3951_v33  ;;  %1543 = vmatprep.subr.mxu1 %v3954_v36 }
 0x28b   : > { %1473 = vmatpush1.msra.mxu0 %v3959_v37  ;;  %1544 = vmatpush1.msra.mxu1 %v3962_v39 }
 0x28c   : > { %1474 = vmatprep.subr.mxu0 %v3967_v40  ;;  %1545 = vmatprep.subr.mxu1 %v3970_v41 }
 0x28d   : > { %1475 = vmatpush1.msra.mxu0 %v3975_v42  ;;  %1546 = vmatpush1.msra.mxu1 %v3978_v44 }
 0x28e   : > { %1476 = vmatprep.subr.mxu0 %v3983_v45  ;;  %1547 = vmatprep.subr.mxu1 %v3986_v46 }
 0x28f   : > { %1477 = vmatpush1.msra.mxu0 %v3989_v47  ;;  %1548 = vmatpush1.msra.mxu1 %v3994_v48 }
 0x290   : > { %1478 = vmatprep.subr.mxu0 %v3997_v49  ;;  %1549 = vmatprep.subr.mxu1 %v4000_v51 }
 0x291   : > { %1479 = vmatpush1.msra.mxu0 %v4005_v52  ;;  %1550 = vmatpush1.msra.mxu1 %v4008_v53 }
 0x292   : > { %1480 = vmatprep.subr.mxu0 %v4011_v55  ;;  %1551 = vmatprep.subr.mxu1 %v4016_v56 }
 0x293   : > { %1481 = vmatpush1.msra.mxu0 %v4019_v57  ;;  %1552 = vmatpush1.msra.mxu1 %v4022_v58 }
 0x294   : > { %1482 = vmatprep.subr.mxu0 %v4027_v60  ;;  %1553 = vmatprep.subr.mxu1 %v4030_v61 }
 0x295   : > { %1483 = vmatpush1.msra.mxu0 %v4035_v62  ;;  %1554 = vmatpush1.msra.mxu1 %v4038_v63 }
 0x296   : > { %1484 = vmatprep.subr.mxu0 %v4043_v1  ;;  %1555 = vmatprep.subr.mxu1 %v4046_v2 }
 0x297   : > { %1485 = vmatpush1.msra.mxu0 %v4051_v3  ;;  %1556 = vmatpush1.msra.mxu1 %v4054_v4 }
 0x298   : > { %1486 = vmatprep.subr.mxu0 %v4059_v6  ;;  %1557 = vmatprep.subr.mxu1 %v4062_v7 }
 0x299   : > { %1487 = vmatpush1.msra.mxu0 %v4067_v8  ;;  %1558 = vmatpush1.msra.mxu1 %v4070_v9 }
 0x29a   : > { %1488 = vmatprep.subr.mxu0 %v4075_v10  ;;  %1559 = vmatprep.subr.mxu1 %v4078_v11 }
 0x29b   : > { %1489 = vmatpush1.msra.mxu0 %v4083_v12  ;;  %1560 = vmatpush1.msra.mxu1 %v4086_v13  ;;  %v1146_v13 = vld [vmem:[%s1143_s14 + $0x10] sm:$0xff] }
 0x29c   : > { %1490 = vmatprep.subr.mxu0 %v4091_v15  ;;  %1561 = vmatprep.subr.mxu1 %v4094_v16  ;;  %v4134_v16 = vld [vmem:[%s3311_s8 + $0x10] sm:$0xff] }
 0x29d   : > { %1491 = vmatpush1.msra.mxu0 %v4099_v17  ;;  %1562 = vmatpush1.msra.mxu1 %v4102_v18  ;;  %4621 = vst [vmem:[#allocation29_spill] sm:$0xff] %v4134_v16  ;;  %v1147_v18 = vld [vmem:[%s1143_s14 + $0x18] sm:$0xff] }
 0x29e   : > { %1492 = vmatprep.subr.mxu0 %v4107_v19  ;;  %1563 = vmatprep.subr.mxu1 %v4110_v20 }
 0x29f   : > { %1493 = vmatpush1.msra.mxu0 %v4115_v21  ;;  %1564 = vmatpush1.msra.mxu1 %v4118_v25 }
 0x2a0   : > { %1494 = vmatprep.subr.mxu0 %v4123_v27  ;;  %1565 = vmatprep.subr.mxu1 %v4126_v35  ;;  %v1144_v27 = vld [vmem:[%s1143_s14] sm:$0xff] }
 0x2a1   : > { %1495 = vmatpush1.msra.mxu0 %v4131_v54  ;;  %1566 = vmatpush1.msra.mxu1 %v4134_v16  ;;  %v1145_v54 = vld [vmem:[%s1143_s14 + $0x8] sm:$0xff]  ;;  %s2139_s14 = scalar_lea.vmem %s3801_s5, %s2841_s27 }
 0x2a2   : > { %1715 = vmatprep.subr.mxu0 %v3887_v43  ;;  %1786 = vmatprep.subr.mxu1 %v3890_v0 }
 0x341   : > { %v1279_v35 = vpop.f32.mrf.mxu0  ;;  %v1350_v43 = vpop.f32.mrf.mxu1 }
 0x342   : > { %v1355_v25 = vadd.f32 %v1279_v35, %v1144_v27  ;;  %v1357_v11 = vadd.f32 %v1350_v43, %v1146_v13  ;;  %v4625_v13 = vld [vmem:[#allocation18_spill] sm:$0xff]  ;;  %v4628_v35 = vld [vmem:[#allocation17_spill] sm:$0xff] }
 0x343   : > { %v1281_v21 = vpop.f32.mrf.mxu0  ;;  %v1352_v19 = vpop.f32.mrf.mxu1 }
 0x344   : > { %v2826_v16 = vmul.f32 -1.442695, %v1355_v25  ;;  %v1356_v20 = vadd.f32 %v1281_v21, %v1145_v54  ;;  %v1358_v17 = vadd.f32 %v1352_v19, %v1147_v18  ;;  %v4627_v19 = vld [vmem:[#allocation20_spill] sm:$0xff] }
 0x346   : > { %2951 = vpow2.f32 %v2826_v16  ;;  %v2827_v0 = vmul.f32 -1.442695, %v1356_v20  ;;  %v2828_v15 = vmul.f32 -1.442695, %v1358_v17 }
 0x348   : > { %2953 = vpow2.f32 %v2827_v0 }
 0x349   : > { %2955 = vpow2.f32 %v2828_v15  ;;  %v4626_v15 = vld [vmem:[#allocation15_spill] sm:$0xff] }
 0x353   : > { %v2952_v12 = vpop.eup %2951 }
 0x354   : > { %v1362_v10 = vadd.f32 1.0, %v2952_v12  ;;  %v4624_v12 = vld [vmem:[#allocation13_spill] sm:$0xff] }
 0x355   : > { %v2954_v9 = vpop.eup %2953 }
 0x356   : > { %2957 = vrcp.f32 %v1362_v10  ;;  %v1368_v27 = vadd.f32 1.0, %v2954_v9  ;;  %v2956_v54 = vpop.eup %2955 }
 0x357   : > { %2959 = vtanh.f32 %v1357_v11  ;;  %v1375_v21 = vadd.f32 1.0, %v2956_v54  ;;  %v4623_v11 = vld [vmem:[#allocation16_spill] sm:$0xff]  ;;  %v4630_v54 = vld [vmem:[#allocation19_spill] sm:$0xff] }
 0x358   : > { %2961 = vrcp.f32 %v1368_v27  ;;  %v4629_v27 = vld [vmem:[#allocation22_spill] sm:$0xff] }
 0x359   : > { %2963 = vrcp.f32 %v1375_v21  ;;  %v4634_v21 = vld [vmem:[#allocation23_spill] sm:$0xff] }
 0x363   : > { %v2958_v16 = vpop.eup %2957 }
 0x364   : > { %v2960_v20 = vpop.eup %2959 }
 0x365   : > { %v2962_v0 = vpop.eup %2961  ;;  %v1380_v25 = vmul.f32 %v2960_v20, %v2958_v16  ;;  %v4631_v16 = vld [vmem:[#allocation24_spill] sm:$0xff]  ;;  %v4632_v20 = vld [vmem:[#allocation21_spill] sm:$0xff] }
 0x366   : > { %v1379_v17 = vmul.f32 %v2962_v0, %v3878_v22  ;;  %v2964_v43 = vpop.eup %2963  ;;  %v4622_v22 = vld [vmem:[#allocation12_spill] sm:$0xff]  ;;  %v4633_v0 = vld [vmem:[#allocation25_spill] sm:$0xff] }
 0x368   : > { %v4152_v18 = vadd.f32 %v1380_v25, %v1379_v17  ;;  %v4635_v25 = vld [vmem:[#allocation26_spill] sm:$0xff]  ;;  %v4636_v17 = vld [vmem:[#allocation27_spill] sm:$0xff] }
 0x36a   : > { %2965 = vtanh.f32 %v4152_v18 }
 0x377   : > { %v2966_v10 = vpop.eup %2965 }
 0x378   : > { %v1383_v9 = vmul.f32 %v2966_v10, %v2964_v43  ;;  %v4637_v43 = vld [vmem:[#allocation28_spill] sm:$0xff]  ;;  %v4638_v10 = vmov 0.0  }
 0x37a   : > { %1387 = vst [vmem:[%s1386_s30] sm:$0xff] %v1383_v9  ;;  %1529 = vmatmul.mubr.f32.vlgmr.msra.gmra.mxu0 %v1383_v9  ;;  %1600 = vmatmul.mubr.f32.vlgmr.msra.gmra.mxu1 %v1383_v9  ;;  %v4639_v9 = vld [vmem:[#allocation29_spill] sm:$0xff]  ;;  %s4464_s30 = scalar_select %p287_p4, 1, 6 }
 0x37b   : > { %1716 = vmatpush1.msra.mxu0 %v3895_v14  ;;  %1787 = vmatpush1.msra.mxu1 %v3898_v28 }
 0x37c   : > { %1717 = vmatprep.subr.mxu0 %v3903_v30  ;;  %1788 = vmatprep.subr.mxu1 %v3906_v31  ;;  %s2847_s15 = sshll.u32 %s4464_s30, 3 }
 0x37d   : > { %1718 = vmatpush1.msra.mxu0 %v3911_v26  ;;  %1789 = vmatpush1.msra.mxu1 %v3914_v50  ;;  %s2143_s21 = sshra.s32 %s2847_s15, 3 }
 0x37e   : > { %1719 = vmatprep.subr.mxu0 %v3919_v59  ;;  %1790 = vmatprep.subr.mxu1 %v3922_v5  ;;  %s2870_s22 = sshll.u32 %s2143_s21, 5 }
 0x37f   : > { %1720 = vmatpush1.msra.mxu0 %v3927_v34  ;;  %1791 = vmatpush1.msra.mxu1 %v3930_v38  ;;  %s2147_s25 = scalar_lea.vmem [#allocation2], %s2870_s22 }
 0x380   : > { %1721 = vmatprep.subr.mxu0 %v3935_v23  ;;  %1792 = vmatprep.subr.mxu1 %v3938_v32 }
 0x381   : > { %1722 = vmatpush1.msra.mxu0 %v3943_v24  ;;  %1793 = vmatpush1.msra.mxu1 %v3946_v29 }
 0x382   : > { %1723 = vmatprep.subr.mxu0 %v3951_v33  ;;  %1794 = vmatprep.subr.mxu1 %v3954_v36 }
 0x383   : > { %1724 = vmatpush1.msra.mxu0 %v3959_v37  ;;  %1795 = vmatpush1.msra.mxu1 %v3962_v39 }
 0x384   : > { %1725 = vmatprep.subr.mxu0 %v3967_v40  ;;  %1796 = vmatprep.subr.mxu1 %v3970_v41 }
 0x385   : > { %1726 = vmatpush1.msra.mxu0 %v3975_v42  ;;  %1797 = vmatpush1.msra.mxu1 %v3978_v44 }
 0x386   : > { %1727 = vmatprep.subr.mxu0 %v3983_v45  ;;  %1798 = vmatprep.subr.mxu1 %v3986_v46 }
 0x387   : > { %1728 = vmatpush1.msra.mxu0 %v3989_v47  ;;  %1799 = vmatpush1.msra.mxu1 %v3994_v48 }
 0x388   : > { %1729 = vmatprep.subr.mxu0 %v3997_v49  ;;  %1800 = vmatprep.subr.mxu1 %v4000_v51 }
 0x389   : > { %1730 = vmatpush1.msra.mxu0 %v4005_v52  ;;  %1801 = vmatpush1.msra.mxu1 %v4008_v53 }
 0x38a   : > { %1731 = vmatprep.subr.mxu0 %v4011_v55  ;;  %1802 = vmatprep.subr.mxu1 %v4016_v56 }
 0x38b   : > { %1732 = vmatpush1.msra.mxu0 %v4019_v57  ;;  %1803 = vmatpush1.msra.mxu1 %v4022_v58 }
 0x38c   : > { %1733 = vmatprep.subr.mxu0 %v4027_v60  ;;  %1804 = vmatprep.subr.mxu1 %v4030_v61 }
 0x38d   : > { %1734 = vmatpush1.msra.mxu0 %v4035_v62  ;;  %1805 = vmatpush1.msra.mxu1 %v4038_v63 }
 0x38e   : > { %1735 = vmatprep.subr.mxu0 %v4043_v1  ;;  %1806 = vmatprep.subr.mxu1 %v4046_v2 }
 0x38f   : > { %1736 = vmatpush1.msra.mxu0 %v4051_v3  ;;  %1807 = vmatpush1.msra.mxu1 %v4054_v4 }
 0x390   : > { %1737 = vmatprep.subr.mxu0 %v4059_v6  ;;  %1808 = vmatprep.subr.mxu1 %v4062_v7 }
 0x391   : > { %1738 = vmatpush1.msra.mxu0 %v4067_v8  ;;  %1809 = vmatpush1.msra.mxu1 %v4622_v22 }
 0x392   : > { %1739 = vmatprep.subr.mxu0 %v4623_v11  ;;  %1810 = vmatprep.subr.mxu1 %v4624_v12 }
 0x393   : > { %1740 = vmatpush1.msra.mxu0 %v4625_v13  ;;  %1811 = vmatpush1.msra.mxu1 %v4626_v15  ;;  %v1397_v15 = vld [vmem:[%s1394_s26 + $0x10] sm:$0xff] }
 0x394   : > { %1741 = vmatprep.subr.mxu0 %v4627_v19  ;;  %1812 = vmatprep.subr.mxu1 %v4628_v35 }
 0x395   : > { %1742 = vmatpush1.msra.mxu0 %v4629_v27  ;;  %1813 = vmatpush1.msra.mxu1 %v4630_v54  ;;  %v4640_v54 = vld [vmem:[#allocation11_spill] sm:$0xff]  ;;  %v1398_v27 = vld [vmem:[%s1394_s26 + $0x18] sm:$0xff] }
 0x396   : > { %1743 = vmatprep.subr.mxu0 %v4631_v16  ;;  %1814 = vmatprep.subr.mxu1 %v4632_v20  ;;  %v4641_v16 = vld [vmem:[#allocation14_spill] sm:$0xff] }
 0x397   : > { %1744 = vmatpush1.msra.mxu0 %v4633_v0  ;;  %1815 = vmatpush1.msra.mxu1 %v4634_v21 }
 0x398   : > { %1745 = vmatprep.subr.mxu0 %v4635_v25  ;;  %1816 = vmatprep.subr.mxu1 %v4636_v17 }
 0x399   : > { %1746 = vmatpush1.msra.mxu0 %v4637_v43  ;;  %1779 = vmatprep.mubr.f32.mxu0 %v4638_v10  ;;  %v1395_v43 = vld [vmem:[%s1394_s26] sm:$0xff] }
 0x39a   : > { %1817 = vmatpush1.msra.mxu1 %v4639_v9  ;;  %1850 = vmatprep.mubr.f32.mxu1 %v4638_v10  ;;  %v1396_v9 = vld [vmem:[%s1394_s26 + $0x8] sm:$0xff]  ;;  %s4475_s26 = scalar_select %p287_p4, 0, 7 }
 0x39b   : > { %1966 = vmatprep.subr.mxu0 %v4640_v54  ;;  %2037 = vmatprep.subr.mxu1 %v4641_v16 }
 0x43a   : > { %v1530_v17 = vpop.f32.mrf.mxu0  ;;  %v1601_v54 = vpop.f32.mrf.mxu1 }
 0x43b   : > { %v1606_v25 = vadd.f32 %v1530_v17, %v1395_v43  ;;  %v1608_v12 = vadd.f32 %v1601_v54, %v1397_v15  ;;  %v4644_v15 = vld [vmem:[#allocation13_spill] sm:$0xff]  ;;  %v4646_v54 = vld [vmem:[#allocation15_spill] sm:$0xff] }
 0x43c   : > { %v1532_v21 = vpop.f32.mrf.mxu0  ;;  %v1603_v20 = vpop.f32.mrf.mxu1 }
 0x43d   : > { %v2832_v10 = vmul.f32 -1.442695, %v1606_v25  ;;  %v1607_v0 = vadd.f32 %v1532_v21, %v1396_v9  ;;  %v1609_v35 = vadd.f32 %v1603_v20, %v1398_v27  ;;  %v4647_v20 = vld [vmem:[#allocation20_spill] sm:$0xff]  ;;  %v4648_v9 = vld [vmem:[#allocation17_spill] sm:$0xff] }
 0x43f   : > { %2967 = vpow2.f32 %v2832_v10  ;;  %v2833_v16 = vmul.f32 -1.442695, %v1607_v0  ;;  %v2834_v19 = vmul.f32 -1.442695, %v1609_v35 }
 0x441   : > { %2969 = vpow2.f32 %v2833_v16 }
 0x442   : > { %2971 = vpow2.f32 %v2834_v19  ;;  %v4645_v19 = vld [vmem:[#allocation18_spill] sm:$0xff] }
 0x44c   : > { %v2968_v13 = vpop.eup %2967 }
 0x44d   : > { %v1613_v11 = vadd.f32 1.0, %v2968_v13 }
 0x44e   : > { %v2970_v22 = vpop.eup %2969 }
 0x44f   : > { %2973 = vrcp.f32 %v1613_v11  ;;  %v1619_v17 = vadd.f32 1.0, %v2970_v22  ;;  %v2972_v21 = vpop.eup %2971 }
 0x450   : > { %2975 = vtanh.f32 %v1608_v12  ;;  %v1626_v43 = vadd.f32 1.0, %v2972_v21  ;;  %v4643_v12 = vld [vmem:[#allocation16_spill] sm:$0xff]  ;;  %v4650_v21 = vld [vmem:[#allocation19_spill] sm:$0xff] }
 0x451   : > { %2977 = vrcp.f32 %v1619_v17  ;;  %v4649_v17 = vld [vmem:[#allocation22_spill] sm:$0xff] }
 0x452   : > { %2979 = vrcp.f32 %v1626_v43  ;;  %v4654_v43 = vld [vmem:[#allocation23_spill] sm:$0xff] }
 0x45c   : > { %v2974_v25 = vpop.eup %2973 }
 0x45d   : > { %v2976_v0 = vpop.eup %2975 }
 0x45e   : > { %v2978_v16 = vpop.eup %2977  ;;  %v1631_v10 = vmul.f32 %v2976_v0, %v2974_v25  ;;  %v4651_v25 = vld [vmem:[#allocation24_spill] sm:$0xff]  ;;  %v4652_v0 = vld [vmem:[#allocation21_spill] sm:$0xff] }
 0x45f   : > { %v1630_v35 = vmul.f32 %v2978_v16, %v4152_v18  ;;  %v2980_v13 = vpop.eup %2979  ;;  %v4642_v18 = vld [vmem:[#allocation12_spill] sm:$0xff]  ;;  %v4653_v16 = vld [vmem:[#allocation25_spill] sm:$0xff] }
 0x461   : > { %v4232_v27 = vadd.f32 %v1631_v10, %v1630_v35  ;;  %v4655_v10 = vld [vmem:[#allocation26_spill] sm:$0xff]  ;;  %v4656_v35 = vld [vmem:[#allocation27_spill] sm:$0xff] }
 0x463   : > { %2981 = vtanh.f32 %v4232_v27 }
 0x470   : > { %v2982_v11 = vpop.eup %2981 }
 0x471   : > { %v1634_v22 = vmul.f32 %v2982_v11, %v2980_v13  ;;  %v4657_v13 = vld [vmem:[#allocation28_spill] sm:$0xff]  ;;  %v4658_v11 = vmov 0.0  }
 0x473   : > { %1638 = vst [vmem:[%s1637_s29] sm:$0xff] %v1634_v22  ;;  %1780 = vmatmul.mubr.f32.vlgmr.msra.gmra.mxu0 %v1634_v22  ;;  %1851 = vmatmul.mubr.f32.vlgmr.msra.gmra.mxu1 %v1634_v22  ;;  %v4659_v22 = vld [vmem:[#allocation29_spill] sm:$0xff]  ;;  %s2853_s29 = sshll.u32 %s4475_s26, 3 }
 0x474   : > { %1967 = vmatpush1.msra.mxu0 %v3895_v14  ;;  %2038 = vmatpush1.msra.mxu1 %v3898_v28  ;;  %s2394_s10 = sshra.s32 %s2853_s29, 3  ;;  %s2641_s19 = scalar_lea.vmem %s3801_s5, %s2853_s29 }
 0x475   : > { %1968 = vmatprep.subr.mxu0 %v3903_v30  ;;  %2039 = vmatprep.subr.mxu1 %v3906_v31  ;;  %s2871_s11 = sshll.u32 %s2394_s10, 5 }
 0x476   : > { %1969 = vmatpush1.msra.mxu0 %v3911_v26  ;;  %2040 = vmatpush1.msra.mxu1 %v3914_v50  ;;  %s2398_s13 = scalar_lea.vmem [#allocation2], %s2871_s11 }
 0x477   : > { %1970 = vmatprep.subr.mxu0 %v3919_v59  ;;  %2041 = vmatprep.subr.mxu1 %v3922_v5 }
 0x478   : > { %1971 = vmatpush1.msra.mxu0 %v3927_v34  ;;  %2042 = vmatpush1.msra.mxu1 %v3930_v38 }
 0x479   : > { %1972 = vmatprep.subr.mxu0 %v3935_v23  ;;  %2043 = vmatprep.subr.mxu1 %v3938_v32 }
 0x47a   : > { %1973 = vmatpush1.msra.mxu0 %v3943_v24  ;;  %2044 = vmatpush1.msra.mxu1 %v3946_v29 }
 0x47b   : > { %1974 = vmatprep.subr.mxu0 %v3951_v33  ;;  %2045 = vmatprep.subr.mxu1 %v3954_v36 }
 0x47c   : > { %1975 = vmatpush1.msra.mxu0 %v3959_v37  ;;  %2046 = vmatpush1.msra.mxu1 %v3962_v39 }
 0x47d   : > { %1976 = vmatprep.subr.mxu0 %v3967_v40  ;;  %2047 = vmatprep.subr.mxu1 %v3970_v41 }
 0x47e   : > { %1977 = vmatpush1.msra.mxu0 %v3975_v42  ;;  %2048 = vmatpush1.msra.mxu1 %v3978_v44 }
 0x47f   : > { %1978 = vmatprep.subr.mxu0 %v3983_v45  ;;  %2049 = vmatprep.subr.mxu1 %v3986_v46 }
 0x480   : > { %1979 = vmatpush1.msra.mxu0 %v3989_v47  ;;  %2050 = vmatpush1.msra.mxu1 %v3994_v48 }
 0x481   : > { %1980 = vmatprep.subr.mxu0 %v3997_v49  ;;  %2051 = vmatprep.subr.mxu1 %v4000_v51 }
 0x482   : > { %1981 = vmatpush1.msra.mxu0 %v4005_v52  ;;  %2052 = vmatpush1.msra.mxu1 %v4008_v53 }
 0x483   : > { %1982 = vmatprep.subr.mxu0 %v4011_v55  ;;  %2053 = vmatprep.subr.mxu1 %v4016_v56 }
 0x484   : > { %1983 = vmatpush1.msra.mxu0 %v4019_v57  ;;  %2054 = vmatpush1.msra.mxu1 %v4022_v58 }
 0x485   : > { %1984 = vmatprep.subr.mxu0 %v4027_v60  ;;  %2055 = vmatprep.subr.mxu1 %v4030_v61 }
 0x486   : > { %1985 = vmatpush1.msra.mxu0 %v4035_v62  ;;  %2056 = vmatpush1.msra.mxu1 %v4038_v63 }
 0x487   : > { %1986 = vmatprep.subr.mxu0 %v4043_v1  ;;  %2057 = vmatprep.subr.mxu1 %v4046_v2 }
 0x488   : > { %1987 = vmatpush1.msra.mxu0 %v4051_v3  ;;  %2058 = vmatpush1.msra.mxu1 %v4054_v4 }
 0x489   : > { %1988 = vmatprep.subr.mxu0 %v4059_v6  ;;  %2059 = vmatprep.subr.mxu1 %v4062_v7 }
 0x48a   : > { %1989 = vmatpush1.msra.mxu0 %v4067_v8  ;;  %2060 = vmatpush1.msra.mxu1 %v4642_v18 }
 0x48b   : > { %1990 = vmatprep.subr.mxu0 %v4643_v12  ;;  %2061 = vmatprep.subr.mxu1 %v4644_v15 }
 0x48c   : > { %1991 = vmatpush1.msra.mxu0 %v4645_v19  ;;  %2062 = vmatpush1.msra.mxu1 %v4646_v54  ;;  %v1648_v54 = vld [vmem:[%s1645_s7 + $0x10] sm:$0xff] }
 0x48d   : > { %1992 = vmatprep.subr.mxu0 %v4647_v20  ;;  %2063 = vmatprep.subr.mxu1 %v4648_v9 }
 0x48e   : > { %1993 = vmatpush1.msra.mxu0 %v4649_v17  ;;  %2064 = vmatpush1.msra.mxu1 %v4650_v21  ;;  %v4660_v21 = vld [vmem:[#allocation11_spill] sm:$0xff]  ;;  %v1649_v17 = vld [vmem:[%s1645_s7 + $0x18] sm:$0xff] }
 0x48f   : > { %1994 = vmatprep.subr.mxu0 %v4651_v25  ;;  %2065 = vmatprep.subr.mxu1 %v4652_v0  ;;  %v4661_v25 = vld [vmem:[#allocation14_spill] sm:$0xff] }
 0x490   : > { %1995 = vmatpush1.msra.mxu0 %v4653_v16  ;;  %2066 = vmatpush1.msra.mxu1 %v4654_v43 }
 0x491   : > { %1996 = vmatprep.subr.mxu0 %v4655_v10  ;;  %2067 = vmatprep.subr.mxu1 %v4656_v35 }
 0x492   : > { %1997 = vmatpush1.msra.mxu0 %v4657_v13  ;;  %2030 = vmatprep.mubr.f32.mxu0 %v4658_v11  ;;  %v1646_v13 = vld [vmem:[%s1645_s7] sm:$0xff] }
 0x493   : > { %2068 = vmatpush1.msra.mxu1 %v4659_v22  ;;  %2101 = vmatprep.mubr.f32.mxu1 %v4658_v11  ;;  %v1647_v22 = vld [vmem:[%s1645_s7 + $0x8] sm:$0xff] }
 0x494   : > { %2217 = vmatprep.subr.mxu0 %v4660_v21  ;;  %2288 = vmatprep.subr.mxu1 %v4661_v25 }
 0x533   : > { %v1781_v35 = vpop.f32.mrf.mxu0  ;;  %v1852_v21 = vpop.f32.mrf.mxu1 }
 0x534   : > { %v1857_v10 = vadd.f32 %v1781_v35, %v1646_v13  ;;  %v1859_v15 = vadd.f32 %v1852_v21, %v1648_v54  ;;  %v2464_v21 = vld [vmem:[%s3311_s8 + $0x1e0] sm:$0xff] }
 0x535   : > { %v1783_v43 = vpop.f32.mrf.mxu0  ;;  %v1854_v0 = vpop.f32.mrf.mxu1 }
 0x536   : > { %v2838_v11 = vmul.f32 -1.442695, %v1857_v10  ;;  %v1858_v16 = vadd.f32 %v1783_v43, %v1647_v22  ;;  %v1860_v9 = vadd.f32 %v1854_v0, %v1649_v17  ;;  %v2467_v0 = vld [vmem:[%s3311_s8 + $0x1f8] sm:$0xff] }
 0x538   : > { %2983 = vpow2.f32 %v2838_v11  ;;  %v2839_v25 = vmul.f32 -1.442695, %v1858_v16  ;;  %v2840_v20 = vmul.f32 -1.442695, %v1860_v9 }
 0x53a   : > { %2985 = vpow2.f32 %v2839_v25  ;;  %v2466_v25 = vld [vmem:[%s3311_s8 + $0x1f0] sm:$0xff] }
 0x53b   : > { %2987 = vpow2.f32 %v2840_v20  ;;  %v2465_v20 = vld [vmem:[%s3311_s8 + $0x1e8] sm:$0xff] }
 0x545   : > { %v2984_v19 = vpop.eup %2983 }
 0x546   : > { %v1864_v12 = vadd.f32 1.0, %v2984_v19 }
 0x547   : > { %v2986_v18 = vpop.eup %2985 }
 0x548   : > { %2989 = vrcp.f32 %v1864_v12  ;;  %v1870_v35 = vadd.f32 1.0, %v2986_v18  ;;  %v2988_v43 = vpop.eup %2987 }
 0x549   : > { %2991 = vtanh.f32 %v1859_v15  ;;  %v1877_v11 = vadd.f32 1.0, %v2988_v43  ;;  %v2463_v43 = vld [vmem:[%s3311_s8 + $0x1d8] sm:$0xff] }
 0x54a   : > { %2993 = vrcp.f32 %v1870_v35  ;;  %v2461_v35 = vld [vmem:[%s3311_s8 + $0x1c8] sm:$0xff] }
 0x54b   : > { %2995 = vrcp.f32 %v1877_v11  ;;  %v2459_v11 = vld [vmem:[%s3311_s8 + $0x1b8] sm:$0xff] }
 0x555   : > { %v2990_v10 = vpop.eup %2989 }
 0x556   : > { %v2992_v16 = vpop.eup %2991 }
 0x557   : > { %v2994_v13 = vpop.eup %2993  ;;  %v1882_v22 = vmul.f32 %v2992_v16, %v2990_v10  ;;  %v2460_v10 = vld [vmem:[%s3311_s8 + $0x1c0] sm:$0xff]  ;;  %v2462_v16 = vld [vmem:[%s3311_s8 + $0x1d0] sm:$0xff] }
 0x558   : > { %v1881_v9 = vmul.f32 %v2994_v13, %v4232_v27  ;;  %v2996_v19 = vpop.eup %2995  ;;  %v2457_v13 = vld [vmem:[%s3311_s8 + $0x1a8] sm:$0xff] }
 0x55a   : > { %v4312_v17 = vadd.f32 %v1882_v22, %v1881_v9  ;;  %v2456_v22 = vld [vmem:[%s3311_s8 + $0x1a0] sm:$0xff]  ;;  %v2458_v9 = vld [vmem:[%s3311_s8 + $0x1b0] sm:$0xff] }
 0x55c   : > { %2997 = vtanh.f32 %v4312_v17 }
 0x569   : > { %v2998_v12 = vpop.eup %2997 }
 0x56a   : > { %v1885_v18 = vmul.f32 %v2998_v12, %v2996_v19  ;;  %v2455_v19 = vld [vmem:[%s3311_s8 + $0x198] sm:$0xff]  ;;  %v2452_v12 = vld [vmem:[%s3311_s8 + $0x180] sm:$0xff] }
 0x56c   : > { %1889 = vst [vmem:[%s1888_s18] sm:$0xff] %v1885_v18  ;;  %2031 = vmatmul.mubr.f32.vlgmr.msra.gmra.mxu0 %v1885_v18  ;;  %2102 = vmatmul.mubr.f32.vlgmr.msra.gmra.mxu1 %v1885_v18  ;;  %v2454_v18 = vld [vmem:[%s3311_s8 + $0x190] sm:$0xff] }
 0x56d   : > { %2218 = vmatpush1.msra.mxu0 %v3895_v14  ;;  %2289 = vmatpush1.msra.mxu1 %v3898_v28  ;;  %v4662_v14 = vld [vmem:[#allocation12_spill] sm:$0xff] }
 0x56e   : > { %2219 = vmatprep.subr.mxu0 %v3903_v30  ;;  %2290 = vmatprep.subr.mxu1 %v3906_v31  ;;  %v4663_v28 = vld [vmem:[#allocation16_spill] sm:$0xff]  ;;  %v4664_v30 = vld [vmem:[#allocation13_spill] sm:$0xff]  ;;  %v4665_v31 = vld [vmem:[#allocation18_spill] sm:$0xff] }
 0x56f   : > { %2220 = vmatpush1.msra.mxu0 %v3911_v26  ;;  %2291 = vmatpush1.msra.mxu1 %v3914_v50  ;;  %v4666_v26 = vld [vmem:[#allocation15_spill] sm:$0xff]  ;;  %v4667_v50 = vld [vmem:[#allocation20_spill] sm:$0xff] }
 0x570   : > { %2221 = vmatprep.subr.mxu0 %v3919_v59  ;;  %2292 = vmatprep.subr.mxu1 %v3922_v5  ;;  %v4668_v59 = vld [vmem:[#allocation17_spill] sm:$0xff]  ;;  %v4669_v5 = vld [vmem:[#allocation22_spill] sm:$0xff] }
 0x571   : > { %2222 = vmatpush1.msra.mxu0 %v3927_v34  ;;  %2293 = vmatpush1.msra.mxu1 %v3930_v38  ;;  %v4670_v34 = vld [vmem:[#allocation19_spill] sm:$0xff]  ;;  %v4671_v38 = vld [vmem:[#allocation24_spill] sm:$0xff] }
 0x572   : > { %2223 = vmatprep.subr.mxu0 %v3935_v23  ;;  %2294 = vmatprep.subr.mxu1 %v3938_v32  ;;  %v4672_v23 = vld [vmem:[#allocation21_spill] sm:$0xff] }
 0x573   : > { %2224 = vmatpush1.msra.mxu0 %v3943_v24  ;;  %2295 = vmatpush1.msra.mxu1 %v3946_v29  ;;  %v4673_v32 = vld [vmem:[#allocation25_spill] sm:$0xff]  ;;  %v4674_v24 = vld [vmem:[#allocation23_spill] sm:$0xff]  ;;  %v4675_v29 = vld [vmem:[#allocation26_spill] sm:$0xff] }
 0x574   : > { %2225 = vmatprep.subr.mxu0 %v3951_v33  ;;  %2296 = vmatprep.subr.mxu1 %v3954_v36  ;;  %v4676_v33 = vld [vmem:[#allocation27_spill] sm:$0xff]  ;;  %v4677_v36 = vld [vmem:[#allocation28_spill] sm:$0xff] }
 0x575   : > { %2226 = vmatpush1.msra.mxu0 %v3959_v37  ;;  %2297 = vmatpush1.msra.mxu1 %v3962_v39  ;;  %v4678_v37 = vmov 0.0   ;;  %v4679_v39 = vld [vmem:[#allocation29_spill] sm:$0xff] }
 0x576   : > { %2227 = vmatprep.subr.mxu0 %v3967_v40  ;;  %2298 = vmatprep.subr.mxu1 %v3970_v41  ;;  %v1897_v40 = vld [vmem:[%s1896_s12] sm:$0xff] }
 0x577   : > { %2228 = vmatpush1.msra.mxu0 %v3975_v42  ;;  %2299 = vmatpush1.msra.mxu1 %v3978_v44  ;;  %v1898_v44 = vld [vmem:[%s1896_s12 + $0x8] sm:$0xff] }
 0x578   : > { %2229 = vmatprep.subr.mxu0 %v3983_v45  ;;  %2300 = vmatprep.subr.mxu1 %v3986_v46 }
 0x579   : > { %2230 = vmatpush1.msra.mxu0 %v3989_v47  ;;  %2301 = vmatpush1.msra.mxu1 %v3994_v48 }
 0x57a   : > { %2231 = vmatprep.subr.mxu0 %v3997_v49  ;;  %2302 = vmatprep.subr.mxu1 %v4000_v51 }
 0x57b   : > { %2232 = vmatpush1.msra.mxu0 %v4005_v52  ;;  %2303 = vmatpush1.msra.mxu1 %v4008_v53  ;;  %v1900_v52 = vld [vmem:[%s1896_s12 + $0x18] sm:$0xff] }
 0x57c   : > { %2233 = vmatprep.subr.mxu0 %v4011_v55  ;;  %2304 = vmatprep.subr.mxu1 %v4016_v56  ;;  %v1899_v56 = vld [vmem:[%s1896_s12 + $0x10] sm:$0xff] }
 0x57d   : > { %2234 = vmatpush1.msra.mxu0 %v4019_v57  ;;  %2305 = vmatpush1.msra.mxu1 %v4022_v58 }
 0x57e   : > { %2235 = vmatprep.subr.mxu0 %v4027_v60  ;;  %2306 = vmatprep.subr.mxu1 %v4030_v61 }
 0x57f   : > { %2236 = vmatpush1.msra.mxu0 %v4035_v62  ;;  %2307 = vmatpush1.msra.mxu1 %v4038_v63 }
 0x580   : > { %2237 = vmatprep.subr.mxu0 %v4043_v1  ;;  %2308 = vmatprep.subr.mxu1 %v4046_v2 }
 0x581   : > { %2238 = vmatpush1.msra.mxu0 %v4051_v3  ;;  %2309 = vmatpush1.msra.mxu1 %v4054_v4 }
 0x582   : > { %2239 = vmatprep.subr.mxu0 %v4059_v6  ;;  %2310 = vmatprep.subr.mxu1 %v4062_v7 }
 0x583   : > { %2240 = vmatpush1.msra.mxu0 %v4067_v8  ;;  %2311 = vmatpush1.msra.mxu1 %v4662_v14  ;;  %v2449_v14 = vld [vmem:[%s3311_s8 + $0x168] sm:$0xff] }
 0x584   : > { %2241 = vmatprep.subr.mxu0 %v4663_v28  ;;  %2312 = vmatprep.subr.mxu1 %v4664_v30  ;;  %v2451_v28 = vld [vmem:[%s3311_s8 + $0x178] sm:$0xff]  ;;  %v2448_v30 = vld [vmem:[%s3311_s8 + $0x160] sm:$0xff] }
 0x585   : > { %2242 = vmatpush1.msra.mxu0 %v4665_v31  ;;  %2313 = vmatpush1.msra.mxu1 %v4666_v26  ;;  %v2450_v31 = vld [vmem:[%s3311_s8 + $0x170] sm:$0xff]  ;;  %v2445_v26 = vld [vmem:[%s3311_s8 + $0x148] sm:$0xff] }
 0x586   : > { %2243 = vmatprep.subr.mxu0 %v4667_v50  ;;  %2314 = vmatprep.subr.mxu1 %v4668_v59  ;;  %v2447_v50 = vld [vmem:[%s3311_s8 + $0x158] sm:$0xff]  ;;  %v2444_v59 = vld [vmem:[%s3311_s8 + $0x140] sm:$0xff] }
 0x587   : > { %2244 = vmatpush1.msra.mxu0 %v4669_v5  ;;  %2315 = vmatpush1.msra.mxu1 %v4670_v34  ;;  %v2446_v5 = vld [vmem:[%s3311_s8 + $0x150] sm:$0xff]  ;;  %v2441_v34 = vld [vmem:[%s3311_s8 + $0x128] sm:$0xff] }
 0x588   : > { %2245 = vmatprep.subr.mxu0 %v4671_v38  ;;  %2316 = vmatprep.subr.mxu1 %v4672_v23  ;;  %v2443_v38 = vld [vmem:[%s3311_s8 + $0x138] sm:$0xff]  ;;  %v2440_v23 = vld [vmem:[%s3311_s8 + $0x120] sm:$0xff] }
 0x589   : > { %2246 = vmatpush1.msra.mxu0 %v4673_v32  ;;  %2317 = vmatpush1.msra.mxu1 %v4674_v24  ;;  %v2442_v32 = vld [vmem:[%s3311_s8 + $0x130] sm:$0xff]  ;;  %v2437_v24 = vld [vmem:[%s3311_s8 + $0x108] sm:$0xff] }
 0x58a   : > { %2247 = vmatprep.subr.mxu0 %v4675_v29  ;;  %2318 = vmatprep.subr.mxu1 %v4676_v33  ;;  %v2439_v29 = vld [vmem:[%s3311_s8 + $0x118] sm:$0xff]  ;;  %v2436_v33 = vld [vmem:[%s3311_s8 + $0x100] sm:$0xff] }
 0x58b   : > { %2248 = vmatpush1.msra.mxu0 %v4677_v36  ;;  %2281 = vmatprep.mubr.f32.mxu0 %v4678_v37  ;;  %v2438_v36 = vld [vmem:[%s3311_s8 + $0x110] sm:$0xff] }
 0x58c   : > { %2319 = vmatpush1.msra.mxu1 %v4679_v39  ;;  %2352 = vmatprep.mubr.f32.mxu1 %v4678_v37  ;;  %v2435_v39 = vld [vmem:[%s3311_s8 + $0xf8] sm:$0xff] }
 0x58d   : > { %2468 = vmatprep.subr.mxu0 %v2465_v20  ;;  %2539 = vmatprep.subr.mxu1 %v2467_v0  ;;  %v2406_v20 = vld [vmem:[%s3311_s8 + $0x10] sm:$0xff]  ;;  %v2148_v0 = vld [vmem:[%s2147_s25] sm:$0xff] }
 0x62c   : > { %v2032_v41 = vpop.f32.mrf.mxu0  ;;  %v2103_v48 = vpop.f32.mrf.mxu1 }
 0x62d   : > { %v2108_v42 = vadd.f32 %v2032_v41, %v1897_v40  ;;  %v2110_v58 = vadd.f32 %v2103_v48, %v1899_v56  ;;  %v2432_v40 = vld [vmem:[%s3311_s8 + $0xe0] sm:$0xff]  ;;  %v2434_v41 = vld [vmem:[%s3311_s8 + $0xf0] sm:$0xff]  ;;  %v2427_v48 = vld [vmem:[%s3311_s8 + $0xb8] sm:$0xff] }
 0x62e   : > { %v2034_v45 = vpop.f32.mrf.mxu0  ;;  %v2105_v51 = vpop.f32.mrf.mxu1  ;;  %v2422_v56 = vld [vmem:[%s3311_s8 + $0x90] sm:$0xff] }
 0x62f   : > { %v2844_v46 = vmul.f32 -1.442695, %v2108_v42  ;;  %v2109_v47 = vadd.f32 %v2034_v45, %v1898_v44  ;;  %v2111_v53 = vadd.f32 %v2105_v51, %v1900_v52  ;;  %v2429_v42 = vld [vmem:[%s3311_s8 + $0xc8] sm:$0xff]  ;;  %v2431_v44 = vld [vmem:[%s3311_s8 + $0xd8] sm:$0xff]  ;;  %v2428_v45 = vld [vmem:[%s3311_s8 + $0xc0] sm:$0xff] }
 0x630   : > { %v2426_v51 = vld [vmem:[%s3311_s8 + $0xb0] sm:$0xff]  ;;  %v2421_v52 = vld [vmem:[%s3311_s8 + $0x88] sm:$0xff] }
 0x631   : > { %2999 = vpow2.f32 %v2844_v46  ;;  %v2845_v49 = vmul.f32 -1.442695, %v2109_v47  ;;  %v2846_v55 = vmul.f32 -1.442695, %v2111_v53  ;;  %v2430_v46 = vld [vmem:[%s3311_s8 + $0xd0] sm:$0xff]  ;;  %v2425_v47 = vld [vmem:[%s3311_s8 + $0xa8] sm:$0xff] }
 0x632   : > { %v2423_v53 = vld [vmem:[%s3311_s8 + $0x98] sm:$0xff] }
 0x633   : > { %3001 = vpow2.f32 %v2845_v49  ;;  %v2424_v49 = vld [vmem:[%s3311_s8 + $0xa0] sm:$0xff] }
 0x634   : > { %3003 = vpow2.f32 %v2846_v55  ;;  %v2420_v55 = vld [vmem:[%s3311_s8 + $0x80] sm:$0xff] }
 0x63e   : > { %v3000_v57 = vpop.eup %2999 }
 0x63f   : > { %v2115_v60 = vadd.f32 1.0, %v3000_v57  ;;  %v2417_v57 = vld [vmem:[%s3311_s8 + $0x68] sm:$0xff] }
 0x640   : > { %v3002_v61 = vpop.eup %3001 }
 0x641   : > { %3005 = vrcp.f32 %v2115_v60  ;;  %v2121_v62 = vadd.f32 1.0, %v3002_v61  ;;  %v3004_v63 = vpop.eup %3003  ;;  %v2416_v60 = vld [vmem:[%s3311_s8 + $0x60] sm:$0xff]  ;;  %v2418_v61 = vld [vmem:[%s3311_s8 + $0x70] sm:$0xff] }
 0x642   : > { %3007 = vtanh.f32 %v2110_v58  ;;  %v2128_v4 = vadd.f32 1.0, %v3004_v63  ;;  %v2419_v58 = vld [vmem:[%s3311_s8 + $0x78] sm:$0xff] }
 0x643   : > { %3009 = vrcp.f32 %v2121_v62  ;;  %v2413_v62 = vld [vmem:[%s3311_s8 + $0x48] sm:$0xff]  ;;  %v2415_v63 = vld [vmem:[%s3311_s8 + $0x58] sm:$0xff] }
 0x644   : > { %3011 = vrcp.f32 %v2128_v4  ;;  %v2411_v4 = vld [vmem:[%s3311_s8 + $0x38] sm:$0xff] }
 0x64e   : > { %v3006_v1 = vpop.eup %3005 }
 0x64f   : > { %v3008_v2 = vpop.eup %3007 }
 0x650   : > { %v3010_v3 = vpop.eup %3009  ;;  %v2133_v6 = vmul.f32 %v3008_v2, %v3006_v1  ;;  %v2412_v1 = vld [vmem:[%s3311_s8 + $0x40] sm:$0xff]  ;;  %v2414_v2 = vld [vmem:[%s3311_s8 + $0x50] sm:$0xff] }
 0x651   : > { %v2132_v7 = vmul.f32 %v3010_v3, %v4312_v17  ;;  %v3012_v27 = vpop.eup %3011  ;;  %v2453_v17 = vld [vmem:[%s3311_s8 + $0x188] sm:$0xff] }
 0x652   : > { %v2409_v3 = vld [vmem:[%s3311_s8 + $0x28] sm:$0xff] }
 0x653   : > { %v4390_v8 = vadd.f32 %v2133_v6, %v2132_v7  ;;  %v2408_v6 = vld [vmem:[%s3311_s8 + $0x20] sm:$0xff]  ;;  %v2410_v7 = vld [vmem:[%s3311_s8 + $0x30] sm:$0xff] }
 0x655   : > { %3013 = vtanh.f32 %v4390_v8 }
 0x662   : > { %v3014_v15 = vpop.eup %3013 }
 0x663   : > { %v2136_v54 = vmul.f32 %v3014_v15, %v3012_v27  ;;  %v2405_v27 = vld [vmem:[%s3311_s8 + $0x8] sm:$0xff]  ;;  %v2407_v15 = vld [vmem:[%s3311_s8 + $0x18] sm:$0xff] }
 0x665   : > { %2140 = vst [vmem:[%s2139_s14] sm:$0xff] %v2136_v54  ;;  %2282 = vmatmul.mubr.f32.vlgmr.msra.gmra.mxu0 %v2136_v54  ;;  %2353 = vmatmul.mubr.f32.vlgmr.msra.gmra.mxu1 %v2136_v54  ;;  %v2404_v54 = vld [vmem:[%s3311_s8] sm:$0xff] }
 0x666   : > { %2532 = vmatprep.mubr.f32.mxu0 %v4678_v37  ;;  %2603 = vmatprep.mubr.f32.mxu1 %v4678_v37  ;;  %v2433_v37 = vld [vmem:[%s3311_s8 + $0xe8] sm:$0xff]  ;;  %s2390_s8 = scalar_lea.vmem %s3801_s5, %s2847_s15 }
 0x667   : > { %2469 = vmatpush1.msra.mxu0 %v2464_v21  ;;  %2540 = vmatpush1.msra.mxu1 %v2466_v25 }
 0x668   : > { %2470 = vmatprep.subr.mxu0 %v2461_v35  ;;  %2541 = vmatprep.subr.mxu1 %v2463_v43  ;;  %v2149_v35 = vld [vmem:[%s2147_s25 + $0x8] sm:$0xff] }
 0x669   : > { %2471 = vmatpush1.msra.mxu0 %v2460_v10  ;;  %2542 = vmatpush1.msra.mxu1 %v2462_v16 }
 0x66a   : > { %2472 = vmatprep.subr.mxu0 %v2457_v13  ;;  %2543 = vmatprep.subr.mxu1 %v2459_v11 }
 0x66b   : > { %2473 = vmatpush1.msra.mxu0 %v2456_v22  ;;  %2544 = vmatpush1.msra.mxu1 %v2458_v9  ;;  %v2151_v9 = vld [vmem:[%s2147_s25 + $0x18] sm:$0xff] }
 0x66c   : > { %2474 = vmatprep.subr.mxu0 %v2453_v17  ;;  %2545 = vmatprep.subr.mxu1 %v2455_v19 }
 0x66d   : > { %2475 = vmatpush1.msra.mxu0 %v2452_v12  ;;  %2546 = vmatpush1.msra.mxu1 %v2454_v18  ;;  %v2150_v12 = vld [vmem:[%s2147_s25 + $0x10] sm:$0xff] }
 0x66e   : > { %2476 = vmatprep.subr.mxu0 %v2449_v14  ;;  %2547 = vmatprep.subr.mxu1 %v2451_v28 }
 0x66f   : > { %2477 = vmatpush1.msra.mxu0 %v2448_v30  ;;  %2548 = vmatpush1.msra.mxu1 %v2450_v31 }
 0x670   : > { %2478 = vmatprep.subr.mxu0 %v2445_v26  ;;  %2549 = vmatprep.subr.mxu1 %v2447_v50 }
 0x671   : > { %2479 = vmatpush1.msra.mxu0 %v2444_v59  ;;  %2550 = vmatpush1.msra.mxu1 %v2446_v5 }
 0x672   : > { %2480 = vmatprep.subr.mxu0 %v2441_v34  ;;  %2551 = vmatprep.subr.mxu1 %v2443_v38 }
 0x673   : > { %2481 = vmatpush1.msra.mxu0 %v2440_v23  ;;  %2552 = vmatpush1.msra.mxu1 %v2442_v32 }
 0x674   : > { %2482 = vmatprep.subr.mxu0 %v2437_v24  ;;  %2553 = vmatprep.subr.mxu1 %v2439_v29 }
 0x675   : > { %2483 = vmatpush1.msra.mxu0 %v2436_v33  ;;  %2554 = vmatpush1.msra.mxu1 %v2438_v36 }
 0x676   : > { %2484 = vmatprep.subr.mxu0 %v2433_v37  ;;  %2555 = vmatprep.subr.mxu1 %v2435_v39  ;;  %v2400_v39 = vld [vmem:[%s2398_s13 + $0x8] sm:$0xff] }
 0x677   : > { %2485 = vmatpush1.msra.mxu0 %v2432_v40  ;;  %2556 = vmatpush1.msra.mxu1 %v2434_v41 }
 0x678   : > { %2486 = vmatprep.subr.mxu0 %v2429_v42  ;;  %2557 = vmatprep.subr.mxu1 %v2431_v44 }
 0x679   : > { %2487 = vmatpush1.msra.mxu0 %v2428_v45  ;;  %2558 = vmatpush1.msra.mxu1 %v2430_v46 }
 0x67a   : > { %2488 = vmatprep.subr.mxu0 %v2425_v47  ;;  %2559 = vmatprep.subr.mxu1 %v2427_v48  ;;  %v2402_v47 = vld [vmem:[%s2398_s13 + $0x18] sm:$0xff] }
 0x67b   : > { %2489 = vmatpush1.msra.mxu0 %v2424_v49  ;;  %2560 = vmatpush1.msra.mxu1 %v2426_v51  ;;  %v2401_v51 = vld [vmem:[%s2398_s13 + $0x10] sm:$0xff] }
 0x67c   : > { %2490 = vmatprep.subr.mxu0 %v2421_v52  ;;  %2561 = vmatprep.subr.mxu1 %v2423_v53 }
 0x67d   : > { %2491 = vmatpush1.msra.mxu0 %v2420_v55  ;;  %2562 = vmatpush1.msra.mxu1 %v2422_v56 }
 0x67e   : > { %2492 = vmatprep.subr.mxu0 %v2417_v57  ;;  %2563 = vmatprep.subr.mxu1 %v2419_v58 }
 0x67f   : > { %2493 = vmatpush1.msra.mxu0 %v2416_v60  ;;  %2564 = vmatpush1.msra.mxu1 %v2418_v61 }
 0x680   : > { %2494 = vmatprep.subr.mxu0 %v2413_v62  ;;  %2565 = vmatprep.subr.mxu1 %v2415_v63 }
 0x681   : > { %2495 = vmatpush1.msra.mxu0 %v2412_v1  ;;  %2566 = vmatpush1.msra.mxu1 %v2414_v2 }
 0x682   : > { %2496 = vmatprep.subr.mxu0 %v2409_v3  ;;  %2567 = vmatprep.subr.mxu1 %v2411_v4 }
 0x683   : > { %2497 = vmatpush1.msra.mxu0 %v2408_v6  ;;  %2568 = vmatpush1.msra.mxu1 %v2410_v7 }
 0x684   : > { %2498 = vmatprep.subr.mxu0 %v2405_v27  ;;  %2569 = vmatprep.subr.mxu1 %v2407_v15 }
 0x685   : > { %2499 = vmatpush1.msra.mxu0 %v2404_v54  ;;  %2570 = vmatpush1.msra.mxu1 %v2406_v20 }
 0x725   : > { %v2283_v21 = vpop.f32.mrf.mxu0  ;;  %v2354_v13 = vpop.f32.mrf.mxu1 }
 0x726   : > { %v2359_v25 = vadd.f32 %v2283_v21, %v2148_v0  ;;  %v2361_v14 = vadd.f32 %v2354_v13, %v2150_v12 }
 0x727   : > { %v2285_v43 = vpop.f32.mrf.mxu0  ;;  %v2356_v22 = vpop.f32.mrf.mxu1 }
 0x728   : > { %v2850_v10 = vmul.f32 -1.442695, %v2359_v25  ;;  %v2360_v16 = vadd.f32 %v2285_v43, %v2149_v35  ;;  %v2362_v17 = vadd.f32 %v2356_v22, %v2151_v9 }
 0x72a   : > { %3015 = vpow2.f32 %v2850_v10  ;;  %v2851_v11 = vmul.f32 -1.442695, %v2360_v16  ;;  %v2852_v19 = vmul.f32 -1.442695, %v2362_v17 }
 0x72c   : > { %3017 = vpow2.f32 %v2851_v11 }
 0x72d   : > { %3019 = vpow2.f32 %v2852_v19 }
 0x737   : > { %v3016_v18 = vpop.eup %3015 }
 0x738   : > { %v2366_v28 = vadd.f32 1.0, %v3016_v18 }
 0x739   : > { %v3018_v30 = vpop.eup %3017 }
 0x73a   : > { %3021 = vrcp.f32 %v2366_v28  ;;  %v2372_v31 = vadd.f32 1.0, %v3018_v30  ;;  %v3020_v26 = vpop.eup %3019 }
 0x73b   : > { %3023 = vtanh.f32 %v2361_v14  ;;  %v2379_v34 = vadd.f32 1.0, %v3020_v26 }
 0x73c   : > { %3025 = vrcp.f32 %v2372_v31 }
 0x73d   : > { %3027 = vrcp.f32 %v2379_v34 }
 0x747   : > { %v3022_v50 = vpop.eup %3021 }
 0x748   : > { %v3024_v59 = vpop.eup %3023 }
 0x749   : > { %v3026_v5 = vpop.eup %3025  ;;  %v2384_v38 = vmul.f32 %v3024_v59, %v3022_v50 }
 0x74a   : > { %v2383_v23 = vmul.f32 %v3026_v5, %v4390_v8  ;;  %v3028_v24 = vpop.eup %3027  ;;  %v2399_v8 = vld [vmem:[%s2398_s13] sm:$0xff] }
 0x74c   : > { %v2385_v32 = vadd.f32 %v2384_v38, %v2383_v23 }
 0x74e   : > { %3029 = vtanh.f32 %v2385_v32 }
 0x75b   : > { %v3030_v29 = vpop.eup %3029 }
 0x75c   : > { %v2387_v33 = vmul.f32 %v3030_v29, %v3028_v24 }
 0x75e   : > { %2391 = vst [vmem:[%s2390_s8] sm:$0xff] %v2387_v33  ;;  %2533 = vmatmul.mubr.f32.vlgmr.msra.gmra.mxu0 %v2387_v33  ;;  %2604 = vmatmul.mubr.f32.vlgmr.msra.gmra.mxu1 %v2387_v33 }
 0x81e   : > { %v2534_v36 = vpop.f32.mrf.mxu0  ;;  %v2605_v44 = vpop.f32.mrf.mxu1 }
 0x81f   : > { %v2610_v37 = vadd.f32 %v2534_v36, %v2399_v8  ;;  %v2612_v53 = vadd.f32 %v2605_v44, %v2401_v51 }
 0x820   : > { %v2536_v40 = vpop.f32.mrf.mxu0  ;;  %v2607_v46 = vpop.f32.mrf.mxu1 }
 0x821   : > { %v2856_v41 = vmul.f32 -1.442695, %v2610_v37  ;;  %v2611_v42 = vadd.f32 %v2536_v40, %v2400_v39  ;;  %v2613_v48 = vadd.f32 %v2607_v46, %v2402_v47 }
 0x823   : > { %3031 = vpow2.f32 %v2856_v41  ;;  %v2857_v45 = vmul.f32 -1.442695, %v2611_v42  ;;  %v2858_v49 = vmul.f32 -1.442695, %v2613_v48 }
 0x825   : > { %3033 = vpow2.f32 %v2857_v45 }
 0x826   : > { %3035 = vpow2.f32 %v2858_v49 }
 0x830   : > { %v3032_v52 = vpop.eup %3031 }
 0x831   : > { %v2617_v55 = vadd.f32 1.0, %v3032_v52 }
 0x832   : > { %v3034_v56 = vpop.eup %3033 }
 0x833   : > { %3037 = vrcp.f32 %v2617_v55  ;;  %v2623_v57 = vadd.f32 1.0, %v3034_v56  ;;  %v3036_v58 = vpop.eup %3035 }
 0x834   : > { %3039 = vtanh.f32 %v2612_v53  ;;  %v2630_v63 = vadd.f32 1.0, %v3036_v58 }
 0x835   : > { %3041 = vrcp.f32 %v2623_v57 }
 0x836   : > { %3043 = vrcp.f32 %v2630_v63 }
 0x840   : > { %v3038_v60 = vpop.eup %3037 }
 0x841   : > { %v3040_v61 = vpop.eup %3039 }
 0x842   : > { %v3042_v62 = vpop.eup %3041  ;;  %v2635_v1 = vmul.f32 %v3040_v61, %v3038_v60 }
 0x843   : > { %v2634_v2 = vmul.f32 %v3042_v62, %v2385_v32  ;;  %v3044_v4 = vpop.eup %3043 }
 0x845   : > { %v2636_v3 = vadd.f32 %v2635_v1, %v2634_v2 }
 0x847   : > { %3045 = vtanh.f32 %v2636_v3 }
 0x854   : > { %v3046_v6 = vpop.eup %3045 }
 0x855   : > { %v2638_v7 = vmul.f32 %v3046_v6, %v3044_v4 }
 0x857   : > { %2642 = vst [vmem:[%s2641_s19] sm:$0xff] %v2638_v7 }
 0x858 PF: > { %p17_p6 = scmp.ge.s32.totalorder %s3195_s20, 6   ;;  %s4680_s15 = smov %s3133_s16 }
 0x859   : > { %s4681_s16 = smov %s3137_s17  ;;  %s4682_s17 = smov %s3205_s23 }
 0x85a   : > { %s4683_s18 = smov %s3195_s20  ;;  %19 = sbr.rel (!%p17_p6) target bundleno = 5 (0x5), region = 108 }
 0x85f   :  { %2664 = vsyncpa [#allocation6], 1 }
 0x860   :  { %2666 = vsyncpa [#allocation6 + $0x1], 1 }
 0x861   :  { %2667 = vsyncpa [#allocation8], 1 }
 0x862   :  { %2669 = vsyncpa [#allocation8 + $0x1], 1 }

</bundles_post_ra>
